<compile_context>
chip_gen: v7x
topology: tpu7x:2x2x1
jax: 0.10.0
libtpu: 0.0.40
codegen_flags: <defaults>
</compile_context>

<pallas_src>
import functools

import jax
import jax.numpy as jnp
import numpy as np
from jax import lax
from jax.experimental import pallas as pl
from jax.experimental.pallas import tpu as pltpu


def _round_up(x, m):
    return ((x + m - 1) // m) * m


# -----------------------------------------------------------------------------
# im2col (NHWC order, no large relayout transpose)
# -----------------------------------------------------------------------------
def _im2col_nhwc(x_nchw, kh=3, kw=3):
    """(B,C,H,W) -> (B, H*W, C*kh*kw) patches, padding=1, stride=1.

    K-axis ordering is (c_in, kh, kw), matching PyTorch Conv2d weight layout
    (C_out, C_in, KH, KW) flattened over the last three.
    """
    B, C, H, W = x_nchw.shape
    x = jnp.transpose(x_nchw, (0, 2, 3, 1)).astype(jnp.float32)      # (B,H,W,C)
    xp = jnp.pad(x, ((0, 0), (1, 1), (1, 1), (0, 0)))
    cols = [xp[:, dh:dh + H, dw:dw + W, :] for dh in range(kh) for dw in range(kw)]
    patches = jnp.stack(cols, axis=-1)                               # (B,H,W,C,kh*kw)
    return patches.reshape(B, H * W, C * kh * kw)


# -----------------------------------------------------------------------------
# Kernel 1: feature extractor (conv-as-matmul + ReLU + global average pool)
#   - processes TB images (TB*P flattened patch rows) per grid step
#   - per-image mean is a (TB, TB*P) selector matmul -> everything stays 2-D
# -----------------------------------------------------------------------------
def _feat_kernel(p_ref, w_ref, b_ref, out_ref, *, images_per_block):
    # p_ref:  (TB*P, Kp)  flattened im2col rows for TB images
    # w_ref:  (Kp, C)     conv weight (K padded with zero rows)
    # b_ref:  (1, C)      conv bias
    # out_ref:(TB, C)     pooled features
    rows = p_ref.shape[0]
    TB = images_per_block
    P = rows // TB

    h = jnp.dot(p_ref[...], w_ref[...], preferred_element_type=jnp.float32)
    h = jnp.maximum(h + b_ref[...], 0.0)                             # (TB*P, C)

    # segmented global-average-pool: out[t] = mean over rows [t*P, (t+1)*P)
    row_idx = lax.broadcasted_iota(jnp.int32, (TB, rows), 1)
    img_idx = lax.broadcasted_iota(jnp.int32, (TB, rows), 0)
    lo = img_idx * P
    sel = jnp.where((row_idx >= lo) & (row_idx < lo + P),
                    jnp.float32(1.0 / P), jnp.float32(0.0))          # (TB, TB*P)
    out_ref[...] = jnp.dot(sel, h, preferred_element_type=jnp.float32)


def feature_extractor(images_nchw, conv_w, conv_b, *, images_per_step=8):
    """Synthetic frozen feature extractor: conv3x3 + ReLU + global avg pool."""
    B, C_in, H, W = images_nchw.shape
    C_out, _, KH, KW = conv_w.shape
    K = C_in * KH * KW
    Kp = _round_up(K, 32)                      # pad contraction/lane dim 27 -> 32
    P = H * W

    TB = images_per_step                       # images per grid step (multiple of 8 rows out)
    Bp = _round_up(B, TB)

    patches = _im2col_nhwc(images_nchw, KH, KW)                       # (B, P, K)
    patches = jnp.pad(patches, ((0, Bp - B), (0, 0), (0, Kp - K)))    # (Bp, P, Kp)
    patches2d = patches.reshape(Bp * P, Kp)                           # (Bp*P, Kp)

    w_mat = jnp.pad(conv_w.reshape(C_out, K).T.astype(jnp.float32),
                    ((0, Kp - K), (0, 0)))                            # (Kp, C_out)
    b_row = conv_b.reshape(1, C_out).astype(jnp.float32)              # (1, C_out)

    kernel = functools.partial(_feat_kernel, images_per_block=TB)
    feats = pl.pallas_call(
        kernel,
        out_shape=jax.ShapeDtypeStruct((Bp, C_out), jnp.float32),
        grid=(Bp // TB,),
        in_specs=[
            pl.BlockSpec((TB * P, Kp), lambda i: (i, 0)),
            pl.BlockSpec((Kp, C_out), lambda i: (0, 0)),     # resident weight
            pl.BlockSpec((1, C_out), lambda i: (0, 0)),      # resident bias
        ],
        out_specs=pl.BlockSpec((TB, C_out), lambda i: (i, 0)),
        compiler_params=pltpu.CompilerParams(
            dimension_semantics=("parallel",)),
        cost_estimate=pl.CostEstimate(
            flops=2 * Bp * P * Kp * C_out + 2 * Bp * (Bp * P) * C_out // (Bp // TB),
            transcendentals=0,
            bytes_accessed=4 * (Bp * P * Kp + Kp * C_out + Bp * C_out)),
    )(patches2d, w_mat, b_row)
    return feats[:B]


# -----------------------------------------------------------------------------
# Kernel 2: classifier MLP (bf16 MXU, f32 accumulation, batch-tiled)
#   Linear(2F,2048)+ReLU -> Linear(2048,512)+ReLU -> Linear(512,1)
#   (dropout = identity, eval mode)
# -----------------------------------------------------------------------------
def _mlp_kernel(x_ref, w1_ref, b1_ref, w2_ref, b2_ref, w3_ref, b3_ref, out_ref):
    x = x_ref[...].astype(jnp.bfloat16)                               # (TB, D)
    h1 = jnp.dot(x, w1_ref[...], preferred_element_type=jnp.float32) + b1_ref[...]
    h1 = jnp.maximum(h1, 0.0)                                         # (TB, 2048) f32
    h2 = jnp.dot(h1.astype(jnp.bfloat16), w2_ref[...],
                 preferred_element_type=jnp.float32) + b2_ref[...]
    h2 = jnp.maximum(h2, 0.0)                                         # (TB, 512) f32
    # final Linear(512, 1): lane reduction on VPU/XLU instead of an N=1 MXU matmul
    out_ref[...] = jnp.sum(h2 * w3_ref[...], axis=-1, keepdims=True) + b3_ref[...]


def classifier(x, w1, b1, w2, b2, w3, b3, *, rows_per_step=128):
    B, D = x.shape
    H1 = w1.shape[1]
    H2 = w2.shape[1]

    TB = rows_per_step if B >= rows_per_step else _round_up(B, 8)
    Bp = _round_up(B, TB)

    xp = jnp.pad(x.astype(jnp.float32), ((0, Bp - B), (0, 0)))        # (Bp, D)
    w1b = w1.astype(jnp.bfloat16)                                     # (D, H1)
    w2b = w2.astype(jnp.bfloat16)                                     # (H1, H2)
    b1r = b1.reshape(1, H1).astype(jnp.float32)
    b2r = b2.reshape(1, H2).astype(jnp.float32)
    w3r = w3.reshape(1, H2).astype(jnp.float32)                       # (1, H2) row
    b3r = b3.reshape(1, 1).astype(jnp.float32)

    out = pl.pallas_call(
        _mlp_kernel,
        out_shape=jax.ShapeDtypeStruct((Bp, 1), jnp.float32),
        grid=(Bp // TB,),
        in_specs=[
            pl.BlockSpec((TB, D), lambda i: (i, 0)),
            pl.BlockSpec((D, H1), lambda i: (0, 0)),    # resident bf16 weights
            pl.BlockSpec((1, H1), lambda i: (0, 0)),
            pl.BlockSpec((H1, H2), lambda i: (0, 0)),
            pl.BlockSpec((1, H2), lambda i: (0, 0)),
            pl.BlockSpec((1, H2), lambda i: (0, 0)),
            pl.BlockSpec((1, 1), lambda i: (0, 0)),
        ],
        out_specs=pl.BlockSpec((TB, 1), lambda i: (i, 0)),
        compiler_params=pltpu.CompilerParams(
            dimension_semantics=("parallel",)),
        cost_estimate=pl.CostEstimate(
            flops=2 * Bp * (D * H1 + H1 * H2 + H2),
            transcendentals=0,
            bytes_accessed=(4 * Bp * D + 2 * D * H1 + 2 * H1 * H2
                            + 4 * (H1 + 2 * H2 + 1) + 4 * Bp)),
    )(xp, w1b, b1r, w2b, b2r, w3r, b3r)
    return out[:B]


# -----------------------------------------------------------------------------
# PairwiseModel forward
# -----------------------------------------------------------------------------
def pairwise_model_forward(real_images, fake_images, params):
    B = real_images.shape[0]
    # Fuse the two (frozen) feature-extractor passes into ONE pallas_call by
    # stacking real and fake images along the batch axis; split afterwards.
    stacked = jnp.concatenate([real_images, fake_images], axis=0)     # (2B, C, H, W)
    feats = feature_extractor(stacked, params["conv_w"], params["conv_b"])  # (2B, F)
    combined = jnp.concatenate([feats[:B], feats[B:]], axis=1)        # (B, 2F)
    return classifier(combined,
                      params["w1"], params["b1"],
                      params["w2"], params["b2"],
                      params["w3"], params["b3"])


# -----------------------------------------------------------------------------
# Pure-JAX (f32) reference — independent conv via lax.conv_general_dilated
# -----------------------------------------------------------------------------
def reference_forward(real_images, fake_images, params):
    def feat(x):
        h = lax.conv_general_dilated(
            x.astype(jnp.float32), params["conv_w"].astype(jnp.float32),
            window_strides=(1, 1), padding=((1, 1), (1, 1)),
            dimension_numbers=("NCHW", "OIHW", "NCHW"))
        h = jnp.maximum(h + params["conv_b"][None, :, None, None], 0.0)
        return jnp.mean(h, axis=(2, 3))                               # (B, C_out)

    comb = jnp.concatenate([feat(real_images), feat(fake_images)], axis=1)
    h1 = jnp.maximum(comb @ params["w1"] + params["b1"], 0.0)
    h2 = jnp.maximum(h1 @ params["w2"] + params["b2"], 0.0)
    return h2 @ params["w3"] + params["b3"]


# -----------------------------------------------------------------------------
# Deterministic parameter init + driver
# -----------------------------------------------------------------------------
def init_params(key, c_in=3, c_out=16, hidden1=2048, hidden2=512):
    ks = jax.random.split(key, 8)
    feat2 = 2 * c_out
    return {
        "conv_w": 0.1 * jax.random.normal(ks[0], (c_out, c_in, 3, 3), jnp.float32),
        "conv_b": 0.1 * jax.random.normal(ks[1], (c_out,), jnp.float32),
        "w1": 0.05 * jax.random.normal(ks[2], (feat2, hidden1), jnp.float32),
        "b1": 0.05 * jax.random.normal(ks[3], (1, hidden1), jnp.float32),
        "w2": 0.02 * jax.random.normal(ks[4], (hidden1, hidden2), jnp.float32),
        "b2": 0.02 * jax.random.normal(ks[5], (1, hidden2), jnp.float32),
        "w3": 0.02 * jax.random.normal(ks[6], (hidden2, 1), jnp.float32),
        "b3": 0.02 * jax.random.normal(ks[7], (1, 1), jnp.float32),
    }


if __name__ == "__main__":
    key = jax.random.PRNGKey(0)
    k_real, k_fake = jax.random.split(key)

    B, C, H, W = 2, 3, 16, 16
    real_images = jax.random.normal(k_real, (B, C, H, W), jnp.float32)
    fake_images = jax.random.normal(k_fake, (B, C, H, W), jnp.float32)

    params = init_params(jax.random.PRNGKey(42))

    out = jax.jit(pairwise_model_forward)(real_images, fake_images, params)
    out = jax.block_until_ready(out)

    ref = reference_forward(real_images, fake_images, params)
    # Classifier matmuls now run with bf16 operands (f32 accumulation), so the
    # tolerance vs. the pure-f32 reference is loosened accordingly.
    np.testing.assert_allclose(np.asarray(out), np.asarray(ref),
                               rtol=5e-2, atol=5e-3)
    assert out.shape == (B, 1)

    print("KERNEL_OK")
</pallas_src>

<mosaic_0001>
module attributes {stable_mosaic.version = 11 : i64} {
  func.func @_feat_kernel(%arg0: i32, %arg1: memref<2048x32xf32, #tpu.memory_space<vmem>>, %arg2: memref<32x16xf32, #tpu.memory_space<vmem>>, %arg3: memref<1x16xf32, #tpu.memory_space<vmem>>, %arg4: memref<8x16xf32, #tpu.memory_space<vmem>>) attributes {dimension_semantics = [#tpu.dimension_semantics<parallel>], iteration_bounds = array<i64: 1>, scalar_prefetch = 0 : i64, scratch_operands = 0 : i64, tpu.core_type = #tpu.core_type<tc>, window_params = [{transform_indices = @transform_0, window_bounds = array<i64: 2048, 32>}, {pipeline_mode = #tpu.pipeline_mode<synchronous>, transform_indices = @transform_1, window_bounds = array<i64: 32, 16>}, {pipeline_mode = #tpu.pipeline_mode<synchronous>, transform_indices = @transform_2, window_bounds = array<i64: 1, 16>}, {transform_indices = @transform_3, window_bounds = array<i64: 8, 16>}]} {
    %c0 = arith.constant 0 : index
    %c0_0 = arith.constant 0 : index
    %0 = vector.load %arg1[%c0, %c0_0] : memref<2048x32xf32, #tpu.memory_space<vmem>>, vector<2048x32xf32>
    %c0_1 = arith.constant 0 : index
    %c0_2 = arith.constant 0 : index
    %1 = vector.load %arg2[%c0_1, %c0_2] : memref<32x16xf32, #tpu.memory_space<vmem>>, vector<32x16xf32>
    %cst = arith.constant dense<0.000000e+00> : vector<2048x16xf32>
    %2 = tpu.matmul %0, %1, %cst {dimension_numbers = #tpu.dot_dimension_numbers<[1], [0], [0], [1], [0, 0, 1, 1], [], []>} : vector<2048x32xf32>, vector<32x16xf32>, vector<2048x16xf32> -> vector<2048x16xf32>
    %c0_3 = arith.constant 0 : index
    %c0_4 = arith.constant 0 : index
    %3 = vector.load %arg3[%c0_3, %c0_4] : memref<1x16xf32, #tpu.memory_space<vmem>>, vector<1x16xf32>
    %4 = vector.broadcast %3 : vector<1x16xf32> to vector<2048x16xf32>
    %5 = arith.addf %2, %4 : vector<2048x16xf32>
    %cst_5 = arith.constant 0.000000e+00 : f32
    %6 = vector.broadcast %cst_5 : f32 to vector<2048x16xf32>
    %7 = arith.maximumf %5, %6 : vector<2048x16xf32>
    %8 = tpu.iota {dimensions = array<i32: 1>} : vector<8x2048xi32>
    %9 = tpu.iota {dimensions = array<i32: 0>} : vector<8x2048xi32>
    %c256_i32 = arith.constant 256 : i32
    %10 = vector.broadcast %c256_i32 : i32 to vector<8x2048xi32>
    %11 = arith.muli %9, %10 : vector<8x2048xi32>
    %12 = arith.cmpi sge, %8, %11 : vector<8x2048xi32>
    %c256_i32_6 = arith.constant 256 : i32
    %13 = vector.broadcast %c256_i32_6 : i32 to vector<8x2048xi32>
    %14 = arith.addi %11, %13 : vector<8x2048xi32>
    %15 = arith.cmpi slt, %8, %14 : vector<8x2048xi32>
    %16 = arith.andi %12, %15 : vector<8x2048xi1>
    %cst_7 = arith.constant 3.906250e-03 : f32
    %cst_8 = arith.constant 0.000000e+00 : f32
    %17 = vector.broadcast %cst_7 : f32 to vector<8x2048xf32>
    %18 = vector.broadcast %cst_8 : f32 to vector<8x2048xf32>
    %19 = arith.select %16, %17, %18 : vector<8x2048xi1>, vector<8x2048xf32>
    %cst_9 = arith.constant dense<0.000000e+00> : vector<8x16xf32>
    %20 = tpu.matmul %19, %7, %cst_9 {dimension_numbers = #tpu.dot_dimension_numbers<[1], [0], [0], [1], [0, 0, 1, 1], [], []>} : vector<8x2048xf32>, vector<2048x16xf32>, vector<8x16xf32> -> vector<8x16xf32>
    %c0_10 = arith.constant 0 : index
    %c0_11 = arith.constant 0 : index
    %21 = vector.load %arg4[%c0_10, %c0_11] : memref<8x16xf32, #tpu.memory_space<vmem>>, vector<8x16xf32>
    tpu.vector_store %arg4[%c0_10, %c0_11], %20 {strides = array<i32>} : memref<8x16xf32, #tpu.memory_space<vmem>>, vector<8x16xf32>,
    return
  }
  func.func @transform_0(%arg0: i32) -> (i32, i32) {
    %c0_i32 = arith.constant 0 : i32
    %c0_i32_0 = arith.constant 0 : i32
    return %arg0, %c0_i32 : i32, i32
  }
  func.func @transform_1(%arg0: i32) -> (i32, i32) {
    %c0_i32 = arith.constant 0 : i32
    %c0_i32_0 = arith.constant 0 : i32
    %c0_i32_1 = arith.constant 0 : i32
    return %c0_i32, %c0_i32_0 : i32, i32
  }
  func.func @transform_2(%arg0: i32) -> (i32, i32) {
    %c0_i32 = arith.constant 0 : i32
    %c0_i32_0 = arith.constant 0 : i32
    %c0_i32_1 = arith.constant 0 : i32
    return %c0_i32, %c0_i32_0 : i32, i32
  }
  func.func @transform_3(%arg0: i32) -> (i32, i32) {
    %c0_i32 = arith.constant 0 : i32
    %c0_i32_0 = arith.constant 0 : i32
    return %arg0, %c0_i32 : i32, i32
  }
}

module attributes {stable_mosaic.version = 11 : i64} {
  func.func @_mlp_kernel(%arg0: i32, %arg1: memref<8x32xf32, #tpu.memory_space<vmem>>, %arg2: memref<32x2048xbf16, #tpu.memory_space<vmem>>, %arg3: memref<1x2048xf32, #tpu.memory_space<vmem>>, %arg4: memref<2048x512xbf16, #tpu.memory_space<vmem>>, %arg5: memref<1x512xf32, #tpu.memory_space<vmem>>, %arg6: memref<1x512xf32, #tpu.memory_space<vmem>>, %arg7: memref<1x1xf32, #tpu.memory_space<vmem>>, %arg8: memref<8x1xf32, #tpu.memory_space<vmem>>) attributes {dimension_semantics = [#tpu.dimension_semantics<parallel>], iteration_bounds = array<i64: 1>, scalar_prefetch = 0 : i64, scratch_operands = 0 : i64, tpu.core_type = #tpu.core_type<tc>, window_params = [{transform_indices = @transform_0, window_bounds = array<i64: 8, 32>}, {pipeline_mode = #tpu.pipeline_mode<synchronous>, transform_indices = @transform_1, window_bounds = array<i64: 32, 2048>}, {pipeline_mode = #tpu.pipeline_mode<synchronous>, transform_indices = @transform_2, window_bounds = array<i64: 1, 2048>}, {pipeline_mode = #tpu.pipeline_mode<synchronous>, transform_indices = @transform_3, window_bounds = array<i64: 2048, 512>}, {pipeline_mode = #tpu.pipeline_mode<synchronous>, transform_indices = @transform_4, window_bounds = array<i64: 1, 512>}, {pipeline_mode = #tpu.pipeline_mode<synchronous>, transform_indices = @transform_5, window_bounds = array<i64: 1, 512>}, {pipeline_mode = #tpu.pipeline_mode<synchronous>, transform_indices = @transform_6, window_bounds = array<i64: 1, 1>}, {transform_indices = @transform_7, window_bounds = array<i64: 8, 1>}]} {
    %c0 = arith.constant 0 : index
    %c0_0 = arith.constant 0 : index
    %0 = vector.load %arg1[%c0, %c0_0] : memref<8x32xf32, #tpu.memory_space<vmem>>, vector<8x32xf32>
    %1 = arith.truncf %0 : vector<8x32xf32> to vector<8x32xbf16>
    %c0_1 = arith.constant 0 : index
    %c0_2 = arith.constant 0 : index
    %2 = vector.load %arg2[%c0_1, %c0_2] : memref<32x2048xbf16, #tpu.memory_space<vmem>>, vector<32x2048xbf16>
    %cst = arith.constant dense<0.000000e+00> : vector<8x2048xf32>
    %3 = tpu.matmul %1, %2, %cst {dimension_numbers = #tpu.dot_dimension_numbers<[1], [0], [0], [1], [0, 0, 1, 1], [], []>} : vector<8x32xbf16>, vector<32x2048xbf16>, vector<8x2048xf32> -> vector<8x2048xf32>
    %c0_3 = arith.constant 0 : index
    %c0_4 = arith.constant 0 : index
    %4 = vector.load %arg3[%c0_3, %c0_4] : memref<1x2048xf32, #tpu.memory_space<vmem>>, vector<1x2048xf32>
    %5 = vector.broadcast %4 : vector<1x2048xf32> to vector<8x2048xf32>
    %6 = arith.addf %3, %5 : vector<8x2048xf32>
    %cst_5 = arith.constant 0.000000e+00 : f32
    %7 = vector.broadcast %cst_5 : f32 to vector<8x2048xf32>
    %8 = arith.maximumf %6, %7 : vector<8x2048xf32>
    %9 = arith.truncf %8 : vector<8x2048xf32> to vector<8x2048xbf16>
    %c0_6 = arith.constant 0 : index
    %c0_7 = arith.constant 0 : index
    %10 = vector.load %arg4[%c0_6, %c0_7] : memref<2048x512xbf16, #tpu.memory_space<vmem>>, vector<2048x512xbf16>
    %cst_8 = arith.constant dense<0.000000e+00> : vector<8x512xf32>
    %11 = tpu.matmul %9, %10, %cst_8 {dimension_numbers = #tpu.dot_dimension_numbers<[1], [0], [0], [1], [0, 0, 1, 1], [], []>} : vector<8x2048xbf16>, vector<2048x512xbf16>, vector<8x512xf32> -> vector<8x512xf32>
    %c0_9 = arith.constant 0 : index
    %c0_10 = arith.constant 0 : index
    %12 = vector.load %arg5[%c0_9, %c0_10] : memref<1x512xf32, #tpu.memory_space<vmem>>, vector<1x512xf32>
    %13 = vector.broadcast %12 : vector<1x512xf32> to vector<8x512xf32>
    %14 = arith.addf %11, %13 : vector<8x512xf32>
    %cst_11 = arith.constant 0.000000e+00 : f32
    %15 = vector.broadcast %cst_11 : f32 to vector<8x512xf32>
    %16 = arith.maximumf %14, %15 : vector<8x512xf32>
    %c0_12 = arith.constant 0 : index
    %c0_13 = arith.constant 0 : index
    %17 = vector.load %arg6[%c0_12, %c0_13] : memref<1x512xf32, #tpu.memory_space<vmem>>, vector<1x512xf32>
    %18 = vector.broadcast %17 : vector<1x512xf32> to vector<8x512xf32>
    %19 = arith.mulf %16, %18 : vector<8x512xf32>
    %cst_14 = arith.constant dense<0.000000e+00> : vector<8xf32>
    %20 = vector.multi_reduction <add>, %19, %cst_14 [1] : vector<8x512xf32> to vector<8xf32>
    %21 = vector.shape_cast %20 : vector<8xf32> to vector<8x1xf32>
    %c0_15 = arith.constant 0 : index
    %c0_16 = arith.constant 0 : index
    %22 = vector.load %arg7[%c0_15, %c0_16] : memref<1x1xf32, #tpu.memory_space<vmem>>, vector<1x1xf32>
    %23 = vector.broadcast %22 : vector<1x1xf32> to vector<8x1xf32>
    %24 = arith.addf %21, %23 : vector<8x1xf32>
    %c0_17 = arith.constant 0 : index
    %c0_18 = arith.constant 0 : index
    %25 = vector.load %arg8[%c0_17, %c0_18] : memref<8x1xf32, #tpu.memory_space<vmem>>, vector<8x1xf32>
    tpu.vector_store %arg8[%c0_17, %c0_18], %24 {strides = array<i32>} : memref<8x1xf32, #tpu.memory_space<vmem>>, vector<8x1xf32>,
    return
  }
  func.func @transform_0(%arg0: i32) -> (i32, i32) {
    %c0_i32 = arith.constant 0 : i32
    %c0_i32_0 = arith.constant 0 : i32
    return %arg0, %c0_i32 : i32, i32
  }
  func.func @transform_1(%arg0: i32) -> (i32, i32) {
    %c0_i32 = arith.constant 0 : i32
    %c0_i32_0 = arith.constant 0 : i32
    %c0_i32_1 = arith.constant 0 : i32
    return %c0_i32, %c0_i32_0 : i32, i32
  }
  func.func @transform_2(%arg0: i32) -> (i32, i32) {
    %c0_i32 = arith.constant 0 : i32
    %c0_i32_0 = arith.constant 0 : i32
    %c0_i32_1 = arith.constant 0 : i32
    return %c0_i32, %c0_i32_0 : i32, i32
  }
  func.func @transform_3(%arg0: i32) -> (i32, i32) {
    %c0_i32 = arith.constant 0 : i32
    %c0_i32_0 = arith.constant 0 : i32
    %c0_i32_1 = arith.constant 0 : i32
    return %c0_i32, %c0_i32_0 : i32, i32
  }
  func.func @transform_4(%arg0: i32) -> (i32, i32) {
    %c0_i32 = arith.constant 0 : i32
    %c0_i32_0 = arith.constant 0 : i32
    %c0_i32_1 = arith.constant 0 : i32
    return %c0_i32, %c0_i32_0 : i32, i32
  }
  func.func @transform_5(%arg0: i32) -> (i32, i32) {
    %c0_i32 = arith.constant 0 : i32
    %c0_i32_0 = arith.constant 0 : i32
    %c0_i32_1 = arith.constant 0 : i32
    return %c0_i32, %c0_i32_0 : i32, i32
  }
  func.func @transform_6(%arg0: i32) -> (i32, i32) {
    %c0_i32 = arith.constant 0 : i32
    %c0_i32_0 = arith.constant 0 : i32
    %c0_i32_1 = arith.constant 0 : i32
    return %c0_i32, %c0_i32_0 : i32, i32
  }
  func.func @transform_7(%arg0: i32) -> (i32, i32) {
    %c0_i32 = arith.constant 0 : i32
    %c0_i32_0 = arith.constant 0 : i32
    return %arg0, %c0_i32 : i32, i32
  }
}

</mosaic_0001>

<bundles_post_ra>
// kernel: pairwise_model_forward.2
= control target key start
LH: loop header
LB: loop body
LE: loop exit
PB: predicated region body
PF: predicated region fallthrough
CT: control target
= control target key end

     0   :  { %vm281_vm0 = vcmask 261120   ;;  %s6441_s1 = inlined_call_operand.vmem [shape: f32[32,16], index: 1, kind: input, shape index: {}]   ;;  %s6442_s0 = inlined_call_operand.vmem [shape: f32[2048,32], index: 0, kind: input, shape index: {}]   ;;  %s6443_s2 = inlined_call_operand.vmem [shape: f32[1,16], index: 2, kind: input, shape index: {}]   ;;  %s6444_s3 = inlined_call_operand.vmem [shape: f32[8,16], index: 3, kind: output, shape index: {}]  }
   0x1   :  { %v270_v0 = vld [vmem:[%s6441_s1] sm:$0xff]  ;;  %v271_v1 = vld [vmem:[%s6441_s1 + $0x8] sm:$0xff]  ;;  %v272_v2 = vld [vmem:[%s6441_s1 + $0x10] sm:$0xff] }
   0x2   :  { %v4507_v3 = vpack.c.bf16 %v271_v1, %v270_v0  ;;  %v273_v4 = vld [vmem:[%s6441_s1 + $0x18] sm:$0xff]  ;;  %v14_v5 = vld [vmem:[%s6442_s0] sm:$0xff]  ;;  %v15_v7 = vld [vmem:[%s6442_s0 + $0x8] sm:$0xff] }
   0x3   :  { %v4511_v6 = vpack.c.bf16 %v273_v4, %v272_v2  ;;  %4123 = vmatprep.mubr.msk.f32.mxu0 %vm281_vm0, %v14_v5  ;;  %v16_v8 = vld [vmem:[%s6442_s0 + $0x10] sm:$0xff]  ;;  %v17_v9 = vld [vmem:[%s6442_s0 + $0x18] sm:$0xff]  ;;  %v18_v10 = vld [vmem:[%s6442_s0 + $0x20] sm:$0xff] }
   0x4   :  { %4508 = vmatprep.subr.bf16.mxu0 %v4507_v3  ;;  %4771 = vmatprep.subr.bf16.mxu1 %v4507_v3  ;;  %v19_v11 = vld [vmem:[%s6442_s0 + $0x28] sm:$0xff]  ;;  %v20_v12 = vld [vmem:[%s6442_s0 + $0x30] sm:$0xff]  ;;  %v21_v13 = vld [vmem:[%s6442_s0 + $0x38] sm:$0xff] }
   0x5   :  { %4510 = vmatpush3.bf16.msra.mxu0 %v4507_v3  ;;  %4773 = vmatpush3.bf16.msra.mxu1 %v4507_v3  ;;  %v22_v14 = vld [vmem:[%s6442_s0 + $0x40] sm:$0xff]  ;;  %v23_v15 = vld [vmem:[%s6442_s0 + $0x48] sm:$0xff]  ;;  %v24_v16 = vld [vmem:[%s6442_s0 + $0x50] sm:$0xff] }
   0x6   :  { %4512 = vmatprep.subr.bf16.mxu0 %v4511_v6  ;;  %4772 = vmatprep.subr.bf16.mxu1 %v4511_v6  ;;  %v25_v17 = vld [vmem:[%s6442_s0 + $0x58] sm:$0xff]  ;;  %v26_v18 = vld [vmem:[%s6442_s0 + $0x60] sm:$0xff]  ;;  %v27_v19 = vld [vmem:[%s6442_s0 + $0x68] sm:$0xff] }
   0x7   :  { %v28_v20 = vld [vmem:[%s6442_s0 + $0x70] sm:$0xff]  ;;  %v29_v21 = vld [vmem:[%s6442_s0 + $0x78] sm:$0xff]  ;;  %v30_v22 = vld [vmem:[%s6442_s0 + $0x80] sm:$0xff] }
   0x8   :  { %v31_v23 = vld [vmem:[%s6442_s0 + $0x88] sm:$0xff]  ;;  %v32_v24 = vld [vmem:[%s6442_s0 + $0x90] sm:$0xff]  ;;  %v33_v25 = vld [vmem:[%s6442_s0 + $0x98] sm:$0xff] }
   0x9   :  { %4514 = vmatpush3.bf16.msra.mxu0 %v4511_v6  ;;  %4774 = vmatpush3.bf16.msra.mxu1 %v4511_v6  ;;  %v34_v26 = vld [vmem:[%s6442_s0 + $0xa0] sm:$0xff]  ;;  %v35_v27 = vld [vmem:[%s6442_s0 + $0xa8] sm:$0xff]  ;;  %v36_v28 = vld [vmem:[%s6442_s0 + $0xb0] sm:$0xff] }
   0xa   :  { %v37_v29 = vld [vmem:[%s6442_s0 + $0xb8] sm:$0xff]  ;;  %v38_v30 = vld [vmem:[%s6442_s0 + $0xc0] sm:$0xff]  ;;  %v39_v31 = vld [vmem:[%s6442_s0 + $0xc8] sm:$0xff] }
   0xb   :  { %v200_v32 = vld [vmem:[%s6442_s0 + $0x5d0] sm:$0xff]  ;;  %v201_v34 = vld [vmem:[%s6442_s0 + $0x5d8] sm:$0xff]  ;;  %v202_v36 = vld [vmem:[%s6442_s0 + $0x5e0] sm:$0xff] }
   0xc   :  { %4124 = vmatmul.mubr.msk.f32.vlgmr.msra.gmra.mrb[0].mxu0 %vm281_vm0, %v15_v7  ;;  %v40_v33 = vld [vmem:[%s6442_s0 + $0xd0] sm:$0xff]  ;;  %4402 = vmatprep.mubr.msk.f32.mxu1 %vm281_vm0, %v200_v32  ;;  %v41_v35 = vld [vmem:[%s6442_s0 + $0xd8] sm:$0xff]  ;;  %v42_v37 = vld [vmem:[%s6442_s0 + $0xe0] sm:$0xff] }
   0xd   :  { %4126 = vmatprep.mubr.msk.f32.mxu0 %vm281_vm0, %v16_v8  ;;  %4403 = vmatmul.mubr.msk.f32.vlgmr.msra.gmra.mrb[0].mxu1 %vm281_vm0, %v201_v34  ;;  %v203_v38 = vld [vmem:[%s6442_s0 + $0x5e8] sm:$0xff]  ;;  %v204_v40 = vld [vmem:[%s6442_s0 + $0x5f0] sm:$0xff]  ;;  %v205_v42 = vld [vmem:[%s6442_s0 + $0x5f8] sm:$0xff] }
   0xe   :  { %4405 = vmatprep.mubr.msk.f32.mxu1 %vm281_vm0, %v202_v36  ;;  %v43_v39 = vld [vmem:[%s6442_s0 + $0xe8] sm:$0xff]  ;;  %v44_v41 = vld [vmem:[%s6442_s0 + $0xf0] sm:$0xff]  ;;  %v45_v43 = vld [vmem:[%s6442_s0 + $0xf8] sm:$0xff] }
   0xf   :  { %v206_v44 = vld [vmem:[%s6442_s0 + $0x600] sm:$0xff]  ;;  %v207_v46 = vld [vmem:[%s6442_s0 + $0x608] sm:$0xff]  ;;  %v208_v48 = vld [vmem:[%s6442_s0 + $0x610] sm:$0xff] }
  0x10   :  { %4127 = vmatmul.mubr.msk.f32.gmra.mrb[2].mxu0 %vm281_vm0, %v17_v9  ;;  %v46_v45 = vld [vmem:[%s6442_s0 + $0x100] sm:$0xff]  ;;  %v47_v47 = vld [vmem:[%s6442_s0 + $0x108] sm:$0xff]  ;;  %v48_v49 = vld [vmem:[%s6442_s0 + $0x110] sm:$0xff] }
  0x11   :  { %4129 = vmatprep.mubr.msk.f32.mxu0 %vm281_vm0, %v18_v10  ;;  %4406 = vmatmul.mubr.msk.f32.gmra.mrb[2].mxu1 %vm281_vm0, %v203_v38  ;;  %v209_v50 = vld [vmem:[%s6442_s0 + $0x618] sm:$0xff]  ;;  %v210_v52 = vld [vmem:[%s6442_s0 + $0x620] sm:$0xff]  ;;  %v211_v54 = vld [vmem:[%s6442_s0 + $0x628] sm:$0xff] }
  0x12   :  { %4408 = vmatprep.mubr.msk.f32.mxu1 %vm281_vm0, %v204_v40  ;;  %v49_v51 = vld [vmem:[%s6442_s0 + $0x118] sm:$0xff]  ;;  %v50_v53 = vld [vmem:[%s6442_s0 + $0x120] sm:$0xff]  ;;  %v51_v55 = vld [vmem:[%s6442_s0 + $0x128] sm:$0xff] }
  0x13   :  { %v212_v56 = vld [vmem:[%s6442_s0 + $0x630] sm:$0xff]  ;;  %v213_v58 = vld [vmem:[%s6442_s0 + $0x638] sm:$0xff]  ;;  %v214_v60 = vld [vmem:[%s6442_s0 + $0x640] sm:$0xff] }
  0x14   :  { %4130 = vmatmul.mubr.msk.f32.gmra.mrb[4].mxu0 %vm281_vm0, %v19_v11  ;;  %v52_v57 = vld [vmem:[%s6442_s0 + $0x130] sm:$0xff]  ;;  %v53_v59 = vld [vmem:[%s6442_s0 + $0x138] sm:$0xff]  ;;  %v54_v61 = vld [vmem:[%s6442_s0 + $0x140] sm:$0xff] }
  0x15   :  { %4132 = vmatprep.mubr.msk.f32.mxu0 %vm281_vm0, %v20_v12  ;;  %4409 = vmatmul.mubr.msk.f32.gmra.mrb[4].mxu1 %vm281_vm0, %v205_v42  ;;  %v215_v62 = vld [vmem:[%s6442_s0 + $0x648] sm:$0xff]  ;;  %v216_v0 = vld [vmem:[%s6442_s0 + $0x650] sm:$0xff]  ;;  %v217_v2 = vld [vmem:[%s6442_s0 + $0x658] sm:$0xff] }
  0x16   :  { %4411 = vmatprep.mubr.msk.f32.mxu1 %vm281_vm0, %v206_v44  ;;  %v55_v63 = vld [vmem:[%s6442_s0 + $0x148] sm:$0xff]  ;;  %v56_v1 = vld [vmem:[%s6442_s0 + $0x150] sm:$0xff]  ;;  %v57_v3 = vld [vmem:[%s6442_s0 + $0x158] sm:$0xff] }
  0x17   :  { %v58_v4 = vld [vmem:[%s6442_s0 + $0x160] sm:$0xff]  ;;  %v219_v6 = vld [vmem:[%s6442_s0 + $0x668] sm:$0xff]  ;;  %v60_v8 = vld [vmem:[%s6442_s0 + $0x170] sm:$0xff] }
  0x18   :  { %4133 = vmatmul.mubr.msk.f32.gmra.mrb[6].mxu0 %vm281_vm0, %v21_v13  ;;  %v218_v5 = vld [vmem:[%s6442_s0 + $0x660] sm:$0xff]  ;;  %v59_v7 = vld [vmem:[%s6442_s0 + $0x168] sm:$0xff]  ;;  %v220_v9 = vld [vmem:[%s6442_s0 + $0x670] sm:$0xff] }
  0x19   :  { %4135 = vmatprep.mubr.msk.f32.mxu0 %vm281_vm0, %v22_v14  ;;  %4412 = vmatmul.mubr.msk.f32.gmra.mrb[6].mxu1 %vm281_vm0, %v207_v46  ;;  %v221_v10 = vld [vmem:[%s6442_s0 + $0x678] sm:$0xff]  ;;  %v62_v12 = vld [vmem:[%s6442_s0 + $0x180] sm:$0xff]  ;;  %v223_v14 = vld [vmem:[%s6442_s0 + $0x688] sm:$0xff] }
  0x1a   :  { %4414 = vmatprep.mubr.msk.f32.mxu1 %vm281_vm0, %v208_v48  ;;  %v61_v11 = vld [vmem:[%s6442_s0 + $0x178] sm:$0xff]  ;;  %v222_v13 = vld [vmem:[%s6442_s0 + $0x680] sm:$0xff]  ;;  %v72_v32 = vld [vmem:[%s6442_s0 + $0x1d0] sm:$0xff] }
  0x1b   :  { %v233_v34 = vld [vmem:[%s6442_s0 + $0x6d8] sm:$0xff]  ;;  %v74_v36 = vld [vmem:[%s6442_s0 + $0x1e0] sm:$0xff]  ;;  %v235_v38 = vld [vmem:[%s6442_s0 + $0x6e8] sm:$0xff] }
  0x1c   :  { %4136 = vmatmul.mubr.msk.f32.gmra.mrb[8].mxu0 %vm281_vm0, %v23_v15  ;;  %v63_v15 = vld [vmem:[%s6442_s0 + $0x188] sm:$0xff]  ;;  %v76_v40 = vld [vmem:[%s6442_s0 + $0x1f0] sm:$0xff]  ;;  %v237_v42 = vld [vmem:[%s6442_s0 + $0x6f8] sm:$0xff] }
  0x1d   :  { %4138 = vmatprep.mubr.msk.f32.mxu0 %vm281_vm0, %v24_v16  ;;  %4415 = vmatmul.mubr.msk.f32.gmra.mrb[8].mxu1 %vm281_vm0, %v209_v50  ;;  %v64_v16 = vld [vmem:[%s6442_s0 + $0x190] sm:$0xff]  ;;  %v78_v44 = vld [vmem:[%s6442_s0 + $0x200] sm:$0xff]  ;;  %v239_v46 = vld [vmem:[%s6442_s0 + $0x708] sm:$0xff] }
  0x1e   :  { %4417 = vmatprep.mubr.msk.f32.mxu1 %vm281_vm0, %v210_v52  ;;  %v80_v48 = vld [vmem:[%s6442_s0 + $0x210] sm:$0xff]  ;;  %v241_v50 = vld [vmem:[%s6442_s0 + $0x718] sm:$0xff]  ;;  %v82_v52 = vld [vmem:[%s6442_s0 + $0x220] sm:$0xff] }
  0x20   :  { %4139 = vmatmul.mubr.msk.f32.gmra.mrb[10].mxu0 %vm281_vm0, %v25_v17  ;;  %v224_v17 = vld [vmem:[%s6442_s0 + $0x690] sm:$0xff] }
  0x21   :  { %4141 = vmatprep.mubr.msk.f32.mxu0 %vm281_vm0, %v26_v18  ;;  %4418 = vmatmul.mubr.msk.f32.gmra.mrb[10].mxu1 %vm281_vm0, %v211_v54  ;;  %v225_v18 = vld [vmem:[%s6442_s0 + $0x698] sm:$0xff]  ;;  %v243_v54 = vld [vmem:[%s6442_s0 + $0x728] sm:$0xff] }
  0x22   :  { %4420 = vmatprep.mubr.msk.f32.mxu1 %vm281_vm0, %v212_v56  ;;  %v84_v56 = vld [vmem:[%s6442_s0 + $0x230] sm:$0xff] }
  0x24   :  { %4142 = vmatmul.mubr.msk.f32.gmra.mrb[12].mxu0 %vm281_vm0, %v27_v19  ;;  %v65_v19 = vld [vmem:[%s6442_s0 + $0x198] sm:$0xff] }
  0x25   :  { %4144 = vmatprep.mubr.msk.f32.mxu0 %vm281_vm0, %v28_v20  ;;  %4421 = vmatmul.mubr.msk.f32.gmra.mrb[12].mxu1 %vm281_vm0, %v213_v58  ;;  %v66_v20 = vld [vmem:[%s6442_s0 + $0x1a0] sm:$0xff]  ;;  %v245_v58 = vld [vmem:[%s6442_s0 + $0x738] sm:$0xff] }
  0x26   :  { %4423 = vmatprep.mubr.msk.f32.mxu1 %vm281_vm0, %v214_v60  ;;  %v86_v60 = vld [vmem:[%s6442_s0 + $0x240] sm:$0xff] }
  0x28   :  { %4145 = vmatmul.mubr.msk.f32.gmra.mrb[14].mxu0 %vm281_vm0, %v29_v21  ;;  %v226_v21 = vld [vmem:[%s6442_s0 + $0x6a0] sm:$0xff] }
  0x29   :  { %4147 = vmatprep.mubr.msk.f32.mxu0 %vm281_vm0, %v30_v22  ;;  %4424 = vmatmul.mubr.msk.f32.gmra.mrb[14].mxu1 %vm281_vm0, %v215_v62  ;;  %v227_v22 = vld [vmem:[%s6442_s0 + $0x6a8] sm:$0xff] }
  0x2a   :  { %4426 = vmatprep.mubr.msk.f32.mxu1 %vm281_vm0, %v216_v0  ;;  %v247_v62 = vld [vmem:[%s6442_s0 + $0x748] sm:$0xff]  ;;  %v88_v0 = vld [vmem:[%s6442_s0 + $0x250] sm:$0xff] }
  0x2c   :  { %4148 = vmatmul.mubr.msk.f32.gmra.mrb[16].mxu0 %vm281_vm0, %v31_v23  ;;  %v67_v23 = vld [vmem:[%s6442_s0 + $0x1a8] sm:$0xff] }
  0x2d   :  { %4150 = vmatprep.mubr.msk.f32.mxu0 %vm281_vm0, %v32_v24  ;;  %4427 = vmatmul.mubr.msk.f32.gmra.mrb[16].mxu1 %vm281_vm0, %v217_v2  ;;  %v68_v24 = vld [vmem:[%s6442_s0 + $0x1b0] sm:$0xff]  ;;  %v249_v2 = vld [vmem:[%s6442_s0 + $0x758] sm:$0xff] }
  0x2e   :  { %4429 = vmatprep.mubr.msk.f32.mxu1 %vm281_vm0, %v218_v5  ;;  %v250_v5 = vld [vmem:[%s6442_s0 + $0x760] sm:$0xff] }
  0x30   :  { %4151 = vmatmul.mubr.msk.f32.gmra.mrb[18].mxu0 %vm281_vm0, %v33_v25  ;;  %v228_v25 = vld [vmem:[%s6442_s0 + $0x6b0] sm:$0xff] }
  0x31   :  { %4153 = vmatprep.mubr.msk.f32.mxu0 %vm281_vm0, %v34_v26  ;;  %4430 = vmatmul.mubr.msk.f32.gmra.mrb[18].mxu1 %vm281_vm0, %v219_v6  ;;  %v229_v26 = vld [vmem:[%s6442_s0 + $0x6b8] sm:$0xff]  ;;  %v251_v6 = vld [vmem:[%s6442_s0 + $0x768] sm:$0xff] }
  0x32   :  { %4432 = vmatprep.mubr.msk.f32.mxu1 %vm281_vm0, %v220_v9  ;;  %v252_v9 = vld [vmem:[%s6442_s0 + $0x770] sm:$0xff] }
  0x34   :  { %4154 = vmatmul.mubr.msk.f32.gmra.mrb[20].mxu0 %vm281_vm0, %v35_v27  ;;  %v69_v27 = vld [vmem:[%s6442_s0 + $0x1b8] sm:$0xff] }
  0x35   :  { %4156 = vmatprep.mubr.msk.f32.mxu0 %vm281_vm0, %v36_v28  ;;  %4433 = vmatmul.mubr.msk.f32.gmra.mrb[20].mxu1 %vm281_vm0, %v221_v10  ;;  %v70_v28 = vld [vmem:[%s6442_s0 + $0x1c0] sm:$0xff]  ;;  %v253_v10 = vld [vmem:[%s6442_s0 + $0x778] sm:$0xff] }
  0x36   :  { %4435 = vmatprep.mubr.msk.f32.mxu1 %vm281_vm0, %v222_v13  ;;  %v254_v13 = vld [vmem:[%s6442_s0 + $0x780] sm:$0xff] }
  0x38   :  { %4157 = vmatmul.mubr.msk.f32.gmra.mrb[22].mxu0 %vm281_vm0, %v37_v29  ;;  %v230_v29 = vld [vmem:[%s6442_s0 + $0x6c0] sm:$0xff] }
  0x39   :  { %4159 = vmatprep.mubr.msk.f32.mxu0 %vm281_vm0, %v38_v30  ;;  %4436 = vmatmul.mubr.msk.f32.gmra.mrb[22].mxu1 %vm281_vm0, %v223_v14  ;;  %v231_v30 = vld [vmem:[%s6442_s0 + $0x6c8] sm:$0xff] }
  0x3a   :  { %4438 = vmatprep.mubr.msk.f32.mxu1 %vm281_vm0, %v224_v17  ;;  %v255_v14 = vld [vmem:[%s6442_s0 + $0x788] sm:$0xff]  ;;  %v256_v17 = vld [vmem:[%s6442_s0 + $0x790] sm:$0xff] }
  0x3c   :  { %4160 = vmatmul.mubr.msk.f32.gmra.mrb[24].mxu0 %vm281_vm0, %v39_v31  ;;  %v71_v31 = vld [vmem:[%s6442_s0 + $0x1c8] sm:$0xff] }
  0x3d   :  { %4162 = vmatprep.mubr.msk.f32.mxu0 %vm281_vm0, %v40_v33  ;;  %4439 = vmatmul.mubr.msk.f32.gmra.mrb[24].mxu1 %vm281_vm0, %v225_v18  ;;  %v232_v33 = vld [vmem:[%s6442_s0 + $0x6d0] sm:$0xff]  ;;  %v257_v18 = vld [vmem:[%s6442_s0 + $0x798] sm:$0xff] }
  0x3e   :  { %4441 = vmatprep.mubr.msk.f32.mxu1 %vm281_vm0, %v226_v21  ;;  %v258_v21 = vld [vmem:[%s6442_s0 + $0x7a0] sm:$0xff] }
  0x40   :  { %4163 = vmatmul.mubr.msk.f32.gmra.mrb[26].mxu0 %vm281_vm0, %v41_v35  ;;  %v73_v35 = vld [vmem:[%s6442_s0 + $0x1d8] sm:$0xff] }
  0x41   :  { %4165 = vmatprep.mubr.msk.f32.mxu0 %vm281_vm0, %v42_v37  ;;  %4442 = vmatmul.mubr.msk.f32.gmra.mrb[26].mxu1 %vm281_vm0, %v227_v22  ;;  %v234_v37 = vld [vmem:[%s6442_s0 + $0x6e0] sm:$0xff]  ;;  %v259_v22 = vld [vmem:[%s6442_s0 + $0x7a8] sm:$0xff] }
  0x42   :  { %4444 = vmatprep.mubr.msk.f32.mxu1 %vm281_vm0, %v228_v25  ;;  %v260_v25 = vld [vmem:[%s6442_s0 + $0x7b0] sm:$0xff] }
  0x44   :  { %4166 = vmatmul.mubr.msk.f32.gmra.mrb[28].mxu0 %vm281_vm0, %v43_v39  ;;  %v75_v39 = vld [vmem:[%s6442_s0 + $0x1e8] sm:$0xff] }
  0x45   :  { %4168 = vmatprep.mubr.msk.f32.mxu0 %vm281_vm0, %v44_v41  ;;  %4445 = vmatmul.mubr.msk.f32.gmra.mrb[28].mxu1 %vm281_vm0, %v229_v26  ;;  %v236_v41 = vld [vmem:[%s6442_s0 + $0x6f0] sm:$0xff]  ;;  %v261_v26 = vld [vmem:[%s6442_s0 + $0x7b8] sm:$0xff] }
  0x46   :  { %4447 = vmatprep.mubr.msk.f32.mxu1 %vm281_vm0, %v230_v29  ;;  %v262_v29 = vld [vmem:[%s6442_s0 + $0x7c0] sm:$0xff] }
  0x48   :  { %4169 = vmatmul.mubr.msk.f32.gmra.mrb[30].mxu0 %vm281_vm0, %v45_v43  ;;  %v77_v43 = vld [vmem:[%s6442_s0 + $0x1f8] sm:$0xff] }
  0x49   :  { %4171 = vmatprep.mubr.msk.f32.mxu0 %vm281_vm0, %v46_v45  ;;  %4448 = vmatmul.mubr.msk.f32.gmra.mrb[30].mxu1 %vm281_vm0, %v231_v30  ;;  %v238_v45 = vld [vmem:[%s6442_s0 + $0x700] sm:$0xff]  ;;  %v263_v30 = vld [vmem:[%s6442_s0 + $0x7c8] sm:$0xff] }
  0x4a   :  { %4450 = vmatprep.mubr.msk.f32.mxu1 %vm281_vm0, %v232_v33  ;;  %v264_v33 = vld [vmem:[%s6442_s0 + $0x7d0] sm:$0xff] }
  0x4c   :  { %4172 = vmatmul.mubr.msk.f32.gmra.mrb[32].mxu0 %vm281_vm0, %v47_v47  ;;  %v79_v47 = vld [vmem:[%s6442_s0 + $0x208] sm:$0xff] }
  0x4d   :  { %4174 = vmatprep.mubr.msk.f32.mxu0 %vm281_vm0, %v48_v49  ;;  %4451 = vmatmul.mubr.msk.f32.gmra.mrb[32].mxu1 %vm281_vm0, %v233_v34  ;;  %v240_v49 = vld [vmem:[%s6442_s0 + $0x710] sm:$0xff]  ;;  %v265_v34 = vld [vmem:[%s6442_s0 + $0x7d8] sm:$0xff] }
  0x4e   :  { %4453 = vmatprep.mubr.msk.f32.mxu1 %vm281_vm0, %v234_v37  ;;  %v106_v37 = vld [vmem:[%s6442_s0 + $0x2e0] sm:$0xff] }
  0x50   :  { %4175 = vmatmul.mubr.msk.f32.gmra.mrb[34].mxu0 %vm281_vm0, %v49_v51  ;;  %v81_v51 = vld [vmem:[%s6442_s0 + $0x218] sm:$0xff] }
  0x51   :  { %4177 = vmatprep.mubr.msk.f32.mxu0 %vm281_vm0, %v50_v53  ;;  %4454 = vmatmul.mubr.msk.f32.gmra.mrb[34].mxu1 %vm281_vm0, %v235_v38  ;;  %v242_v53 = vld [vmem:[%s6442_s0 + $0x720] sm:$0xff] }
  0x52   :  { %4456 = vmatprep.mubr.msk.f32.mxu1 %vm281_vm0, %v236_v41  ;;  %v266_v38 = vld [vmem:[%s6442_s0 + $0x7e0] sm:$0xff]  ;;  %v107_v41 = vld [vmem:[%s6442_s0 + $0x2e8] sm:$0xff] }
  0x54   :  { %4178 = vmatmul.mubr.msk.f32.gmra.mrb[36].mxu0 %vm281_vm0, %v51_v55  ;;  %v83_v55 = vld [vmem:[%s6442_s0 + $0x228] sm:$0xff] }
  0x55   :  { %4180 = vmatprep.mubr.msk.f32.mxu0 %vm281_vm0, %v52_v57  ;;  %4457 = vmatmul.mubr.msk.f32.gmra.mrb[36].mxu1 %vm281_vm0, %v237_v42  ;;  %v244_v57 = vld [vmem:[%s6442_s0 + $0x730] sm:$0xff] }
  0x56   :  { %4459 = vmatprep.mubr.msk.f32.mxu1 %vm281_vm0, %v238_v45  ;;  %v268_v45 = vld [vmem:[%s6442_s0 + $0x7f0] sm:$0xff] }
  0x58   :  { %4181 = vmatmul.mubr.msk.f32.gmra.mrb[38].mxu0 %vm281_vm0, %v53_v59  ;;  %v85_v59 = vld [vmem:[%s6442_s0 + $0x238] sm:$0xff] }
  0x59   :  { %4183 = vmatprep.mubr.msk.f32.mxu0 %vm281_vm0, %v54_v61  ;;  %4460 = vmatmul.mubr.msk.f32.gmra.mrb[38].mxu1 %vm281_vm0, %v239_v46  ;;  %v246_v61 = vld [vmem:[%s6442_s0 + $0x740] sm:$0xff]  ;;  %v269_v46 = vld [vmem:[%s6442_s0 + $0x7f8] sm:$0xff] }
  0x5a   :  { %4462 = vmatprep.mubr.msk.f32.mxu1 %vm281_vm0, %v240_v49  ;;  %v109_v49 = vld [vmem:[%s6442_s0 + $0x2f8] sm:$0xff] }
  0x5c   :  { %4184 = vmatmul.mubr.msk.f32.gmra.mrb[40].mxu0 %vm281_vm0, %v55_v63  ;;  %v87_v63 = vld [vmem:[%s6442_s0 + $0x248] sm:$0xff] }
  0x5d   :  { %4186 = vmatprep.mubr.msk.f32.mxu0 %vm281_vm0, %v56_v1  ;;  %4463 = vmatmul.mubr.msk.f32.gmra.mrb[40].mxu1 %vm281_vm0, %v241_v50  ;;  %v248_v1 = vld [vmem:[%s6442_s0 + $0x750] sm:$0xff]  ;;  %v110_v50 = vld [vmem:[%s6442_s0 + $0x300] sm:$0xff] }
  0x5e   :  { %4465 = vmatprep.mubr.msk.f32.mxu1 %vm281_vm0, %v242_v53  ;;  %v112_v53 = vld [vmem:[%s6442_s0 + $0x310] sm:$0xff] }
  0x60   :  { %4187 = vmatmul.mubr.msk.f32.gmra.mrb[42].mxu0 %vm281_vm0, %v57_v3  ;;  %v89_v3 = vld [vmem:[%s6442_s0 + $0x258] sm:$0xff] }
  0x61   :  { %4189 = vmatprep.mubr.msk.f32.mxu0 %vm281_vm0, %v58_v4  ;;  %4466 = vmatmul.mubr.msk.f32.gmra.mrb[42].mxu1 %vm281_vm0, %v243_v54  ;;  %v90_v4 = vld [vmem:[%s6442_s0 + $0x260] sm:$0xff]  ;;  %v113_v54 = vld [vmem:[%s6442_s0 + $0x318] sm:$0xff] }
  0x62   :  { %4468 = vmatprep.mubr.msk.f32.mxu1 %vm281_vm0, %v244_v57  ;;  %v116_v57 = vld [vmem:[%s6442_s0 + $0x330] sm:$0xff] }
  0x64   :  { %4190 = vmatmul.mubr.msk.f32.gmra.mrb[44].mxu0 %vm281_vm0, %v59_v7  ;;  %v91_v7 = vld [vmem:[%s6442_s0 + $0x268] sm:$0xff] }
  0x65   :  { %4192 = vmatprep.mubr.msk.f32.mxu0 %vm281_vm0, %v60_v8  ;;  %4469 = vmatmul.mubr.msk.f32.gmra.mrb[44].mxu1 %vm281_vm0, %v245_v58  ;;  %v92_v8 = vld [vmem:[%s6442_s0 + $0x270] sm:$0xff]  ;;  %v117_v58 = vld [vmem:[%s6442_s0 + $0x338] sm:$0xff] }
  0x66   :  { %4471 = vmatprep.mubr.msk.f32.mxu1 %vm281_vm0, %v246_v61  ;;  %v120_v61 = vld [vmem:[%s6442_s0 + $0x350] sm:$0xff] }
  0x68   :  { %4193 = vmatmul.mubr.msk.f32.gmra.mrb[46].mxu0 %vm281_vm0, %v61_v11  ;;  %v93_v11 = vld [vmem:[%s6442_s0 + $0x278] sm:$0xff] }
  0x69   :  { %4195 = vmatprep.mubr.msk.f32.mxu0 %vm281_vm0, %v62_v12  ;;  %4472 = vmatmul.mubr.msk.f32.gmra.mrb[46].mxu1 %vm281_vm0, %v247_v62  ;;  %v94_v12 = vld [vmem:[%s6442_s0 + $0x280] sm:$0xff] }
  0x6a   :  { %4474 = vmatprep.mubr.msk.f32.mxu1 %vm281_vm0, %v248_v1  ;;  %v5532_v62 = vld [vmem:[%s6443_s2] ss:$0 sm:$0xff] }
  0x6c   :  { %4196 = vmatmul.mubr.msk.f32.gmra.mrb[48].mxu0 %vm281_vm0, %v63_v15  ;;  %v95_v15 = vld [vmem:[%s6442_s0 + $0x288] sm:$0xff] }
  0x6d   :  { %4198 = vmatprep.mubr.msk.f32.mxu0 %vm281_vm0, %v64_v16  ;;  %4475 = vmatmul.mubr.msk.f32.gmra.mrb[48].mxu1 %vm281_vm0, %v249_v2  ;;  %v96_v16 = vld [vmem:[%s6442_s0 + $0x290] sm:$0xff] }
  0x6e   :  { %4477 = vmatprep.mubr.msk.f32.mxu1 %vm281_vm0, %v250_v5  ;;  %v123_v5 = vld [vmem:[%s6442_s0 + $0x368] sm:$0xff] }
  0x70   :  { %4199 = vmatmul.mubr.msk.f32.gmra.mrb[50].mxu0 %vm281_vm0, %v65_v19  ;;  %v97_v19 = vld [vmem:[%s6442_s0 + $0x298] sm:$0xff] }
  0x71   :  { %4201 = vmatprep.mubr.msk.f32.mxu0 %vm281_vm0, %v66_v20  ;;  %4478 = vmatmul.mubr.msk.f32.gmra.mrb[50].mxu1 %vm281_vm0, %v251_v6  ;;  %v98_v20 = vld [vmem:[%s6442_s0 + $0x2a0] sm:$0xff] }
  0x72   :  { %4480 = vmatprep.mubr.msk.f32.mxu1 %vm281_vm0, %v252_v9 }
  0x74   :  { %4202 = vmatmul.mubr.msk.f32.gmra.mrb[52].mxu0 %vm281_vm0, %v67_v23  ;;  %v99_v23 = vld [vmem:[%s6442_s0 + $0x2a8] sm:$0xff] }
  0x75   :  { %4204 = vmatprep.mubr.msk.f32.mxu0 %vm281_vm0, %v68_v24  ;;  %4481 = vmatmul.mubr.msk.f32.gmra.mrb[52].mxu1 %vm281_vm0, %v253_v10  ;;  %v100_v24 = vld [vmem:[%s6442_s0 + $0x2b0] sm:$0xff] }
  0x76   :  { %4483 = vmatprep.mubr.msk.f32.mxu1 %vm281_vm0, %v254_v13 }
  0x78   :  { %4205 = vmatmul.mubr.msk.f32.gmra.mrb[54].mxu0 %vm281_vm0, %v69_v27  ;;  %v101_v27 = vld [vmem:[%s6442_s0 + $0x2b8] sm:$0xff] }
  0x79   :  { %4207 = vmatprep.mubr.msk.f32.mxu0 %vm281_vm0, %v70_v28  ;;  %4484 = vmatmul.mubr.msk.f32.gmra.mrb[54].mxu1 %vm281_vm0, %v255_v14  ;;  %v102_v28 = vld [vmem:[%s6442_s0 + $0x2c0] sm:$0xff]  ;;  %v125_v14 = vld [vmem:[%s6442_s0 + $0x378] sm:$0xff] }
  0x7a   :  { %4486 = vmatprep.mubr.msk.f32.mxu1 %vm281_vm0, %v256_v17 }
  0x7c   :  { %4208 = vmatmul.mubr.msk.f32.gmra.mrb[56].mxu0 %vm281_vm0, %v71_v31  ;;  %v103_v31 = vld [vmem:[%s6442_s0 + $0x2c8] sm:$0xff] }
  0x7d   :  { %4210 = vmatprep.mubr.msk.f32.mxu0 %vm281_vm0, %v72_v32  ;;  %4487 = vmatmul.mubr.msk.f32.gmra.mrb[56].mxu1 %vm281_vm0, %v257_v18  ;;  %v104_v32 = vld [vmem:[%s6442_s0 + $0x2d0] sm:$0xff] }
  0x7e   :  { %4489 = vmatprep.mubr.msk.f32.mxu1 %vm281_vm0, %v258_v21 }
  0x80   :  { %4211 = vmatmul.mubr.msk.f32.gmra.mrb[58].mxu0 %vm281_vm0, %v73_v35  ;;  %v105_v35 = vld [vmem:[%s6442_s0 + $0x2d8] sm:$0xff] }
  0x81   :  { %4213 = vmatprep.mubr.msk.f32.mxu0 %vm281_vm0, %v74_v36  ;;  %4490 = vmatmul.mubr.msk.f32.gmra.mrb[58].mxu1 %vm281_vm0, %v259_v22  ;;  %v2651_v36 = vlaneseq }
  0x82   :  { %4492 = vmatprep.mubr.msk.f32.mxu1 %vm281_vm0, %v260_v25  ;;  %v128_v25 = vld [vmem:[%s6442_s0 + $0x390] sm:$0xff] }
  0x83   :  { %v5458_v42 = vand.u32 127, %v2651_v36 }
  0x84   :  { %4214 = vmatmul.mubr.msk.f32.gmra.mrb[60].mxu0 %vm281_vm0, %v75_v39  ;;  %v267_v39 = vld [vmem:[%s6442_s0 + $0x7e8] sm:$0xff] }
  0x85   :  { %4216 = vmatprep.mubr.msk.f32.mxu0 %vm281_vm0, %v76_v40  ;;  %4493 = vmatmul.mubr.msk.f32.gmra.mrb[60].mxu1 %vm281_vm0, %v261_v26  ;;  %v2669_v40 = vshrl.u32 %v2651_v36, 7 }
  0x86   :  { %4495 = vmatprep.mubr.msk.f32.mxu1 %vm281_vm0, %v262_v29 }
  0x88   :  { %4217 = vmatmul.mubr.msk.f32.gmra.mrb[62].mxu0 %vm281_vm0, %v77_v43  ;;  %v5460_v43 = vmul.u32 256, %v2669_v40 }
  0x89   :  { %4219 = vmatprep.mubr.msk.f32.mxu0 %vm281_vm0, %v78_v44  ;;  %4496 = vmatmul.mubr.msk.f32.gmra.mrb[62].mxu1 %vm281_vm0, %v263_v30  ;;  %v108_v44 = vld [vmem:[%s6442_s0 + $0x2f0] sm:$0xff] }
  0x8a   :  { %4498 = vmatprep.mubr.msk.f32.mxu1 %vm281_vm0, %v264_v33  ;;  %vm2671_vm4 = vcmp.ge.s32.totalorder %v5458_v42, %v5460_v43 }
  0x8c   :  { %4220 = vmatmul.mubr.msk.f32.gmra.mrb[64].mxu0 %vm281_vm0, %v79_v47  ;;  %v2653_v47 = vadd.s32 128, %v5458_v42 }
  0x8d   :  { %4222 = vmatprep.mubr.msk.f32.mxu0 %vm281_vm0, %v80_v48  ;;  %4499 = vmatmul.mubr.msk.f32.gmra.mrb[64].mxu1 %vm281_vm0, %v265_v34  ;;  %v5474_v48 = vadd.s32 256, %v5460_v43  ;;  %v130_v34 = vld [vmem:[%s6442_s0 + $0x3a0] sm:$0xff] }
  0x8e   :  { %4501 = vmatprep.mubr.msk.f32.mxu1 %vm281_vm0, %v266_v38  ;;  %vm2672_vm1 = vcmp.ge.s32.totalorder %v2653_v47, %v5460_v43 }
  0x8f   :  { %vm2689_vm2 = vcmp.lt.s32.totalorder %v2653_v47, %v5474_v48  ;;  %vm2688_vm5 = vcmp.lt.s32.totalorder %v5458_v42, %v5474_v48 }
  0x90   :  { %4223 = vmatmul.mubr.msk.f32.gmra.mrb[66].mxu0 %vm281_vm0, %v81_v51  ;;  %vm2705_vm3 = vmand %vm2672_vm1, %vm2689_vm2  ;;  %v6445_v51 = vmov 0.00390625  }
  0x91   :  { %4225 = vmatprep.mubr.msk.f32.mxu0 %vm281_vm0, %v82_v52  ;;  %4502 = vmatmul.mubr.msk.f32.gmra.mrb[66].mxu1 %vm281_vm0, %v267_v39  ;;  %v111_v52 = vld [vmem:[%s6442_s0 + $0x308] sm:$0xff]  ;;  %vm2704_vm8 = vmand %vm2671_vm4, %vm2688_vm5 }
  0x92   :  { %4504 = vmatprep.mubr.msk.f32.mxu1 %vm281_vm0, %v268_v45  ;;  %v132_v45 = vld [vmem:[%s6442_s0 + $0x3b0] sm:$0xff] }
  0x94   :  { %4226 = vmatmul.mubr.msk.f32.gmra.mrb[68].mxu0 %vm281_vm0, %v83_v55  ;;  %v114_v55 = vld [vmem:[%s6442_s0 + $0x320] sm:$0xff] }
  0x95   :  { %4228 = vmatprep.mubr.msk.f32.mxu0 %vm281_vm0, %v84_v56  ;;  %4505 = vmatmul.mubr.msk.f32.gmra.mrb[68].mxu1 %vm281_vm0, %v269_v46  ;;  %v115_v56 = vld [vmem:[%s6442_s0 + $0x328] sm:$0xff] }
  0x96   :  { %3559 = vmatprep.mubr.msk.f32.mxu1 %vm2705_vm3, %v6445_v51 }
  0x98   :  { %4229 = vmatmul.mubr.msk.f32.gmra.mrb[70].mxu0 %vm281_vm0, %v85_v59  ;;  %v118_v59 = vld [vmem:[%s6442_s0 + $0x340] sm:$0xff] }
  0x99   :  { %4231 = vmatprep.mubr.msk.f32.mxu0 %vm281_vm0, %v86_v60  ;;  %v119_v60 = vld [vmem:[%s6442_s0 + $0x348] sm:$0xff] }
  0x9c   :  { %4232 = vmatmul.mubr.msk.f32.gmra.mrb[72].mxu0 %vm281_vm0, %v87_v63  ;;  %v121_v63 = vld [vmem:[%s6442_s0 + $0x358] sm:$0xff] }
  0x9d   :  { %4234 = vmatprep.mubr.msk.f32.mxu0 %vm281_vm0, %v88_v0  ;;  %v122_v0 = vld [vmem:[%s6442_s0 + $0x360] sm:$0xff] }
  0xa0   :  { %4235 = vmatmul.mubr.msk.f32.gmra.mrb[74].mxu0 %vm281_vm0, %v89_v3 }
  0xa1   :  { %4237 = vmatprep.mubr.msk.f32.mxu0 %vm281_vm0, %v90_v4 }
  0xa4   :  { %4238 = vmatmul.mubr.msk.f32.gmra.mrb[76].mxu0 %vm281_vm0, %v91_v7  ;;  %v124_v7 = vld [vmem:[%s6442_s0 + $0x370] sm:$0xff] }
  0xa5   :  { %4240 = vmatprep.mubr.msk.f32.mxu0 %vm281_vm0, %v92_v8 }
  0xa8   :  { %4241 = vmatmul.mubr.msk.f32.gmra.mrb[78].mxu0 %vm281_vm0, %v93_v11 }
  0xa9   :  { %4243 = vmatprep.mubr.msk.f32.mxu0 %vm281_vm0, %v94_v12 }
  0xac   :  { %4244 = vmatmul.mubr.msk.f32.gmra.mrb[80].mxu0 %vm281_vm0, %v95_v15 }
  0xad   :  { %4246 = vmatprep.mubr.msk.f32.mxu0 %vm281_vm0, %v96_v16  ;;  %v126_v16 = vld [vmem:[%s6442_s0 + $0x380] sm:$0xff] }
  0xb0   :  { %4247 = vmatmul.mubr.msk.f32.gmra.mrb[82].mxu0 %vm281_vm0, %v97_v19 }
  0xb1   :  { %4249 = vmatprep.mubr.msk.f32.mxu0 %vm281_vm0, %v98_v20 }
  0xb4   :  { %4250 = vmatmul.mubr.msk.f32.gmra.mrb[84].mxu0 %vm281_vm0, %v99_v23  ;;  %v127_v23 = vld [vmem:[%s6442_s0 + $0x388] sm:$0xff] }
  0xb5   :  { %4252 = vmatprep.mubr.msk.f32.mxu0 %vm281_vm0, %v100_v24 }
  0xb8   :  { %4253 = vmatmul.mubr.msk.f32.gmra.mrb[86].mxu0 %vm281_vm0, %v101_v27 }
  0xb9   :  { %4255 = vmatprep.mubr.msk.f32.mxu0 %vm281_vm0, %v102_v28 }
  0xbc   :  { %4256 = vmatmul.mubr.msk.f32.gmra.mrb[88].mxu0 %vm281_vm0, %v103_v31 }
  0xbd   :  { %4258 = vmatprep.mubr.msk.f32.mxu0 %vm281_vm0, %v104_v32  ;;  %v129_v32 = vld [vmem:[%s6442_s0 + $0x398] sm:$0xff] }
  0xc0   :  { %4259 = vmatmul.mubr.msk.f32.gmra.mrb[90].mxu0 %vm281_vm0, %v105_v35 }
  0xc1   :  { %4261 = vmatprep.mubr.msk.f32.mxu0 %vm281_vm0, %v106_v37 }
  0xc4   :  { %4262 = vmatmul.mubr.msk.f32.gmra.mrb[92].mxu0 %vm281_vm0, %v107_v41  ;;  %v131_v41 = vld [vmem:[%s6442_s0 + $0x3a8] sm:$0xff] }
  0xc5   :  { %4264 = vmatprep.mubr.msk.f32.mxu0 %vm281_vm0, %v108_v44 }
  0xc8   :  { %4265 = vmatmul.mubr.msk.f32.gmra.mrb[94].mxu0 %vm281_vm0, %v109_v49 }
  0xc9   :  { %4267 = vmatprep.mubr.msk.f32.mxu0 %vm281_vm0, %v110_v50 }
  0xcc   :  { %4268 = vmatmul.mubr.msk.f32.gmra.mrb[96].mxu0 %vm281_vm0, %v111_v52 }
  0xcd   :  { %4270 = vmatprep.mubr.msk.f32.mxu0 %vm281_vm0, %v112_v53 }
  0xd0   :  { %4271 = vmatmul.mubr.msk.f32.gmra.mrb[98].mxu0 %vm281_vm0, %v113_v54  ;;  %v133_v54 = vld [vmem:[%s6442_s0 + $0x3b8] sm:$0xff] }
  0xd1   :  { %4273 = vmatprep.mubr.msk.f32.mxu0 %vm281_vm0, %v114_v55 }
  0xd4   :  { %4274 = vmatmul.mubr.msk.f32.gmra.mrb[100].mxu0 %vm281_vm0, %v115_v56  ;;  %v134_v56 = vld [vmem:[%s6442_s0 + $0x3c0] sm:$0xff] }
  0xd5   :  { %4276 = vmatprep.mubr.msk.f32.mxu0 %vm281_vm0, %v116_v57 }
  0xd8   :  { %4277 = vmatmul.mubr.msk.f32.gmra.mrb[102].mxu0 %vm281_vm0, %v117_v58 }
  0xd9   :  { %4279 = vmatprep.mubr.msk.f32.mxu0 %vm281_vm0, %v118_v59 }
  0xdc   :  { %4280 = vmatmul.mubr.msk.f32.gmra.mrb[104].mxu0 %vm281_vm0, %v119_v60 }
  0xdd   :  { %4282 = vmatprep.mubr.msk.f32.mxu0 %vm281_vm0, %v120_v61 }
  0xdf   :  { %v4125_v1 = vpop.f32.mrb[0].mxu0 }
  0xe0   :  { %v1122_v2 = vadd.f32 %v4125_v1, %v5532_v62  ;;  %v1116_v3 = vpop.f32.mrb[1].mxu0  ;;  %4283 = vmatmul.mubr.msk.f32.gmra.mrb[106].mxu0 %vm281_vm0, %v121_v63 }
  0xe1   :  { %v1117_v4 = vadd.f32 %v5532_v62, %v1116_v3  ;;  %4285 = vmatprep.mubr.msk.f32.mxu0 %vm281_vm0, %v122_v0  ;;  %v135_v0 = vld [vmem:[%s6442_s0 + $0x3c8] sm:$0xff] }
  0xe2   :  { %v2396_v6 = vmax.f32 %v1122_v2, 0.0  ;;  %v136_v2 = vld [vmem:[%s6442_s0 + $0x3d0] sm:$0xff] }
  0xe3   :  { %v2395_v8 = vmax.f32 %v1117_v4, 0.0  ;;  %v4128_v9 = vpop.f32.mrb[2].mxu0 }
  0xe4   :  { %v1132_v10 = vadd.f32 %v4128_v9, %v5532_v62  ;;  %v1126_v11 = vpop.f32.mrb[3].mxu0  ;;  %4286 = vmatmul.mubr.msk.f32.gmra.mrb[108].mxu0 %vm281_vm0, %v123_v5  ;;  %v137_v9 = vld [vmem:[%s6442_s0 + $0x3d8] sm:$0xff] }
  0xe5   :  { %v5553_v12 = vpack.c.bf16 %v2396_v6, %v2395_v8  ;;  %v1127_v13 = vadd.f32 %v5532_v62, %v1126_v11  ;;  %4288 = vmatprep.mubr.msk.f32.mxu0 %vm281_vm0, %v124_v7  ;;  %v138_v11 = vld [vmem:[%s6442_s0 + $0x3e0] sm:$0xff] }
  0xe6   :  { %v2398_v15 = vmax.f32 %v1132_v10, 0.0 }
  0xe7   :  { %v2397_v17 = vmax.f32 %v1127_v13, 0.0  ;;  %v4131_v18 = vpop.f32.mrb[4].mxu0 }
  0xe8   :  { %v1142_v19 = vadd.f32 %v4131_v18, %v5532_v62  ;;  %v1136_v20 = vpop.f32.mrb[5].mxu0  ;;  %4289 = vmatmul.mubr.msk.f32.gmra.mrb[110].mxu0 %vm281_vm0, %v125_v14 }
  0xe9   :  { %v5565_v21 = vpack.c.bf16 %v2398_v15, %v2397_v17  ;;  %v1137_v22 = vadd.f32 %v5532_v62, %v1136_v20  ;;  %4291 = vmatprep.mubr.msk.f32.mxu0 %vm281_vm0, %v126_v16 }
  0xea   :  { %v2400_v24 = vmax.f32 %v1142_v19, 0.0  ;;  %v139_v19 = vld [vmem:[%s6442_s0 + $0x3e8] sm:$0xff] }
  0xeb   :  { %v2399_v26 = vmax.f32 %v1137_v22, 0.0  ;;  %v4134_v27 = vpop.f32.mrb[6].mxu0  ;;  %v140_v22 = vld [vmem:[%s6442_s0 + $0x3f0] sm:$0xff] }
  0xec   :  { %v1152_v28 = vadd.f32 %v4134_v27, %v5532_v62  ;;  %v1146_v29 = vpop.f32.mrb[7].mxu0  ;;  %4292 = vmatmul.mubr.msk.f32.gmra.mrb[112].mxu0 %vm281_vm0, %v127_v23 }
  0xed   :  { %v5577_v30 = vpack.c.bf16 %v2400_v24, %v2399_v26  ;;  %v1147_v31 = vadd.f32 %v5532_v62, %v1146_v29  ;;  %4294 = vmatprep.mubr.msk.f32.mxu0 %vm281_vm0, %v128_v25  ;;  %v141_v29 = vld [vmem:[%s6442_s0 + $0x3f8] sm:$0xff] }
  0xee   :  { %v2402_v33 = vmax.f32 %v1152_v28, 0.0 }
  0xef   :  { %v2401_v35 = vmax.f32 %v1147_v31, 0.0  ;;  %v4137_v36 = vpop.f32.mrb[8].mxu0 }
  0xf0   :  { %v1162_v37 = vadd.f32 %v4137_v36, %v5532_v62  ;;  %v1156_v38 = vpop.f32.mrb[9].mxu0  ;;  %4295 = vmatmul.mubr.msk.f32.gmra.mrb[114].mxu0 %vm281_vm0, %v129_v32  ;;  %v142_v32 = vld [vmem:[%s6442_s0 + $0x400] sm:$0xff] }
  0xf1   :  { %v5589_v39 = vpack.c.bf16 %v2402_v33, %v2401_v35  ;;  %v1157_v40 = vadd.f32 %v5532_v62, %v1156_v38  ;;  %4297 = vmatprep.mubr.msk.f32.mxu0 %vm281_vm0, %v130_v34 }
  0xf2   :  { %v2404_v44 = vmax.f32 %v1162_v37, 0.0 }
  0xf3   :  { %v2403_v46 = vmax.f32 %v1157_v40, 0.0  ;;  %v4140_v47 = vpop.f32.mrb[10].mxu0  ;;  %v143_v40 = vld [vmem:[%s6442_s0 + $0x408] sm:$0xff] }
  0xf4   :  { %v1172_v49 = vadd.f32 %v4140_v47, %v5532_v62  ;;  %v1166_v50 = vpop.f32.mrb[11].mxu0  ;;  %4298 = vmatmul.mubr.msk.f32.gmra.mrb[116].mxu0 %vm281_vm0, %v131_v41 }
  0xf5   :  { %v5601_v52 = vpack.c.bf16 %v2404_v44, %v2403_v46  ;;  %v1167_v53 = vadd.f32 %v5532_v62, %v1166_v50  ;;  %4300 = vmatprep.mubr.msk.f32.mxu0 %vm281_vm0, %v132_v45  ;;  %v144_v44 = vld [vmem:[%s6442_s0 + $0x410] sm:$0xff] }
  0xf6   :  { %v2406_v55 = vmax.f32 %v1172_v49, 0.0 }
  0xf7   :  { %v2405_v57 = vmax.f32 %v1167_v53, 0.0  ;;  %v4143_v58 = vpop.f32.mrb[12].mxu0  ;;  %v145_v53 = vld [vmem:[%s6442_s0 + $0x418] sm:$0xff] }
  0xf8   :  { %v1182_v59 = vadd.f32 %v4143_v58, %v5532_v62  ;;  %v1176_v60 = vpop.f32.mrb[13].mxu0  ;;  %4301 = vmatmul.mubr.msk.f32.gmra.mrb[118].mxu0 %vm281_vm0, %v133_v54 }
  0xf9   :  { %v5613_v61 = vpack.c.bf16 %v2406_v55, %v2405_v57  ;;  %v1177_v63 = vadd.f32 %v5532_v62, %v1176_v60  ;;  %4303 = vmatprep.mubr.msk.f32.mxu0 %vm281_vm0, %v134_v56  ;;  %v146_v55 = vld [vmem:[%s6442_s0 + $0x420] sm:$0xff] }
  0xfa   :  { %v2408_v1 = vmax.f32 %v1182_v59, 0.0 }
  0xfb   :  { %v2407_v3 = vmax.f32 %v1177_v63, 0.0  ;;  %v4146_v4 = vpop.f32.mrb[14].mxu0  ;;  %v147_v63 = vld [vmem:[%s6442_s0 + $0x428] sm:$0xff] }
  0xfc   :  { %v1192_v5 = vadd.f32 %v4146_v4, %v5532_v62  ;;  %v1186_v6 = vpop.f32.mrb[15].mxu0  ;;  %4304 = vmatmul.mubr.msk.f32.gmra.mrb[120].mxu0 %vm281_vm0, %v135_v0 }
  0xfd   :  { %v5625_v7 = vpack.c.bf16 %v2408_v1, %v2407_v3  ;;  %v1187_v8 = vadd.f32 %v5532_v62, %v1186_v6  ;;  %4306 = vmatprep.mubr.msk.f32.mxu0 %vm281_vm0, %v136_v2  ;;  %v148_v1 = vld [vmem:[%s6442_s0 + $0x430] sm:$0xff] }
  0xfe   :  { %v2410_v10 = vmax.f32 %v1192_v5, 0.0 }
  0xff   :  { %v2409_v13 = vmax.f32 %v1187_v8, 0.0  ;;  %v4149_v14 = vpop.f32.mrb[16].mxu0  ;;  %v149_v8 = vld [vmem:[%s6442_s0 + $0x438] sm:$0xff] }
 0x100   :  { %v1202_v15 = vadd.f32 %v4149_v14, %v5532_v62  ;;  %v1196_v16 = vpop.f32.mrb[17].mxu0  ;;  %4307 = vmatmul.mubr.msk.f32.gmra.mrb[122].mxu0 %vm281_vm0, %v137_v9 }
 0x101   :  { %v5637_v17 = vpack.c.bf16 %v2410_v10, %v2409_v13  ;;  %v1197_v18 = vadd.f32 %v5532_v62, %v1196_v16  ;;  %4309 = vmatprep.mubr.msk.f32.mxu0 %vm281_vm0, %v138_v11  ;;  %v150_v10 = vld [vmem:[%s6442_s0 + $0x440] sm:$0xff] }
 0x102   :  { %v2412_v20 = vmax.f32 %v1202_v15, 0.0 }
 0x103   :  { %v2411_v23 = vmax.f32 %v1197_v18, 0.0  ;;  %v4152_v24 = vpop.f32.mrb[18].mxu0  ;;  %v151_v18 = vld [vmem:[%s6442_s0 + $0x448] sm:$0xff] }
 0x104   :  { %v1212_v25 = vadd.f32 %v4152_v24, %v5532_v62  ;;  %v1206_v26 = vpop.f32.mrb[19].mxu0  ;;  %4310 = vmatmul.mubr.msk.f32.gmra.mrb[124].mxu0 %vm281_vm0, %v139_v19 }
 0x105   :  { %v4515_v27 = vpack.c.bf16 %v2412_v20, %v2411_v23  ;;  %v1207_v28 = vadd.f32 %v5532_v62, %v1206_v26  ;;  %4312 = vmatprep.mubr.msk.f32.mxu0 %vm281_vm0, %v140_v22  ;;  %v152_v20 = vld [vmem:[%s6442_s0 + $0x450] sm:$0xff] }
 0x106   :  { %v2414_v31 = vmax.f32 %v1212_v25, 0.0 }
 0x107   :  { %v2413_v33 = vmax.f32 %v1207_v28, 0.0  ;;  %v4155_v34 = vpop.f32.mrb[20].mxu0  ;;  %4516 = vmatprep.subr.bf16.mxu1 %v4515_v27  ;;  %v153_v27 = vld [vmem:[%s6442_s0 + $0x458] sm:$0xff] }
 0x108   :  { %v1222_v35 = vadd.f32 %v4155_v34, %v5532_v62  ;;  %v1216_v36 = vpop.f32.mrb[21].mxu0  ;;  %4313 = vmatmul.mubr.msk.f32.gmra.mrb[126].mxu0 %vm281_vm0, %v141_v29  ;;  %4518 = vmatpush3.bf16.msra.mxu1 %v5553_v12  ;;  %v154_v29 = vld [vmem:[%s6442_s0 + $0x460] sm:$0xff] }
 0x109   :  { %v4519_v37 = vpack.c.bf16 %v2414_v31, %v2413_v33  ;;  %v1217_v38 = vadd.f32 %v5532_v62, %v1216_v36  ;;  %4315 = vmatprep.mubr.msk.f32.mxu0 %vm281_vm0, %v142_v32  ;;  %v2655_v31 = vadd.s32 384, %v5458_v42 }
 0x10a   :  { %v2416_v41 = vmax.f32 %v1222_v35, 0.0 }
 0x10b   :  { %v2415_v45 = vmax.f32 %v1217_v38, 0.0  ;;  %v4158_v46 = vpop.f32.mrb[22].mxu0  ;;  %4520 = vmatprep.subr.bf16.mxu1 %v4519_v37  ;;  %v155_v37 = vld [vmem:[%s6442_s0 + $0x468] sm:$0xff]  ;;  %vm2674_vm6 = vcmp.ge.s32.totalorder %v2655_v31, %v5460_v43  ;;  %vm2691_vm7 = vcmp.lt.s32.totalorder %v2655_v31, %v5474_v48 }
 0x10c   :  { %v1232_v47 = vadd.f32 %v4158_v46, %v5532_v62  ;;  %v1226_v12 = vpop.f32.mrb[23].mxu0  ;;  %4316 = vmatmul.mubr.msk.f32.gmra.mrb[128].mxu0 %vm281_vm0, %v143_v40  ;;  %4522 = vmatpush3.bf16.msra.mxu1 %v5565_v21  ;;  %vm2707_vm9 = vmand %vm2674_vm6, %vm2691_vm7 }
 0x10d   :  { %v4523_v49 = vpack.c.bf16 %v2416_v41, %v2415_v45  ;;  %v1227_v50 = vadd.f32 %v5532_v62, %v1226_v12  ;;  %4318 = vmatprep.mubr.msk.f32.mxu0 %vm281_vm0, %v144_v44  ;;  %v157_v12 = vld [vmem:[%s6442_s0 + $0x478] sm:$0xff] }
 0x10e   :  { %v2418_v54 = vmax.f32 %v1232_v47, 0.0 }
 0x10f   :  { %v2417_v56 = vmax.f32 %v1227_v50, 0.0  ;;  %v4161_v57 = vpop.f32.mrb[24].mxu0  ;;  %4524 = vmatprep.subr.bf16.mxu1 %v4523_v49  ;;  %v158_v50 = vld [vmem:[%s6442_s0 + $0x480] sm:$0xff] }
 0x110   :  { %v1242_v58 = vadd.f32 %v4161_v57, %v5532_v62  ;;  %v1236_v21 = vpop.f32.mrb[25].mxu0  ;;  %4319 = vmatmul.mubr.msk.f32.gmra.mrb[130].mxu0 %vm281_vm0, %v145_v53  ;;  %4526 = vmatpush3.bf16.msra.mxu1 %v5577_v30 }
 0x111   :  { %v4527_v59 = vpack.c.bf16 %v2418_v54, %v2417_v56  ;;  %v1237_v60 = vadd.f32 %v5532_v62, %v1236_v21  ;;  %4321 = vmatprep.mubr.msk.f32.mxu0 %vm281_vm0, %v146_v55 }
 0x112   :  { %v2420_v0 = vmax.f32 %v1242_v58, 0.0  ;;  %v159_v58 = vld [vmem:[%s6442_s0 + $0x488] sm:$0xff] }
 0x113   :  { %v2419_v2 = vmax.f32 %v1237_v60, 0.0  ;;  %v4164_v3 = vpop.f32.mrb[26].mxu0  ;;  %4528 = vmatprep.subr.bf16.mxu1 %v4527_v59  ;;  %v160_v59 = vld [vmem:[%s6442_s0 + $0x490] sm:$0xff] }
 0x114   :  { %v1252_v4 = vadd.f32 %v4164_v3, %v5532_v62  ;;  %v1246_v30 = vpop.f32.mrb[27].mxu0  ;;  %4322 = vmatmul.mubr.msk.f32.gmra.mrb[132].mxu0 %vm281_vm0, %v147_v63  ;;  %4530 = vmatpush3.bf16.msra.mxu1 %v5589_v39 }
 0x115   :  { %v4531_v5 = vpack.c.bf16 %v2420_v0, %v2419_v2  ;;  %v1247_v6 = vadd.f32 %v5532_v62, %v1246_v30  ;;  %4324 = vmatprep.mubr.msk.f32.mxu0 %vm281_vm0, %v148_v1 }
 0x116   :  { %v2422_v9 = vmax.f32 %v1252_v4, 0.0  ;;  %v161_v4 = vld [vmem:[%s6442_s0 + $0x498] sm:$0xff] }
 0x117   :  { %v2421_v11 = vmax.f32 %v1247_v6, 0.0  ;;  %v4167_v13 = vpop.f32.mrb[28].mxu0  ;;  %4532 = vmatprep.subr.bf16.mxu1 %v4531_v5  ;;  %v162_v5 = vld [vmem:[%s6442_s0 + $0x4a0] sm:$0xff] }
 0x118   :  { %v1262_v14 = vadd.f32 %v4167_v13, %v5532_v62  ;;  %v1256_v39 = vpop.f32.mrb[29].mxu0  ;;  %4325 = vmatmul.mubr.msk.f32.gmra.mrb[134].mxu0 %vm281_vm0, %v149_v8  ;;  %4534 = vmatpush3.bf16.msra.mxu1 %v5601_v52 }
 0x119   :  { %v4535_v15 = vpack.c.bf16 %v2422_v9, %v2421_v11  ;;  %v1257_v16 = vadd.f32 %v5532_v62, %v1256_v39  ;;  %4327 = vmatprep.mubr.msk.f32.mxu0 %vm281_vm0, %v150_v10 }
 0x11a   :  { %v2424_v19 = vmax.f32 %v1262_v14, 0.0  ;;  %v163_v14 = vld [vmem:[%s6442_s0 + $0x4a8] sm:$0xff] }
 0x11b   :  { %v2423_v22 = vmax.f32 %v1257_v16, 0.0  ;;  %v4170_v23 = vpop.f32.mrb[30].mxu0  ;;  %4536 = vmatprep.subr.bf16.mxu1 %v4535_v15  ;;  %v164_v15 = vld [vmem:[%s6442_s0 + $0x4b0] sm:$0xff] }
 0x11c   :  { %v1272_v24 = vadd.f32 %v4170_v23, %v5532_v62  ;;  %v1266_v52 = vpop.f32.mrb[31].mxu0  ;;  %4328 = vmatmul.mubr.msk.f32.gmra.mrb[136].mxu0 %vm281_vm0, %v151_v18  ;;  %4538 = vmatpush3.bf16.msra.mxu1 %v5613_v61 }
 0x11d   :  { %v4539_v25 = vpack.c.bf16 %v2424_v19, %v2423_v22  ;;  %v1267_v26 = vadd.f32 %v5532_v62, %v1266_v52  ;;  %4330 = vmatprep.mubr.msk.f32.mxu0 %vm281_vm0, %v152_v20 }
 0x11e   :  { %v2426_v28 = vmax.f32 %v1272_v24, 0.0  ;;  %v165_v24 = vld [vmem:[%s6442_s0 + $0x4b8] sm:$0xff] }
 0x11f   :  { %v2425_v32 = vmax.f32 %v1267_v26, 0.0  ;;  %v4173_v33 = vpop.f32.mrb[32].mxu0  ;;  %4540 = vmatprep.subr.bf16.mxu1 %v4539_v25  ;;  %v166_v25 = vld [vmem:[%s6442_s0 + $0x4c0] sm:$0xff] }
 0x120   :  { %v1282_v61 = vadd.f32 %v4173_v33, %v5532_v62  ;;  %v1276_v34 = vpop.f32.mrb[33].mxu0  ;;  %4331 = vmatmul.mubr.msk.f32.gmra.mrb[138].mxu0 %vm281_vm0, %v153_v27  ;;  %4542 = vmatpush3.bf16.msra.mxu1 %v5625_v7  ;;  %v156_v7 = vld [vmem:[%s6442_s0 + $0x470] sm:$0xff]  ;;  %v167_v33 = vld [vmem:[%s6442_s0 + $0x4c8] sm:$0xff] }
 0x121   :  { %v4543_v35 = vpack.c.bf16 %v2426_v28, %v2425_v32  ;;  %v1277_v36 = vadd.f32 %v5532_v62, %v1276_v34  ;;  %4333 = vmatprep.mubr.msk.f32.mxu0 %vm281_vm0, %v154_v29  ;;  %v168_v34 = vld [vmem:[%s6442_s0 + $0x4d0] sm:$0xff] }
 0x122   :  { %v2428_v38 = vmax.f32 %v1282_v61, 0.0 }
 0x123   :  { %v2427_v40 = vmax.f32 %v1277_v36, 0.0  ;;  %v4176_v41 = vpop.f32.mrb[34].mxu0  ;;  %4544 = vmatprep.subr.bf16.mxu1 %v4543_v35 }
 0x124   :  { %v1292_v44 = vadd.f32 %v4176_v41, %v5532_v62  ;;  %v1286_v45 = vpop.f32.mrb[35].mxu0  ;;  %4334 = vmatmul.mubr.msk.f32.gmra.mrb[140].mxu0 %vm281_vm0, %v155_v37  ;;  %4546 = vmatpush3.bf16.msra.mxu1 %v5637_v17  ;;  %v169_v41 = vld [vmem:[%s6442_s0 + $0x4d8] sm:$0xff] }
 0x125   :  { %v5744_v46 = vpack.c.bf16 %v2428_v38, %v2427_v40  ;;  %v1287_v47 = vadd.f32 %v5532_v62, %v1286_v45  ;;  %4336 = vmatprep.mubr.msk.f32.mxu0 %vm281_vm0, %v156_v7  ;;  %v170_v45 = vld [vmem:[%s6442_s0 + $0x4e0] sm:$0xff] }
 0x126   :  { %v2430_v49 = vmax.f32 %v1292_v44, 0.0 }
 0x127   :  { %v2429_v53 = vmax.f32 %v1287_v47, 0.0  ;;  %v4179_v54 = vpop.f32.mrb[36].mxu0  ;;  %3560 = vmatmul.mubr.msk.f32.vlgmr.msra.gmra.mrb[70].mxu1 %vm2704_vm8, %v6445_v51 }
 0x128   :  { %v1302_v17 = vadd.f32 %v4179_v54, %v5532_v62  ;;  %v1296_v55 = vpop.f32.mrb[37].mxu0  ;;  %4337 = vmatmul.mubr.msk.f32.gmra.mrb[142].mxu0 %vm281_vm0, %v157_v12  ;;  %3561 = vmatprep.mubr.msk.f32.mxu1 %vm2707_vm9, %v6445_v51 }
 0x129   :  { %v5758_v56 = vpack.c.bf16 %v2430_v49, %v2429_v53  ;;  %v1297_v57 = vadd.f32 %v5532_v62, %v1296_v55  ;;  %4339 = vmatprep.mubr.msk.f32.mxu0 %vm281_vm0, %v158_v50 }
 0x12a   :  { %v2432_v21 = vmax.f32 %v1302_v17, 0.0  ;;  %v171_v17 = vld [vmem:[%s6442_s0 + $0x4e8] sm:$0xff] }
 0x12b   :  { %v2431_v60 = vmax.f32 %v1297_v57, 0.0  ;;  %v4182_v63 = vpop.f32.mrb[38].mxu0  ;;  %v172_v57 = vld [vmem:[%s6442_s0 + $0x4f0] sm:$0xff] }
 0x12c   :  { %v1312_v0 = vadd.f32 %v4182_v63, %v5532_v62  ;;  %v1306_v1 = vpop.f32.mrb[39].mxu0  ;;  %4340 = vmatmul.mubr.msk.f32.gmra.mrb[144].mxu0 %vm281_vm0, %v159_v58 }
 0x12d   :  { %v5770_v2 = vpack.c.bf16 %v2432_v21, %v2431_v60  ;;  %v1307_v3 = vadd.f32 %v5532_v62, %v1306_v1  ;;  %4342 = vmatprep.mubr.msk.f32.mxu0 %vm281_vm0, %v160_v59  ;;  %v173_v1 = vld [vmem:[%s6442_s0 + $0x4f8] sm:$0xff] }
 0x12e   :  { %v2434_v30 = vmax.f32 %v1312_v0, 0.0 }
 0x12f   :  { %v2433_v6 = vmax.f32 %v1307_v3, 0.0  ;;  %v4185_v8 = vpop.f32.mrb[40].mxu0 }
 0x130   :  { %v1322_v9 = vadd.f32 %v4185_v8, %v5532_v62  ;;  %v1316_v10 = vpop.f32.mrb[41].mxu0  ;;  %4343 = vmatmul.mubr.msk.f32.gmra.mrb[146].mxu0 %vm281_vm0, %v161_v4  ;;  %v174_v4 = vld [vmem:[%s6442_s0 + $0x500] sm:$0xff] }
 0x131   :  { %v5782_v11 = vpack.c.bf16 %v2434_v30, %v2433_v6  ;;  %v1317_v13 = vadd.f32 %v5532_v62, %v1316_v10  ;;  %4345 = vmatprep.mubr.msk.f32.mxu0 %vm281_vm0, %v162_v5 }
 0x132   :  { %v2436_v39 = vmax.f32 %v1322_v9, 0.0 }
 0x133   :  { %v2435_v16 = vmax.f32 %v1317_v13, 0.0  ;;  %v4188_v18 = vpop.f32.mrb[42].mxu0  ;;  %v175_v13 = vld [vmem:[%s6442_s0 + $0x508] sm:$0xff] }
 0x134   :  { %v1332_v19 = vadd.f32 %v4188_v18, %v5532_v62  ;;  %v1326_v20 = vpop.f32.mrb[43].mxu0  ;;  %4346 = vmatmul.mubr.msk.f32.gmra.mrb[148].mxu0 %vm281_vm0, %v163_v14 }
 0x135   :  { %v5794_v22 = vpack.c.bf16 %v2436_v39, %v2435_v16  ;;  %v1327_v23 = vadd.f32 %v5532_v62, %v1326_v20  ;;  %4348 = vmatprep.mubr.msk.f32.mxu0 %vm281_vm0, %v164_v15  ;;  %v176_v39 = vld [vmem:[%s6442_s0 + $0x510] sm:$0xff] }
 0x136   :  { %v2438_v52 = vmax.f32 %v1332_v19, 0.0 }
 0x137   :  { %v2437_v26 = vmax.f32 %v1327_v23, 0.0  ;;  %v4191_v27 = vpop.f32.mrb[44].mxu0  ;;  %v177_v23 = vld [vmem:[%s6442_s0 + $0x518] sm:$0xff] }
 0x138   :  { %v1342_v28 = vadd.f32 %v4191_v27, %v5532_v62  ;;  %v1336_v29 = vpop.f32.mrb[45].mxu0  ;;  %4349 = vmatmul.mubr.msk.f32.gmra.mrb[150].mxu0 %vm281_vm0, %v165_v24 }
 0x139   :  { %v5806_v31 = vpack.c.bf16 %v2438_v52, %v2437_v26  ;;  %v1337_v32 = vadd.f32 %v5532_v62, %v1336_v29  ;;  %4351 = vmatprep.mubr.msk.f32.mxu0 %vm281_vm0, %v166_v25  ;;  %v178_v52 = vld [vmem:[%s6442_s0 + $0x520] sm:$0xff] }
 0x13a   :  { %v2440_v61 = vmax.f32 %v1342_v28, 0.0 }
 0x13b   :  { %v2439_v35 = vmax.f32 %v1337_v32, 0.0  ;;  %v4194_v36 = vpop.f32.mrb[46].mxu0  ;;  %v179_v32 = vld [vmem:[%s6442_s0 + $0x528] sm:$0xff] }
 0x13c   :  { %v1352_v37 = vadd.f32 %v4194_v36, %v5532_v62  ;;  %v1346_v38 = vpop.f32.mrb[47].mxu0  ;;  %4352 = vmatmul.mubr.msk.f32.gmra.mrb[152].mxu0 %vm281_vm0, %v167_v33 }
 0x13d   :  { %v5818_v7 = vpack.c.bf16 %v2440_v61, %v2439_v35  ;;  %v1347_v40 = vadd.f32 %v5532_v62, %v1346_v38  ;;  %4354 = vmatprep.mubr.msk.f32.mxu0 %vm281_vm0, %v168_v34  ;;  %v180_v61 = vld [vmem:[%s6442_s0 + $0x530] sm:$0xff] }
 0x13e   :  { %v2442_v44 = vmax.f32 %v1352_v37, 0.0 }
 0x13f   :  { %v2441_v47 = vmax.f32 %v1347_v40, 0.0  ;;  %v4197_v12 = vpop.f32.mrb[48].mxu0  ;;  %v181_v40 = vld [vmem:[%s6442_s0 + $0x538] sm:$0xff] }
 0x140   :  { %v1362_v49 = vadd.f32 %v4197_v12, %v5532_v62  ;;  %v1356_v50 = vpop.f32.mrb[49].mxu0  ;;  %4355 = vmatmul.mubr.msk.f32.gmra.mrb[154].mxu0 %vm281_vm0, %v169_v41 }
 0x141   :  { %v5830_v53 = vpack.c.bf16 %v2442_v44, %v2441_v47  ;;  %v1357_v54 = vadd.f32 %v5532_v62, %v1356_v50  ;;  %4357 = vmatprep.mubr.msk.f32.mxu0 %vm281_vm0, %v170_v45  ;;  %v182_v44 = vld [vmem:[%s6442_s0 + $0x540] sm:$0xff] }
 0x142   :  { %v2444_v55 = vmax.f32 %v1362_v49, 0.0 }
 0x143   :  { %v2443_v58 = vmax.f32 %v1357_v54, 0.0  ;;  %v4200_v21 = vpop.f32.mrb[50].mxu0  ;;  %v183_v54 = vld [vmem:[%s6442_s0 + $0x548] sm:$0xff] }
 0x144   :  { %v1372_v59 = vadd.f32 %v4200_v21, %v5532_v62  ;;  %v1366_v60 = vpop.f32.mrb[51].mxu0  ;;  %4358 = vmatmul.mubr.msk.f32.gmra.mrb[156].mxu0 %vm281_vm0, %v171_v17 }
 0x145   :  { %v4547_v63 = vpack.c.bf16 %v2444_v55, %v2443_v58  ;;  %v1367_v0 = vadd.f32 %v5532_v62, %v1366_v60  ;;  %4360 = vmatprep.mubr.msk.f32.mxu0 %vm281_vm0, %v172_v57  ;;  %v184_v55 = vld [vmem:[%s6442_s0 + $0x550] sm:$0xff] }
 0x146   :  { %v2446_v3 = vmax.f32 %v1372_v59, 0.0 }
 0x147   :  { %v2445_v30 = vmax.f32 %v1367_v0, 0.0  ;;  %v4203_v5 = vpop.f32.mrb[52].mxu0  ;;  %4548 = vmatprep.subr.bf16.mxu1 %v4547_v63  ;;  %v185_v63 = vld [vmem:[%s6442_s0 + $0x558] sm:$0xff]  ;;  %v2654_v0 = vadd.s32 256, %v5458_v42 }
 0x148   :  { %v1382_v6 = vadd.f32 %v4203_v5, %v5532_v62  ;;  %v1376_v8 = vpop.f32.mrb[53].mxu0  ;;  %4361 = vmatmul.mubr.msk.f32.gmra.mrb[158].mxu0 %vm281_vm0, %v173_v1  ;;  %4550 = vmatpush3.bf16.msra.mxu1 %v5744_v46 }
 0x149   :  { %v4551_v9 = vpack.c.bf16 %v2446_v3, %v2445_v30  ;;  %v1377_v10 = vadd.f32 %v5532_v62, %v1376_v8  ;;  %4363 = vmatprep.mubr.msk.f32.mxu0 %vm281_vm0, %v174_v4  ;;  %v186_v3 = vld [vmem:[%s6442_s0 + $0x560] sm:$0xff]  ;;  %v2657_v4 = vadd.s32 640, %v5458_v42  ;;  %vm2673_vm10 = vcmp.ge.s32.totalorder %v2654_v0, %v5460_v43 }
 0x14a   :  { %v2448_v14 = vmax.f32 %v1382_v6, 0.0  ;;  %vm2690_vm11 = vcmp.lt.s32.totalorder %v2654_v0, %v5474_v48 }
 0x14b   :  { %v2447_v15 = vmax.f32 %v1377_v10, 0.0  ;;  %v4206_v16 = vpop.f32.mrb[54].mxu0  ;;  %4552 = vmatprep.subr.bf16.mxu1 %v4551_v9  ;;  %v187_v10 = vld [vmem:[%s6442_s0 + $0x568] sm:$0xff]  ;;  %vm2676_vm12 = vcmp.ge.s32.totalorder %v2657_v4, %v5460_v43  ;;  %vm2693_vm13 = vcmp.lt.s32.totalorder %v2657_v4, %v5474_v48  ;;  %vm2706_vm14 = vmand %vm2673_vm10, %vm2690_vm11 }
 0x14c   :  { %v1392_v18 = vadd.f32 %v4206_v16, %v5532_v62  ;;  %v1386_v46 = vpop.f32.mrb[55].mxu0  ;;  %4364 = vmatmul.mubr.msk.f32.gmra.mrb[160].mxu0 %vm281_vm0, %v175_v13  ;;  %4554 = vmatpush3.bf16.msra.mxu1 %v5758_v56  ;;  %vm2709_vm15 = vmand %vm2676_vm12, %vm2693_vm13 }
 0x14d   :  { %v4555_v19 = vpack.c.bf16 %v2448_v14, %v2447_v15  ;;  %v1387_v20 = vadd.f32 %v5532_v62, %v1386_v46  ;;  %4366 = vmatprep.mubr.msk.f32.mxu0 %vm281_vm0, %v176_v39  ;;  %v188_v14 = vld [vmem:[%s6442_s0 + $0x570] sm:$0xff] }
 0x14e   :  { %v2450_v24 = vmax.f32 %v1392_v18, 0.0 }
 0x14f   :  { %v2449_v25 = vmax.f32 %v1387_v20, 0.0  ;;  %v4209_v26 = vpop.f32.mrb[56].mxu0  ;;  %4556 = vmatprep.subr.bf16.mxu1 %v4555_v19  ;;  %v189_v19 = vld [vmem:[%s6442_s0 + $0x578] sm:$0xff] }
 0x150   :  { %v1402_v27 = vadd.f32 %v4209_v26, %v5532_v62  ;;  %v1396_v56 = vpop.f32.mrb[57].mxu0  ;;  %4367 = vmatmul.mubr.msk.f32.gmra.mrb[162].mxu0 %vm281_vm0, %v177_v23  ;;  %4558 = vmatpush3.bf16.msra.mxu1 %v5770_v2  ;;  %v190_v23 = vld [vmem:[%s6442_s0 + $0x580] sm:$0xff] }
 0x151   :  { %v4559_v28 = vpack.c.bf16 %v2450_v24, %v2449_v25  ;;  %v1397_v29 = vadd.f32 %v5532_v62, %v1396_v56  ;;  %4369 = vmatprep.mubr.msk.f32.mxu0 %vm281_vm0, %v178_v52  ;;  %v191_v56 = vld [vmem:[%s6442_s0 + $0x588] sm:$0xff] }
 0x152   :  { %v2452_v33 = vmax.f32 %v1402_v27, 0.0 }
 0x153   :  { %v2451_v34 = vmax.f32 %v1397_v29, 0.0  ;;  %v4212_v35 = vpop.f32.mrb[58].mxu0  ;;  %4560 = vmatprep.subr.bf16.mxu1 %v4559_v28  ;;  %v192_v29 = vld [vmem:[%s6442_s0 + $0x590] sm:$0xff] }
 0x154   :  { %v1412_v36 = vadd.f32 %v4212_v35, %v5532_v62  ;;  %v1406_v2 = vpop.f32.mrb[59].mxu0  ;;  %4370 = vmatmul.mubr.msk.f32.gmra.mrb[164].mxu0 %vm281_vm0, %v179_v32  ;;  %4562 = vmatpush3.bf16.msra.mxu1 %v5782_v11 }
 0x155   :  { %v4563_v37 = vpack.c.bf16 %v2452_v33, %v2451_v34  ;;  %v1407_v38 = vadd.f32 %v5532_v62, %v1406_v2  ;;  %4372 = vmatprep.mubr.msk.f32.mxu0 %vm281_vm0, %v180_v61  ;;  %v193_v2 = vld [vmem:[%s6442_s0 + $0x598] sm:$0xff] }
 0x156   :  { %v2454_v41 = vmax.f32 %v1412_v36, 0.0 }
 0x157   :  { %v2453_v45 = vmax.f32 %v1407_v38, 0.0  ;;  %v4215_v47 = vpop.f32.mrb[60].mxu0  ;;  %4564 = vmatprep.subr.bf16.mxu1 %v4563_v37  ;;  %v194_v38 = vld [vmem:[%s6442_s0 + $0x5a0] sm:$0xff] }
 0x158   :  { %v1422_v12 = vadd.f32 %v4215_v47, %v5532_v62  ;;  %v1416_v11 = vpop.f32.mrb[61].mxu0  ;;  %4373 = vmatmul.mubr.msk.f32.gmra.mrb[166].mxu0 %vm281_vm0, %v181_v40  ;;  %4566 = vmatpush3.bf16.msra.mxu1 %v5794_v22 }
 0x159   :  { %v4567_v49 = vpack.c.bf16 %v2454_v41, %v2453_v45  ;;  %v1417_v50 = vadd.f32 %v5532_v62, %v1416_v11  ;;  %4375 = vmatprep.mubr.msk.f32.mxu0 %vm281_vm0, %v182_v44  ;;  %v195_v11 = vld [vmem:[%s6442_s0 + $0x5a8] sm:$0xff] }
 0x15a   :  { %v2456_v17 = vmax.f32 %v1422_v12, 0.0 }
 0x15b   :  { %v2455_v57 = vmax.f32 %v1417_v50, 0.0  ;;  %v4218_v58 = vpop.f32.mrb[62].mxu0  ;;  %4568 = vmatprep.subr.bf16.mxu1 %v4567_v49  ;;  %v196_v50 = vld [vmem:[%s6442_s0 + $0x5b0] sm:$0xff] }
 0x15c   :  { %v1432_v21 = vadd.f32 %v4218_v58, %v5532_v62  ;;  %v1426_v22 = vpop.f32.mrb[63].mxu0  ;;  %4376 = vmatmul.mubr.msk.f32.gmra.mrb[168].mxu0 %vm281_vm0, %v183_v54  ;;  %4570 = vmatpush3.bf16.msra.mxu1 %v5806_v31 }
 0x15d   :  { %v4571_v59 = vpack.c.bf16 %v2456_v17, %v2455_v57  ;;  %v1427_v60 = vadd.f32 %v5532_v62, %v1426_v22  ;;  %4378 = vmatprep.mubr.msk.f32.mxu0 %vm281_vm0, %v184_v55  ;;  %v197_v22 = vld [vmem:[%s6442_s0 + $0x5b8] sm:$0xff] }
 0x15e   :  { %v2458_v1 = vmax.f32 %v1432_v21, 0.0 }
 0x15f   :  { %v2457_v30 = vmax.f32 %v1427_v60, 0.0  ;;  %v4221_v31 = vpop.f32.mrb[64].mxu0  ;;  %4572 = vmatprep.subr.bf16.mxu1 %v4571_v59  ;;  %v198_v60 = vld [vmem:[%s6442_s0 + $0x5c0] sm:$0xff] }
 0x160   :  { %v1442_v5 = vadd.f32 %v4221_v31, %v5532_v62  ;;  %v1436_v6 = vpop.f32.mrb[65].mxu0  ;;  %4379 = vmatmul.mubr.msk.f32.gmra.mrb[170].mxu0 %vm281_vm0, %v185_v63  ;;  %4574 = vmatpush3.bf16.msra.mxu1 %v5818_v7  ;;  %v199_v31 = vld [vmem:[%s6442_s0 + $0x5c8] sm:$0xff] }
 0x161   :  { %v4575_v8 = vpack.c.bf16 %v2458_v1, %v2457_v30  ;;  %v1437_v9 = vadd.f32 %v5532_v62, %v1436_v6  ;;  %4381 = vmatprep.mubr.msk.f32.mxu0 %vm281_vm0, %v186_v3 }
 0x162   :  { %v2460_v13 = vmax.f32 %v1442_v5, 0.0 }
 0x163   :  { %v2459_v7 = vmax.f32 %v1437_v9, 0.0  ;;  %v4224_v39 = vpop.f32.mrb[66].mxu0  ;;  %4576 = vmatprep.subr.bf16.mxu1 %v4575_v8 }
 0x164   :  { %v1452_v15 = vadd.f32 %v4224_v39, %v5532_v62  ;;  %v1446_v16 = vpop.f32.mrb[67].mxu0  ;;  %4382 = vmatmul.mubr.msk.f32.gmra.mrb[172].mxu0 %vm281_vm0, %v187_v10  ;;  %4578 = vmatpush3.bf16.msra.mxu1 %v5830_v53 }
 0x165   :  { %v5936_v18 = vpack.c.bf16 %v2460_v13, %v2459_v7  ;;  %v1447_v46 = vadd.f32 %v5532_v62, %v1446_v16  ;;  %4384 = vmatprep.mubr.msk.f32.mxu0 %vm281_vm0, %v188_v14 }
 0x166   :  { %v2462_v20 = vmax.f32 %v1452_v15, 0.0 }
 0x167   :  { %v2461_v24 = vmax.f32 %v1447_v46, 0.0  ;;  %v4227_v52 = vpop.f32.mrb[68].mxu0  ;;  %3562 = vmatmul.mubr.msk.f32.vlgmr.msra.gmra.mrb[72].mxu1 %vm2706_vm14, %v6445_v51 }
 0x168   :  { %v1462_v53 = vadd.f32 %v4227_v52, %v5532_v62  ;;  %v1456_v25 = vpop.f32.mrb[69].mxu0  ;;  %4385 = vmatmul.mubr.msk.f32.gmra.mrb[174].mxu0 %vm281_vm0, %v189_v19  ;;  %3563 = vmatprep.mubr.msk.f32.mxu1 %vm2709_vm15, %v6445_v51 }
 0x169   :  { %v5950_v26 = vpack.c.bf16 %v2462_v20, %v2461_v24  ;;  %v1457_v27 = vadd.f32 %v5532_v62, %v1456_v25  ;;  %4387 = vmatprep.mubr.msk.f32.mxu0 %vm281_vm0, %v190_v23 }
 0x16a   :  { %v2464_v28 = vmax.f32 %v1462_v53, 0.0 }
 0x16b   :  { %v2463_v32 = vmax.f32 %v1457_v27, 0.0  ;;  %v4230_v33 = vpop.f32.mrb[70].mxu0 }
 0x16c   :  { %v1472_v61 = vadd.f32 %v4230_v33, %v5532_v62  ;;  %v1466_v34 = vpop.f32.mrb[71].mxu0  ;;  %4388 = vmatmul.mubr.msk.f32.gmra.mrb[176].mxu0 %vm281_vm0, %v191_v56 }
 0x16d   :  { %v5962_v35 = vpack.c.bf16 %v2464_v28, %v2463_v32  ;;  %v1467_v36 = vadd.f32 %v5532_v62, %v1466_v34  ;;  %4390 = vmatprep.mubr.msk.f32.mxu0 %vm281_vm0, %v192_v29 }
 0x16e   :  { %v2466_v37 = vmax.f32 %v1472_v61, 0.0 }
 0x16f   :  { %v2465_v40 = vmax.f32 %v1467_v36, 0.0  ;;  %v4233_v41 = vpop.f32.mrb[72].mxu0 }
 0x170   :  { %v1482_v44 = vadd.f32 %v4233_v41, %v5532_v62  ;;  %v1476_v45 = vpop.f32.mrb[73].mxu0  ;;  %4391 = vmatmul.mubr.msk.f32.gmra.mrb[178].mxu0 %vm281_vm0, %v193_v2 }
 0x171   :  { %v5974_v47 = vpack.c.bf16 %v2466_v37, %v2465_v40  ;;  %v1477_v12 = vadd.f32 %v5532_v62, %v1476_v45  ;;  %4393 = vmatprep.mubr.msk.f32.mxu0 %vm281_vm0, %v194_v38  ;;  %v6022_v40 = vld [vmem:[%s6443_s2] ss:$0 sm:$0xff] }
 0x172   :  { %v2468_v49 = vmax.f32 %v1482_v44, 0.0 }
 0x173   :  { %v2467_v54 = vmax.f32 %v1477_v12, 0.0  ;;  %v4236_v17 = vpop.f32.mrb[74].mxu0 }
 0x174   :  { %v1492_v55 = vadd.f32 %v4236_v17, %v5532_v62  ;;  %v1486_v57 = vpop.f32.mrb[75].mxu0  ;;  %4394 = vmatmul.mubr.msk.f32.gmra.mrb[180].mxu0 %vm281_vm0, %v195_v11  ;;  %v4404_v11 = vpop.f32.mrb[0].mxu1 }
 0x175   :  { %v5986_v58 = vpack.c.bf16 %v2468_v49, %v2467_v54  ;;  %v1487_v21 = vadd.f32 %v5532_v62, %v1486_v57  ;;  %4396 = vmatprep.mubr.msk.f32.mxu0 %vm281_vm0, %v196_v50  ;;  %v2046_v50 = vpop.f32.mrb[1].mxu1 }
 0x176   :  { %v2470_v59 = vmax.f32 %v1492_v55, 0.0  ;;  %v2052_v55 = vadd.f32 %v6022_v40, %v4404_v11  ;;  %v2047_v57 = vadd.f32 %v6022_v40, %v2046_v50 }
 0x177   :  { %v2469_v63 = vmax.f32 %v1487_v21, 0.0  ;;  %v4239_v0 = vpop.f32.mrb[76].mxu0 }
 0x178   :  { %v1502_v1 = vadd.f32 %v4239_v0, %v5532_v62  ;;  %v1496_v3 = vpop.f32.mrb[77].mxu0  ;;  %4397 = vmatmul.mubr.msk.f32.gmra.mrb[182].mxu0 %vm281_vm0, %v197_v22 }
 0x179   :  { %v5998_v4 = vpack.c.bf16 %v2470_v59, %v2469_v63  ;;  %v1497_v30 = vadd.f32 %v5532_v62, %v1496_v3  ;;  %4399 = vmatprep.mubr.msk.f32.mxu0 %vm281_vm0, %v198_v60  ;;  %v2582_v59 = vmax.f32 %v2052_v55, 0.0  ;;  %v2581_v60 = vmax.f32 %v2047_v57, 0.0  ;;  %v4407_v63 = vpop.f32.mrb[2].mxu1 }
 0x17a   :  { %v2472_v5 = vmax.f32 %v1502_v1, 0.0  ;;  %v2056_v3 = vpop.f32.mrb[3].mxu1 }
 0x17b   :  { %v2471_v6 = vmax.f32 %v1497_v30, 0.0  ;;  %v4242_v8 = vpop.f32.mrb[78].mxu0 }
 0x17c   :  { %v1512_v9 = vadd.f32 %v4242_v8, %v5532_v62  ;;  %v1506_v10 = vpop.f32.mrb[79].mxu0  ;;  %4400 = vmatmul.mubr.msk.f32.gmra.mrb[184].mxu0 %vm281_vm0, %v199_v31 }
 0x17d   :  { %v6007_v13 = vpack.c.bf16 %v2472_v5, %v2471_v6  ;;  %v1507_v14 = vadd.f32 %v5532_v62, %v1506_v10  ;;  %v2062_v5 = vadd.f32 %v6022_v40, %v4407_v63  ;;  %v2057_v6 = vadd.f32 %v6022_v40, %v2056_v3 }
 0x17e   :  { %v2474_v7 = vmax.f32 %v1512_v9, 0.0 }
 0x17f   :  { %v2473_v39 = vmax.f32 %v1507_v14, 0.0  ;;  %v4245_v15 = vpop.f32.mrb[80].mxu0  ;;  %v2584_v14 = vmax.f32 %v2062_v5, 0.0 }
 0x180   :  { %v1522_v16 = vadd.f32 %v4245_v15, %v5532_v62  ;;  %v1516_v46 = vpop.f32.mrb[81].mxu0 }
 0x181   :  { %v6011_v19 = vpack.c.bf16 %v2474_v7, %v2473_v39  ;;  %v1517_v20 = vadd.f32 %v5532_v62, %v1516_v46  ;;  %v2583_v7 = vmax.f32 %v2057_v6, 0.0  ;;  %v4410_v39 = vpop.f32.mrb[4].mxu1 }
 0x182   :  { %v2476_v23 = vmax.f32 %v1522_v16, 0.0  ;;  %v2066_v46 = vpop.f32.mrb[5].mxu1 }
 0x183   :  { %v2475_v24 = vmax.f32 %v1517_v20, 0.0  ;;  %v4248_v52 = vpop.f32.mrb[82].mxu0 }
 0x184   :  { %v1532_v53 = vadd.f32 %v4248_v52, %v5532_v62  ;;  %v1526_v25 = vpop.f32.mrb[83].mxu0  ;;  %v2067_v52 = vadd.f32 %v6022_v40, %v2066_v46 }
 0x185   :  { %v4579_v27 = vpack.c.bf16 %v2476_v23, %v2475_v24  ;;  %v1527_v56 = vadd.f32 %v5532_v62, %v1526_v25  ;;  %v6041_v23 = vpack.c.bf16 %v2584_v14, %v2583_v7  ;;  %v2072_v24 = vadd.f32 %v6022_v40, %v4410_v39 }
 0x186   :  { %v2478_v28 = vmax.f32 %v1532_v53, 0.0 }
 0x187   :  { %v2477_v29 = vmax.f32 %v1527_v56, 0.0  ;;  %v4251_v32 = vpop.f32.mrb[84].mxu0  ;;  %4580 = vmatprep.subr.bf16.mxu1 %v4579_v27  ;;  %v2586_v56 = vmax.f32 %v2072_v24, 0.0 }
 0x188   :  { %v1542_v33 = vadd.f32 %v4251_v32, %v5532_v62  ;;  %v1536_v61 = vpop.f32.mrb[85].mxu0  ;;  %4582 = vmatpush3.bf16.msra.mxu1 %v5936_v18 }
 0x189   :  { %v4583_v34 = vpack.c.bf16 %v2478_v28, %v2477_v29  ;;  %v1537_v36 = vadd.f32 %v5532_v62, %v1536_v61  ;;  %v2585_v28 = vmax.f32 %v2067_v52, 0.0  ;;  %v4413_v29 = vpop.f32.mrb[6].mxu1  ;;  %v2656_v61 = vadd.s32 512, %v5458_v42 }
 0x18a   :  { %v2480_v2 = vmax.f32 %v1542_v33, 0.0 }
 0x18b   :  { %v2479_v37 = vmax.f32 %v1537_v36, 0.0  ;;  %v4254_v38 = vpop.f32.mrb[86].mxu0  ;;  %4584 = vmatprep.subr.bf16.mxu1 %v4583_v34  ;;  %v2076_v34 = vpop.f32.mrb[7].mxu1  ;;  %vm2675_vm0 = vcmp.ge.s32.totalorder %v2656_v61, %v5460_v43  ;;  %vm2692_vm1 = vcmp.lt.s32.totalorder %v2656_v61, %v5474_v48 }
 0x18c   :  { %v1552_v41 = vadd.f32 %v6022_v40, %v4254_v38  ;;  %v1546_v44 = vpop.f32.mrb[87].mxu0  ;;  %4586 = vmatpush3.bf16.msra.mxu1 %v5950_v26  ;;  %v2077_v38 = vadd.f32 %v6022_v40, %v2076_v34  ;;  %vm2708_vm4 = vmand %vm2675_vm0, %vm2692_vm1 }
 0x18d   :  { %v4587_v45 = vpack.c.bf16 %v2480_v2, %v2479_v37  ;;  %v1547_v18 = vadd.f32 %v6022_v40, %v1546_v44  ;;  %v6049_v2 = vpack.c.bf16 %v2586_v56, %v2585_v28  ;;  %v2082_v37 = vadd.f32 %v6022_v40, %v4413_v29 }
 0x18e   :  { %v2482_v12 = vmax.f32 %v1552_v41, 0.0  ;;  %v2587_v11 = vmax.f32 %v2077_v38, 0.0 }
 0x18f   :  { %v2481_v62 = vmax.f32 %v1547_v18, 0.0  ;;  %v4257_v49 = vpop.f32.mrb[88].mxu0  ;;  %4588 = vmatprep.subr.bf16.mxu1 %v4587_v45  ;;  %v2659_v45 = vadd.s32 896, %v5458_v42 }
 0x190   :  { %v1562_v54 = vadd.f32 %v6022_v40, %v4257_v49  ;;  %v1556_v17 = vpop.f32.mrb[89].mxu0  ;;  %4590 = vmatpush3.bf16.msra.mxu1 %v5962_v35  ;;  %v6034_v35 = vpack.c.bf16 %v2582_v59, %v2581_v60 }
 0x191   :  { %v4591_v21 = vpack.c.bf16 %v2482_v12, %v2481_v62  ;;  %v1557_v26 = vadd.f32 %v6022_v40, %v1556_v17  ;;  %v2588_v12 = vmax.f32 %v2082_v37, 0.0  ;;  %v4416_v62 = vpop.f32.mrb[8].mxu1  ;;  %vm2678_vm2 = vcmp.ge.s32.totalorder %v2659_v45, %v5460_v43 }
 0x192   :  { %v2484_v22 = vmax.f32 %v1562_v54, 0.0  ;;  %v2092_v57 = vadd.f32 %v6022_v40, %v4416_v62  ;;  %vm2695_vm3 = vcmp.lt.s32.totalorder %v2659_v45, %v5474_v48 }
 0x193   :  { %v2483_v0 = vmax.f32 %v1557_v26, 0.0  ;;  %v4260_v1 = vpop.f32.mrb[90].mxu0  ;;  %4592 = vmatprep.subr.bf16.mxu1 %v4591_v21  ;;  %v6058_v55 = vpack.c.bf16 %v2588_v12, %v2587_v11  ;;  %vm2711_vm5 = vmand %vm2678_vm2, %vm2695_vm3 }
 0x194   :  { %v1572_v30 = vadd.f32 %v6022_v40, %v4260_v1  ;;  %v1566_v31 = vpop.f32.mrb[91].mxu0  ;;  %4594 = vmatpush3.bf16.msra.mxu1 %v5974_v47  ;;  %v2590_v60 = vmax.f32 %v2092_v57, 0.0 }
 0x195   :  { %v4595_v8 = vpack.c.bf16 %v2484_v22, %v2483_v0  ;;  %v1567_v9 = vadd.f32 %v6022_v40, %v1566_v31 }
 0x196   :  { %v2486_v10 = vmax.f32 %v1572_v30, 0.0 }
 0x197   :  { %v2485_v15 = vmax.f32 %v1567_v9, 0.0  ;;  %v4263_v16 = vpop.f32.mrb[92].mxu0  ;;  %4596 = vmatprep.subr.bf16.mxu1 %v4595_v8 }
 0x198   :  { %v1582_v20 = vadd.f32 %v6022_v40, %v4263_v16  ;;  %v1576_v47 = vpop.f32.mrb[93].mxu0  ;;  %4598 = vmatpush3.bf16.msra.mxu1 %v5986_v58 }
 0x199   :  { %v4599_v53 = vpack.c.bf16 %v2486_v10, %v2485_v15  ;;  %v1577_v25 = vadd.f32 %v6022_v40, %v1576_v47 }
 0x19a   :  { %v2488_v27 = vmax.f32 %v1582_v20, 0.0 }
 0x19b   :  { %v2487_v32 = vmax.f32 %v1577_v25, 0.0  ;;  %v4266_v33 = vpop.f32.mrb[94].mxu0  ;;  %4600 = vmatprep.subr.bf16.mxu1 %v4599_v53 }
 0x19c   :  { %v1592_v58 = vadd.f32 %v6022_v40, %v4266_v33  ;;  %v1586_v36 = vpop.f32.mrb[95].mxu0  ;;  %4602 = vmatpush3.bf16.msra.mxu1 %v5998_v4  ;;  %v2086_v4 = vpop.f32.mrb[9].mxu1 }
 0x19d   :  { %v4603_v41 = vpack.c.bf16 %v2488_v27, %v2487_v32  ;;  %v1587_v44 = vadd.f32 %v6022_v40, %v1586_v36  ;;  %v2087_v21 = vadd.f32 %v6022_v40, %v2086_v4  ;;  %v4419_v0 = vpop.f32.mrb[10].mxu1 }
 0x19e   :  { %v2490_v18 = vmax.f32 %v1592_v58, 0.0  ;;  %v2096_v3 = vpop.f32.mrb[11].mxu1  ;;  %v2102_v6 = vadd.f32 %v6022_v40, %v4419_v0 }
 0x19f   :  { %v2489_v49 = vmax.f32 %v1587_v44, 0.0  ;;  %v4269_v50 = vpop.f32.mrb[96].mxu0  ;;  %4604 = vmatprep.subr.bf16.mxu1 %v4603_v41  ;;  %v2589_v63 = vmax.f32 %v2087_v21, 0.0  ;;  %v2097_v8 = vadd.f32 %v6022_v40, %v2096_v3  ;;  %v4422_v39 = vpop.f32.mrb[12].mxu1 }
 0x1a0   :  { %v1602_v54 = vadd.f32 %v6022_v40, %v4269_v50  ;;  %v1596_v17 = vpop.f32.mrb[97].mxu0  ;;  %4606 = vmatpush3.bf16.msra.mxu1 %v6007_v13  ;;  %v2106_v46 = vpop.f32.mrb[13].mxu1  ;;  %v2112_v52 = vadd.f32 %v6022_v40, %v4422_v39 }
 0x1a1   :  { %v4607_v26 = vpack.c.bf16 %v2490_v18, %v2489_v49  ;;  %v1597_v22 = vadd.f32 %v6022_v40, %v1596_v17  ;;  %v6070_v5 = vpack.c.bf16 %v2590_v60, %v2589_v63  ;;  %v2591_v7 = vmax.f32 %v2097_v8, 0.0  ;;  %v4425_v32 = vpop.f32.mrb[14].mxu1 }
 0x1a2   :  { %v2492_v59 = vmax.f32 %v1602_v54, 0.0  ;;  %v2107_v53 = vadd.f32 %v6022_v40, %v2106_v46  ;;  %v2594_v28 = vmax.f32 %v2112_v52, 0.0  ;;  %v2116_v34 = vpop.f32.mrb[15].mxu1  ;;  %v2122_v38 = vadd.f32 %v6022_v40, %v4425_v32 }
 0x1a3   :  { %v2491_v13 = vmax.f32 %v1597_v22, 0.0  ;;  %v4272_v1 = vpop.f32.mrb[98].mxu0  ;;  %4608 = vmatprep.subr.bf16.mxu1 %v4607_v26  ;;  %v2117_v41 = vadd.f32 %v6022_v40, %v2116_v34  ;;  %v4428_v62 = vpop.f32.mrb[16].mxu1 }
 0x1a4   :  { %v1612_v30 = vadd.f32 %v6022_v40, %v4272_v1  ;;  %v1606_v31 = vpop.f32.mrb[99].mxu0  ;;  %4610 = vmatpush3.bf16.msra.mxu1 %v6011_v19  ;;  %v2592_v19 = vmax.f32 %v2102_v6, 0.0  ;;  %v2593_v29 = vmax.f32 %v2107_v53, 0.0  ;;  %v2596_v12 = vmax.f32 %v2122_v38, 0.0  ;;  %v2126_v4 = vpop.f32.mrb[17].mxu1 }
 0x1a5   :  { %v6074_v9 = vpack.c.bf16 %v2492_v59, %v2491_v13  ;;  %v1607_v10 = vadd.f32 %v6022_v40, %v1606_v31  ;;  %v2595_v11 = vmax.f32 %v2117_v41, 0.0  ;;  %v2132_v21 = vadd.f32 %v6022_v40, %v4428_v62  ;;  %v4431_v13 = vpop.f32.mrb[18].mxu1 }
 0x1a6   :  { %v2494_v14 = vmax.f32 %v1612_v30, 0.0  ;;  %v6084_v24 = vpack.c.bf16 %v2592_v19, %v2591_v7  ;;  %v6092_v37 = vpack.c.bf16 %v2594_v28, %v2593_v29  ;;  %v2127_v26 = vadd.f32 %v6022_v40, %v2126_v4  ;;  %v2136_v30 = vpop.f32.mrb[19].mxu1 }
 0x1a7   :  { %v2493_v15 = vmax.f32 %v1607_v10, 0.0  ;;  %v4275_v16 = vpop.f32.mrb[100].mxu0  ;;  %3564 = vmatmul.mubr.msk.f32.vlgmr.msra.gmra.mrb[74].mxu1 %vm2708_vm4, %v6445_v51  ;;  %v6100_v57 = vpack.c.bf16 %v2596_v12, %v2595_v11  ;;  %v2598_v63 = vmax.f32 %v2132_v21, 0.0  ;;  %v2142_v10 = vadd.f32 %v6022_v40, %v4431_v13  ;;  %v4434_v46 = vpop.f32.mrb[20].mxu1 }
 0x1a8   :  { %v1622_v20 = vadd.f32 %v6022_v40, %v4275_v16  ;;  %v1616_v47 = vpop.f32.mrb[101].mxu0  ;;  %3565 = vmatprep.mubr.msk.f32.mxu1 %vm2711_vm5, %v6445_v51  ;;  %v2597_v0 = vmax.f32 %v2127_v26, 0.0  ;;  %v2146_v52 = vpop.f32.mrb[21].mxu1  ;;  %v2152_v28 = vadd.f32 %v6022_v40, %v4434_v46 }
 0x1a9   :  { %v6088_v25 = vpack.c.bf16 %v2494_v14, %v2493_v15  ;;  %v1617_v27 = vadd.f32 %v6022_v40, %v1616_v47  ;;  %v2137_v14 = vadd.f32 %v6022_v40, %v2136_v30  ;;  %v2600_v15 = vmax.f32 %v2142_v10, 0.0 }
 0x1aa   :  { %v2496_v56 = vmax.f32 %v1622_v20, 0.0  ;;  %v6108_v8 = vpack.c.bf16 %v2598_v63, %v2597_v0  ;;  %v2147_v29 = vadd.f32 %v6022_v40, %v2146_v52  ;;  %v2602_v34 = vmax.f32 %v2152_v28, 0.0 }
 0x1ab   :  { %v2495_v33 = vmax.f32 %v1617_v27, 0.0  ;;  %v4278_v61 = vpop.f32.mrb[102].mxu0  ;;  %v2599_v16 = vmax.f32 %v2137_v14, 0.0 }
 0x1ac   :  { %v1632_v58 = vadd.f32 %v6022_v40, %v4278_v61  ;;  %v1626_v36 = vpop.f32.mrb[103].mxu0 }
 0x1ad   :  { %v6096_v44 = vpack.c.bf16 %v2496_v56, %v2495_v33  ;;  %v1627_v45 = vadd.f32 %v6022_v40, %v1626_v36  ;;  %v6116_v56 = vpack.c.bf16 %v2600_v15, %v2599_v16  ;;  %v4437_v36 = vpop.f32.mrb[22].mxu1 }
 0x1ae   :  { %v2498_v18 = vmax.f32 %v1632_v58, 0.0  ;;  %v2601_v58 = vmax.f32 %v2147_v29, 0.0  ;;  %v2162_v62 = vadd.f32 %v6022_v40, %v4437_v36 }
 0x1af   :  { %v2497_v49 = vmax.f32 %v1627_v45, 0.0  ;;  %v4281_v50 = vpop.f32.mrb[104].mxu0  ;;  %v2156_v45 = vpop.f32.mrb[23].mxu1 }
 0x1b0   :  { %v1642_v54 = vadd.f32 %v6022_v40, %v4281_v50  ;;  %v1636_v17 = vpop.f32.mrb[105].mxu0  ;;  %v6124_v11 = vpack.c.bf16 %v2602_v34, %v2601_v58  ;;  %v4440_v26 = vpop.f32.mrb[24].mxu1 }
 0x1b1   :  { %v6104_v22 = vpack.c.bf16 %v2498_v18, %v2497_v49  ;;  %v1637_v59 = vadd.f32 %v6022_v40, %v1636_v17  ;;  %v2157_v49 = vadd.f32 %v6022_v40, %v2156_v45  ;;  %v2604_v17 = vmax.f32 %v2162_v62, 0.0  ;;  %v2166_v63 = vpop.f32.mrb[25].mxu1 }
 0x1b2   :  { %v2500_v60 = vmax.f32 %v1642_v54, 0.0  ;;  %v2167_v30 = vadd.f32 %v6022_v40, %v2166_v63 }
 0x1b3   :  { %v2499_v1 = vmax.f32 %v1637_v59, 0.0  ;;  %v4284_v3 = vpop.f32.mrb[106].mxu0  ;;  %v2603_v21 = vmax.f32 %v2157_v49, 0.0 }
 0x1b4   :  { %v1652_v31 = vadd.f32 %v6022_v40, %v4284_v3  ;;  %v1646_v6 = vpop.f32.mrb[107].mxu0  ;;  %v2172_v3 = vadd.f32 %v6022_v40, %v4440_v26 }
 0x1b5   :  { %v6112_v19 = vpack.c.bf16 %v2500_v60, %v2499_v1  ;;  %v1647_v7 = vadd.f32 %v6022_v40, %v1646_v6  ;;  %v6132_v1 = vpack.c.bf16 %v2604_v17, %v2603_v21 }
 0x1b6   :  { %v2502_v39 = vmax.f32 %v1652_v31, 0.0  ;;  %v2606_v14 = vmax.f32 %v2172_v3, 0.0 }
 0x1b7   :  { %v2501_v20 = vmax.f32 %v1647_v7, 0.0  ;;  %v4287_v47 = vpop.f32.mrb[108].mxu0  ;;  %v2605_v7 = vmax.f32 %v2167_v30, 0.0 }
 0x1b8   :  { %v1662_v53 = vadd.f32 %v6022_v40, %v4287_v47  ;;  %v1656_v27 = vpop.f32.mrb[109].mxu0 }
 0x1b9   :  { %v6120_v32 = vpack.c.bf16 %v2502_v39, %v2501_v20  ;;  %v1657_v33 = vadd.f32 %v6022_v40, %v1656_v27  ;;  %v4443_v39 = vpop.f32.mrb[26].mxu1  ;;  %v6140_v52 = vpack.c.bf16 %v2606_v14, %v2605_v7 }
 0x1ba   :  { %v2504_v61 = vmax.f32 %v1662_v53, 0.0  ;;  %v2176_v46 = vpop.f32.mrb[27].mxu1  ;;  %v2182_v53 = vadd.f32 %v6022_v40, %v4443_v39 }
 0x1bb   :  { %v2503_v38 = vmax.f32 %v1657_v33, 0.0  ;;  %v4290_v41 = vpop.f32.mrb[110].mxu0  ;;  %v2177_v27 = vadd.f32 %v6022_v40, %v2176_v46  ;;  %v4446_v58 = vpop.f32.mrb[28].mxu1 }
 0x1bc   :  { %v1672_v18 = vadd.f32 %v6022_v40, %v4290_v41  ;;  %v1666_v12 = vpop.f32.mrb[111].mxu0  ;;  %v2186_v41 = vpop.f32.mrb[29].mxu1  ;;  %v2192_v62 = vadd.f32 %v6022_v40, %v4446_v58 }
 0x1bd   :  { %v6128_v50 = vpack.c.bf16 %v2504_v61, %v2503_v38  ;;  %v1667_v4 = vadd.f32 %v6022_v40, %v1666_v12  ;;  %v2608_v61 = vmax.f32 %v2182_v53, 0.0  ;;  %v2607_v34 = vmax.f32 %v2177_v27, 0.0 }
 0x1be   :  { %v2506_v54 = vmax.f32 %v1672_v18, 0.0  ;;  %v2187_v49 = vadd.f32 %v6022_v40, %v2186_v41  ;;  %v2610_v21 = vmax.f32 %v2192_v62, 0.0 }
 0x1bf   :  { %v2505_v59 = vmax.f32 %v1667_v4, 0.0  ;;  %v4293_v60 = vpop.f32.mrb[112].mxu0  ;;  %v6147_v12 = vpack.c.bf16 %v2608_v61, %v2607_v34 }
 0x1c0   :  { %v1682_v0 = vadd.f32 %v6022_v40, %v4293_v60  ;;  %v1676_v13 = vpop.f32.mrb[113].mxu0  ;;  %v2609_v26 = vmax.f32 %v2187_v49, 0.0 }
 0x1c1   :  { %v6136_v31 = vpack.c.bf16 %v2506_v54, %v2505_v59  ;;  %v1677_v6 = vadd.f32 %v6022_v40, %v1676_v13  ;;  %v4449_v59 = vpop.f32.mrb[30].mxu1 }
 0x1c2   :  { %v2508_v10 = vmax.f32 %v1682_v0, 0.0  ;;  %v2196_v0 = vpop.f32.mrb[31].mxu1  ;;  %v6154_v3 = vpack.c.bf16 %v2610_v21, %v2609_v26  ;;  %v2202_v30 = vadd.f32 %v6022_v40, %v4449_v59 }
 0x1c3   :  { %v2507_v15 = vmax.f32 %v1677_v6, 0.0  ;;  %v4296_v16 = vpop.f32.mrb[114].mxu0  ;;  %v2197_v6 = vadd.f32 %v6022_v40, %v2196_v0 }
 0x1c4   :  { %v1692_v20 = vadd.f32 %v6022_v40, %v4296_v16  ;;  %v1686_v47 = vpop.f32.mrb[115].mxu0  ;;  %v2612_v39 = vmax.f32 %v2202_v30, 0.0  ;;  %v4452_v16 = vpop.f32.mrb[32].mxu1 }
 0x1c5   :  { %v4611_v28 = vpack.c.bf16 %v2508_v10, %v2507_v15  ;;  %v1687_v29 = vadd.f32 %v6022_v40, %v1686_v47  ;;  %v2611_v15 = vmax.f32 %v2197_v6, 0.0  ;;  %v2206_v47 = vpop.f32.mrb[33].mxu1 }
 0x1c6   :  { %v2510_v33 = vmax.f32 %v1692_v20, 0.0 }
 0x1c7   :  { %v2509_v36 = vmax.f32 %v1687_v29, 0.0  ;;  %v4299_v38 = vpop.f32.mrb[116].mxu0  ;;  %4612 = vmatprep.subr.bf16.mxu1 %v4611_v28  ;;  %v6161_v27 = vpack.c.bf16 %v2612_v39, %v2611_v15  ;;  %v2212_v28 = vadd.f32 %v6022_v40, %v4452_v16  ;;  %v2207_v29 = vadd.f32 %v6022_v40, %v2206_v47 }
 0x1c8   :  { %v1702_v45 = vadd.f32 %v6022_v40, %v4299_v38  ;;  %v1696_v18 = vpop.f32.mrb[117].mxu0  ;;  %4614 = vmatpush3.bf16.msra.mxu1 %v6074_v9  ;;  %v4455_v38 = vpop.f32.mrb[34].mxu1 }
 0x1c9   :  { %v4615_v4 = vpack.c.bf16 %v2510_v33, %v2509_v36  ;;  %v1697_v54 = vadd.f32 %v6022_v40, %v1696_v18  ;;  %v2614_v58 = vmax.f32 %v2212_v28, 0.0  ;;  %v2613_v36 = vmax.f32 %v2207_v29, 0.0  ;;  %v2216_v18 = vpop.f32.mrb[35].mxu1 }
 0x1ca   :  { %v2512_v17 = vmax.f32 %v1702_v45, 0.0  ;;  %v4458_v26 = vpop.f32.mrb[36].mxu1 }
 0x1cb   :  { %v2511_v60 = vmax.f32 %v1697_v54, 0.0  ;;  %v4302_v63 = vpop.f32.mrb[118].mxu0  ;;  %4616 = vmatprep.subr.bf16.mxu1 %v4615_v4  ;;  %v6168_v49 = vpack.c.bf16 %v2614_v58, %v2613_v36  ;;  %v2222_v4 = vadd.f32 %v6022_v40, %v4455_v38  ;;  %v2217_v54 = vadd.f32 %v6022_v40, %v2216_v18 }
 0x1cc   :  { %v1712_v13 = vadd.f32 %v6022_v40, %v4302_v63  ;;  %v1706_v9 = vpop.f32.mrb[119].mxu0  ;;  %4618 = vmatpush3.bf16.msra.mxu1 %v6088_v25  ;;  %v2232_v0 = vadd.f32 %v6022_v40, %v4458_v26 }
 0x1cd   :  { %v4619_v10 = vpack.c.bf16 %v2512_v17, %v2511_v60  ;;  %v1707_v14 = vadd.f32 %v6022_v40, %v1706_v9  ;;  %v2616_v60 = vmax.f32 %v2222_v4, 0.0  ;;  %v2615_v63 = vmax.f32 %v2217_v54, 0.0 }
 0x1ce   :  { %v2514_v7 = vmax.f32 %v1712_v13, 0.0  ;;  %v2226_v13 = vpop.f32.mrb[37].mxu1 }
 0x1cf   :  { %v2513_v46 = vmax.f32 %v1707_v14, 0.0  ;;  %v4305_v20 = vpop.f32.mrb[120].mxu0  ;;  %4620 = vmatprep.subr.bf16.mxu1 %v4619_v10  ;;  %v6177_v14 = vpack.c.bf16 %v2616_v60, %v2615_v63 }
 0x1d0   :  { %v1722_v53 = vadd.f32 %v6022_v40, %v4305_v20  ;;  %v1716_v25 = vpop.f32.mrb[121].mxu0  ;;  %4622 = vmatpush3.bf16.msra.mxu1 %v6096_v44 }
 0x1d1   :  { %v4623_v33 = vpack.c.bf16 %v2514_v7, %v2513_v46  ;;  %v1717_v61 = vadd.f32 %v6022_v40, %v1716_v25  ;;  %v2618_v7 = vmax.f32 %v2232_v0, 0.0  ;;  %v4461_v46 = vpop.f32.mrb[38].mxu1 }
 0x1d2   :  { %v2516_v34 = vmax.f32 %v1722_v53, 0.0  ;;  %v2242_v47 = vadd.f32 %v6022_v40, %v4461_v46  ;;  %v2236_v53 = vpop.f32.mrb[39].mxu1 }
 0x1d3   :  { %v2515_v41 = vmax.f32 %v1717_v61, 0.0  ;;  %v4308_v45 = vpop.f32.mrb[122].mxu0  ;;  %4624 = vmatprep.subr.bf16.mxu1 %v4623_v33  ;;  %v2237_v33 = vadd.f32 %v6022_v40, %v2236_v53 }
 0x1d4   :  { %v1732_v62 = vadd.f32 %v6022_v40, %v4308_v45  ;;  %v1726_v44 = vpop.f32.mrb[123].mxu0  ;;  %4626 = vmatpush3.bf16.msra.mxu1 %v6104_v22  ;;  %v2227_v22 = vadd.f32 %v6022_v40, %v2226_v13  ;;  %v2620_v58 = vmax.f32 %v2242_v47, 0.0  ;;  %v4464_v45 = vpop.f32.mrb[40].mxu1 }
 0x1d5   :  { %v4627_v17 = vpack.c.bf16 %v2516_v34, %v2515_v41  ;;  %v1727_v21 = vadd.f32 %v6022_v40, %v1726_v44  ;;  %v2658_v34 = vadd.s32 768, %v5458_v42  ;;  %v2619_v41 = vmax.f32 %v2237_v33, 0.0  ;;  %v2246_v4 = vpop.f32.mrb[41].mxu1 }
 0x1d6   :  { %v2518_v59 = vmax.f32 %v1732_v62, 0.0  ;;  %v2617_v16 = vmax.f32 %v2227_v22, 0.0  ;;  %v2661_v62 = vadd.s32 1152, %v5458_v42  ;;  %v2252_v44 = vadd.f32 %v6022_v40, %v4464_v45 }
 0x1d7   :  { %v2517_v9 = vmax.f32 %v1727_v21, 0.0  ;;  %v4311_v30 = vpop.f32.mrb[124].mxu0  ;;  %4628 = vmatprep.subr.bf16.mxu1 %v4627_v17  ;;  %v6190_v21 = vpack.c.bf16 %v2620_v58, %v2619_v41  ;;  %vm2677_vm6 = vcmp.ge.s32.totalorder %v2658_v34, %v5460_v43  ;;  %vm2694_vm7 = vcmp.lt.s32.totalorder %v2658_v34, %v5474_v48 }
 0x1d8   :  { %v1742_v6 = vadd.f32 %v6022_v40, %v4311_v30  ;;  %v1736_v10 = vpop.f32.mrb[125].mxu0  ;;  %4630 = vmatpush3.bf16.msra.mxu1 %v6112_v19  ;;  %v6181_v29 = vpack.c.bf16 %v2618_v7, %v2617_v16  ;;  %v2622_v60 = vmax.f32 %v2252_v44, 0.0  ;;  %vm2680_vm8 = vcmp.ge.s32.totalorder %v2661_v62, %v5460_v43  ;;  %vm2710_vm10 = vmand %vm2677_vm6, %vm2694_vm7 }
 0x1d9   :  { %v4631_v39 = vpack.c.bf16 %v2518_v59, %v2517_v9  ;;  %v1737_v15 = vadd.f32 %v6022_v40, %v1736_v10  ;;  %v4467_v9 = vpop.f32.mrb[42].mxu1  ;;  %vm2697_vm9 = vcmp.lt.s32.totalorder %v2661_v62, %v5474_v48 }
 0x1da   :  { %v2520_v20 = vmax.f32 %v1742_v6, 0.0  ;;  %v2262_v22 = vadd.f32 %v6022_v40, %v4467_v9  ;;  %v2256_v6 = vpop.f32.mrb[43].mxu1  ;;  %vm2713_vm11 = vmand %vm2680_vm8, %vm2697_vm9 }
 0x1db   :  { %v2519_v25 = vmax.f32 %v1737_v15, 0.0  ;;  %v4314_v28 = vpop.f32.mrb[126].mxu0  ;;  %4632 = vmatprep.subr.bf16.mxu1 %v4631_v39  ;;  %v2257_v39 = vadd.f32 %v6022_v40, %v2256_v6 }
 0x1dc   :  { %v1752_v19 = vadd.f32 %v6022_v40, %v4314_v28  ;;  %v1746_v61 = vpop.f32.mrb[127].mxu0  ;;  %4634 = vmatpush3.bf16.msra.mxu1 %v6120_v32  ;;  %v2247_v32 = vadd.f32 %v6022_v40, %v2246_v4  ;;  %v2624_v46 = vmax.f32 %v2262_v22, 0.0 }
 0x1dd   :  { %v4635_v36 = vpack.c.bf16 %v2520_v20, %v2519_v25  ;;  %v1747_v38 = vadd.f32 %v6022_v40, %v1746_v61  ;;  %v2623_v53 = vmax.f32 %v2257_v39, 0.0  ;;  %v4470_v25 = vpop.f32.mrb[44].mxu1 }
 0x1de   :  { %v2522_v18 = vmax.f32 %v1752_v19, 0.0  ;;  %v2621_v13 = vmax.f32 %v2247_v32, 0.0  ;;  %v2266_v33 = vpop.f32.mrb[45].mxu1 }
 0x1df   :  { %v2521_v54 = vmax.f32 %v1747_v38, 0.0  ;;  %v4317_v17 = vpop.f32.mrb[128].mxu0  ;;  %4636 = vmatprep.subr.bf16.mxu1 %v4635_v36  ;;  %v6219_v34 = vpack.c.bf16 %v2624_v46, %v2623_v53  ;;  %v2267_v58 = vadd.f32 %v6022_v40, %v2266_v33  ;;  %v4473_v44 = vpop.f32.mrb[46].mxu1 }
 0x1e0   :  { %v1762_v26 = vadd.f32 %v6022_v40, %v4317_v17  ;;  %v1756_v59 = vpop.f32.mrb[129].mxu0  ;;  %4638 = vmatpush3.bf16.msra.mxu1 %v6128_v50  ;;  %v6201_v7 = vpack.c.bf16 %v2622_v60, %v2621_v13  ;;  %v2276_v17 = vpop.f32.mrb[47].mxu1 }
 0x1e1   :  { %v4639_v63 = vpack.c.bf16 %v2522_v18, %v2521_v54  ;;  %v1757_v0 = vadd.f32 %v6022_v40, %v1756_v59  ;;  %v2625_v62 = vmax.f32 %v2267_v58, 0.0  ;;  %v2282_v54 = vadd.f32 %v6022_v40, %v4473_v44  ;;  %v4476_v6 = vpop.f32.mrb[48].mxu1 }
 0x1e2   :  { %v2524_v30 = vmax.f32 %v1762_v26, 0.0  ;;  %v2277_v60 = vadd.f32 %v6022_v40, %v2276_v17  ;;  %v2286_v39 = vpop.f32.mrb[49].mxu1 }
 0x1e3   :  { %v2523_v10 = vmax.f32 %v1757_v0, 0.0  ;;  %v4320_v50 = vpop.f32.mrb[130].mxu0  ;;  %4640 = vmatprep.subr.bf16.mxu1 %v4639_v63  ;;  %v2628_v13 = vmax.f32 %v2282_v54, 0.0 }
 0x1e4   :  { %v1772_v15 = vadd.f32 %v6022_v40, %v4320_v50  ;;  %v1766_v16 = vpop.f32.mrb[131].mxu0  ;;  %4642 = vmatpush3.bf16.msra.mxu1 %v6136_v31  ;;  %v2272_v31 = vadd.f32 %v6022_v40, %v4470_v25  ;;  %v2627_v22 = vmax.f32 %v2277_v60, 0.0  ;;  %v2292_v50 = vadd.f32 %v6022_v40, %v4476_v6 }
 0x1e5   :  { %v6210_v20 = vpack.c.bf16 %v2524_v30, %v2523_v10  ;;  %v1767_v47 = vadd.f32 %v6022_v40, %v1766_v16 }
 0x1e6   :  { %v2526_v28 = vmax.f32 %v1772_v15, 0.0  ;;  %v2626_v41 = vmax.f32 %v2272_v31, 0.0  ;;  %v6236_v46 = vpack.c.bf16 %v2628_v13, %v2627_v22 }
 0x1e7   :  { %v2525_v19 = vmax.f32 %v1767_v47, 0.0  ;;  %v4323_v61 = vpop.f32.mrb[132].mxu0  ;;  %3566 = vmatmul.mubr.msk.f32.vlgmr.msra.gmra.mrb[76].mxu1 %vm2710_vm10, %v6445_v51  ;;  %v2287_v47 = vadd.f32 %v6022_v40, %v2286_v39 }
 0x1e8   :  { %v1782_v36 = vadd.f32 %v6022_v40, %v4323_v61  ;;  %v1776_v38 = vpop.f32.mrb[133].mxu0  ;;  %3567 = vmatprep.mubr.msk.f32.mxu1 %vm2713_vm11, %v6445_v51  ;;  %v6228_v59 = vpack.c.bf16 %v2626_v41, %v2625_v62  ;;  %v4479_v61 = vpop.f32.mrb[50].mxu1 }
 0x1e9   :  { %v6224_v45 = vpack.c.bf16 %v2526_v28, %v2525_v19  ;;  %v1777_v18 = vadd.f32 %v6022_v40, %v1776_v38  ;;  %v2630_v28 = vmax.f32 %v2292_v50, 0.0  ;;  %v2629_v19 = vmax.f32 %v2287_v47, 0.0  ;;  %v2296_v38 = vpop.f32.mrb[51].mxu1 }
 0x1ea   :  { %v2528_v4 = vmax.f32 %v1782_v36, 0.0  ;;  %v2302_v36 = vadd.f32 %v6022_v40, %v4479_v61  ;;  %v2297_v44 = vadd.f32 %v6022_v40, %v2296_v38 }
 0x1eb   :  { %v2527_v32 = vmax.f32 %v1777_v18, 0.0  ;;  %v4326_v26 = vpop.f32.mrb[134].mxu0  ;;  %v6244_v62 = vpack.c.bf16 %v2630_v28, %v2629_v19 }
 0x1ec   :  { %v1792_v63 = vadd.f32 %v6022_v40, %v4326_v26  ;;  %v1786_v0 = vpop.f32.mrb[135].mxu0  ;;  %v2632_v17 = vmax.f32 %v2302_v36, 0.0  ;;  %v2631_v60 = vmax.f32 %v2297_v44, 0.0 }
 0x1ed   :  { %v6232_v9 = vpack.c.bf16 %v2528_v4, %v2527_v32  ;;  %v1787_v30 = vadd.f32 %v6022_v40, %v1786_v0 }
 0x1ee   :  { %v2530_v10 = vmax.f32 %v1792_v63, 0.0  ;;  %v4482_v63 = vpop.f32.mrb[52].mxu1 }
 0x1ef   :  { %v2529_v15 = vmax.f32 %v1787_v30, 0.0  ;;  %v4329_v16 = vpop.f32.mrb[136].mxu0  ;;  %v2312_v13 = vadd.f32 %v6022_v40, %v4482_v63  ;;  %v2306_v30 = vpop.f32.mrb[53].mxu1 }
 0x1f0   :  { %v1802_v53 = vadd.f32 %v6022_v40, %v4329_v16  ;;  %v1796_v25 = vpop.f32.mrb[137].mxu0  ;;  %v2307_v50 = vadd.f32 %v6022_v40, %v2306_v30  ;;  %v4485_v28 = vpop.f32.mrb[54].mxu1 }
 0x1f1   :  { %v6240_v31 = vpack.c.bf16 %v2530_v10, %v2529_v15  ;;  %v1797_v33 = vadd.f32 %v6022_v40, %v1796_v25  ;;  %v6252_v10 = vpack.c.bf16 %v2632_v17, %v2631_v60  ;;  %v2634_v16 = vmax.f32 %v2312_v13, 0.0  ;;  %v2316_v61 = vpop.f32.mrb[55].mxu1 }
 0x1f2   :  { %v2532_v58 = vmax.f32 %v1802_v53, 0.0  ;;  %v2633_v25 = vmax.f32 %v2307_v50, 0.0  ;;  %v2322_v19 = vadd.f32 %v6022_v40, %v4485_v28  ;;  %v4488_v60 = vpop.f32.mrb[56].mxu1 }
 0x1f3   :  { %v2531_v41 = vmax.f32 %v1797_v33, 0.0  ;;  %v4332_v18 = vpop.f32.mrb[138].mxu0  ;;  %v2326_v13 = vpop.f32.mrb[57].mxu1 }
 0x1f4   :  { %v1812_v4 = vadd.f32 %v6022_v40, %v4332_v18  ;;  %v1806_v54 = vpop.f32.mrb[139].mxu0  ;;  %v6260_v38 = vpack.c.bf16 %v2634_v16, %v2633_v25  ;;  %v2327_v50 = vadd.f32 %v6022_v40, %v2326_v13 }
 0x1f5   :  { %v6248_v32 = vpack.c.bf16 %v2532_v58, %v2531_v41  ;;  %v1807_v26 = vadd.f32 %v6022_v40, %v1806_v54  ;;  %v2317_v41 = vadd.f32 %v6022_v40, %v2316_v61 }
 0x1f6   :  { %v2534_v0 = vmax.f32 %v1812_v4, 0.0  ;;  %6447 = vst [vmem:[#allocation2_spill] sm:$0xff] %v6260_v38  ;;  %v2636_v4 = vmax.f32 %v2322_v19, 0.0  ;;  %v2637_v28 = vmax.f32 %v2327_v50, 0.0 }
 0x1f7   :  { %v2533_v22 = vmax.f32 %v1807_v26, 0.0  ;;  %v4335_v6 = vpop.f32.mrb[140].mxu0  ;;  %v2635_v26 = vmax.f32 %v2317_v41, 0.0 }
 0x1f8   :  { %v1822_v39 = vadd.f32 %v6022_v40, %v4335_v6  ;;  %v1816_v15 = vpop.f32.mrb[141].mxu0 }
 0x1f9   :  { %v6256_v47 = vpack.c.bf16 %v2534_v0, %v2533_v22  ;;  %v1817_v53 = vadd.f32 %v6022_v40, %v1816_v15  ;;  %v2332_v0 = vadd.f32 %v6022_v40, %v4488_v60  ;;  %v6268_v6 = vpack.c.bf16 %v2636_v4, %v2635_v26 }
 0x1fa   :  { %v2536_v33 = vmax.f32 %v1822_v39, 0.0 }
 0x1fb   :  { %v2535_v58 = vmax.f32 %v1817_v53, 0.0  ;;  %v4338_v36 = vpop.f32.mrb[142].mxu0  ;;  %v2638_v16 = vmax.f32 %v2332_v0, 0.0 }
 0x1fc   :  { %v1832_v18 = vadd.f32 %v6022_v40, %v4338_v36  ;;  %v1826_v44 = vpop.f32.mrb[143].mxu0 }
 0x1fd   :  { %v6264_v54 = vpack.c.bf16 %v2536_v33, %v2535_v58  ;;  %v1827_v17 = vadd.f32 %v6022_v40, %v1826_v44  ;;  %v4491_v33 = vpop.f32.mrb[58].mxu1 }
 0x1fe   :  { %v2538_v63 = vmax.f32 %v1832_v18, 0.0  ;;  %v2342_v61 = vadd.f32 %v6022_v40, %v4491_v33  ;;  %v2336_v58 = vpop.f32.mrb[59].mxu1  ;;  %v6276_v18 = vpack.c.bf16 %v2638_v16, %v2637_v28 }
 0x1ff   :  { %v2537_v30 = vmax.f32 %v1827_v17, 0.0  ;;  %v4341_v22 = vpop.f32.mrb[144].mxu0  ;;  %v2337_v44 = vadd.f32 %v6022_v40, %v2336_v58  ;;  %v4494_v13 = vpop.f32.mrb[60].mxu1 }
 0x200   :  { %v1842_v39 = vadd.f32 %v6022_v40, %v4341_v22  ;;  %v1836_v15 = vpop.f32.mrb[145].mxu0  ;;  %v2640_v26 = vmax.f32 %v2342_v61, 0.0  ;;  %v2352_v22 = vadd.f32 %v6022_v40, %v4494_v13  ;;  %v2346_v50 = vpop.f32.mrb[61].mxu1 }
 0x201   :  { %v6272_v53 = vpack.c.bf16 %v2538_v63, %v2537_v30  ;;  %v1837_v25 = vadd.f32 %v6022_v40, %v1836_v15  ;;  %v2639_v0 = vmax.f32 %v2337_v44, 0.0 }
 0x202   :  { %v2540_v19 = vmax.f32 %v1842_v39, 0.0 }
 0x203   :  { %v2539_v36 = vmax.f32 %v1837_v25, 0.0  ;;  %v4344_v41 = vpop.f32.mrb[146].mxu0  ;;  %v6282_v16 = vpack.c.bf16 %v2640_v26, %v2639_v0  ;;  %v2347_v25 = vadd.f32 %v6022_v40, %v2346_v50 }
 0x204   :  { %v1852_v4 = vadd.f32 %v6022_v40, %v4344_v41  ;;  %v1846_v17 = vpop.f32.mrb[147].mxu0  ;;  %v4497_v41 = vpop.f32.mrb[62].mxu1 }
 0x205   :  { %v4643_v60 = vpack.c.bf16 %v2540_v19, %v2539_v36  ;;  %v1847_v63 = vadd.f32 %v6022_v40, %v1846_v17  ;;  %v2642_v19 = vmax.f32 %v2352_v22, 0.0  ;;  %v2641_v36 = vmax.f32 %v2347_v25, 0.0  ;;  %v2356_v17 = vpop.f32.mrb[63].mxu1 }
 0x206   :  { %v2542_v30 = vmax.f32 %v1852_v4, 0.0  ;;  %v2362_v4 = vadd.f32 %v6022_v40, %v4497_v41  ;;  %v2357_v0 = vadd.f32 %v6022_v40, %v2356_v17 }
 0x207   :  { %v2541_v39 = vmax.f32 %v1847_v63, 0.0  ;;  %v4347_v15 = vpop.f32.mrb[148].mxu0  ;;  %4644 = vmatprep.subr.bf16.mxu1 %v4643_v60  ;;  %v6289_v63 = vpack.c.bf16 %v2642_v19, %v2641_v36  ;;  %v6301_v36 = vld [vmem:[%s6443_s2] ss:$0 sm:$0xff] }
 0x208   :  { %v1862_v28 = vadd.f32 %v6022_v40, %v4347_v15  ;;  %v1856_v33 = vpop.f32.mrb[149].mxu0  ;;  %4646 = vmatpush3.bf16.msra.mxu1 %v6210_v20  ;;  %v4500_v15 = vpop.f32.mrb[64].mxu1 }
 0x209   :  { %v4647_v61 = vpack.c.bf16 %v2542_v30, %v2541_v39  ;;  %v1857_v58 = vadd.f32 %v6022_v40, %v1856_v33  ;;  %v2644_v30 = vmax.f32 %v2362_v4, 0.0  ;;  %v2643_v39 = vmax.f32 %v2357_v0, 0.0  ;;  %v2366_v33 = vpop.f32.mrb[65].mxu1 }
 0x20a   :  { %v2544_v44 = vmax.f32 %v1862_v28, 0.0  ;;  %v2372_v28 = vadd.f32 %v6022_v40, %v4500_v15 }
 0x20b   :  { %v2543_v60 = vmax.f32 %v1857_v58, 0.0  ;;  %v4350_v26 = vpop.f32.mrb[150].mxu0  ;;  %4648 = vmatprep.subr.bf16.mxu1 %v4647_v61  ;;  %v6296_v58 = vpack.c.bf16 %v2644_v30, %v2643_v39 }
 0x20c   :  { %v1872_v13 = vadd.f32 %v6022_v40, %v4350_v26  ;;  %v1866_v20 = vpop.f32.mrb[151].mxu0  ;;  %4650 = vmatpush3.bf16.msra.mxu1 %v6224_v45  ;;  %v2367_v45 = vadd.f32 %v6301_v36, %v2366_v33  ;;  %v2646_v4 = vmax.f32 %v2372_v28, 0.0  ;;  %v4503_v26 = vpop.f32.mrb[66].mxu1 }
 0x20d   :  { %v4651_v22 = vpack.c.bf16 %v2544_v44, %v2543_v60  ;;  %v1867_v50 = vadd.f32 %v6022_v40, %v1866_v20  ;;  %v2376_v20 = vpop.f32.mrb[67].mxu1 }
 0x20e   :  { %v2546_v25 = vmax.f32 %v1872_v13, 0.0  ;;  %v2645_v60 = vmax.f32 %v2367_v45, 0.0  ;;  %v2382_v13 = vadd.f32 %v6301_v36, %v4503_v26  ;;  %v2377_v39 = vadd.f32 %v6301_v36, %v2376_v20 }
 0x20f   :  { %v2545_v61 = vmax.f32 %v1867_v50, 0.0  ;;  %v4353_v19 = vpop.f32.mrb[152].mxu0  ;;  %4652 = vmatprep.subr.bf16.mxu1 %v4651_v22 }
 0x210   :  { %v1882_v41 = vadd.f32 %v6301_v36, %v4353_v19  ;;  %v1876_v44 = vpop.f32.mrb[153].mxu0  ;;  %4654 = vmatpush3.bf16.msra.mxu1 %v6232_v9  ;;  %v6308_v50 = vpack.c.bf16 %v2646_v4, %v2645_v60  ;;  %v4506_v19 = vpop.f32.mrb[68].mxu1 }
 0x211   :  { %v4655_v40 = vpack.c.bf16 %v2546_v25, %v2545_v61  ;;  %v1877_v17 = vadd.f32 %v6301_v36, %v1876_v44  ;;  %v2648_v25 = vmax.f32 %v2382_v13, 0.0  ;;  %v2647_v61 = vmax.f32 %v2377_v39, 0.0  ;;  %v2386_v44 = vpop.f32.mrb[69].mxu1 }
 0x212   :  { %v2548_v0 = vmax.f32 %v1882_v41, 0.0  ;;  %v2392_v41 = vadd.f32 %v6301_v36, %v4506_v19  ;;  %v2387_v60 = vadd.f32 %v6301_v36, %v2386_v44  ;;  %v3867_v26 = vpop.f32.mrb[70].mxu1 }
 0x213   :  { %v2547_v30 = vmax.f32 %v1877_v17, 0.0  ;;  %v4356_v22 = vpop.f32.mrb[154].mxu0  ;;  %4656 = vmatprep.subr.bf16.mxu1 %v4655_v40  ;;  %v6315_v17 = vpack.c.bf16 %v2648_v25, %v2647_v61  ;;  %v3868_v20 = vpop.f32.mrb[71].mxu1 }
 0x214   :  { %v1892_v15 = vadd.f32 %v6301_v36, %v4356_v22  ;;  %v1886_v9 = vpop.f32.mrb[155].mxu0  ;;  %4658 = vmatpush3.bf16.msra.mxu1 %v6240_v31  ;;  %v2649_v39 = vmax.f32 %v2387_v60, 0.0 }
 0x215   :  { %v4659_v28 = vpack.c.bf16 %v2548_v0, %v2547_v30  ;;  %v1887_v33 = vadd.f32 %v6301_v36, %v1886_v9  ;;  %v2650_v0 = vmax.f32 %v2392_v41, 0.0 }
 0x216   :  { %v2550_v45 = vmax.f32 %v1892_v15, 0.0  ;;  %v6321_v15 = vadd.f32 %v3868_v20, %v3867_v26 }
 0x217   :  { %v2549_v40 = vmax.f32 %v1887_v33, 0.0  ;;  %v4359_v4 = vpop.f32.mrb[156].mxu0  ;;  %4660 = vmatprep.subr.bf16.mxu1 %v4659_v28  ;;  %v6323_v33 = vpack.c.bf16 %v2650_v0, %v2649_v39 }
 0x218   :  { %v1902_v31 = vadd.f32 %v6301_v36, %v4359_v4  ;;  %v1896_v13 = vpop.f32.mrb[157].mxu0  ;;  %4662 = vmatpush3.bf16.msra.mxu1 %v6248_v32 }
 0x219   :  { %v4663_v30 = vpack.c.bf16 %v2550_v45, %v2549_v40  ;;  %v1897_v22 = vadd.f32 %v6301_v36, %v1896_v13  ;;  %6448 = vst [vmem:[#allocation3_spill] sm:$0xff] %v6323_v33  ;;  %v2660_v45 = vadd.s32 1024, %v5458_v42  ;;  %v2663_v40 = vadd.s32 1408, %v5458_v42 }
 0x21a   :  { %v2552_v9 = vmax.f32 %v1902_v31, 0.0 }
 0x21b   :  { %v2551_v28 = vmax.f32 %v1897_v22, 0.0  ;;  %v4362_v25 = vpop.f32.mrb[158].mxu0  ;;  %4664 = vmatprep.subr.bf16.mxu1 %v4663_v30  ;;  %vm2679_vm12 = vcmp.ge.s32.totalorder %v2660_v45, %v5460_v43  ;;  %vm2696_vm13 = vcmp.lt.s32.totalorder %v2660_v45, %v5474_v48  ;;  %vm2682_vm14 = vcmp.ge.s32.totalorder %v2663_v40, %v5460_v43 }
 0x21c   :  { %v1912_v61 = vadd.f32 %v6301_v36, %v4362_v25  ;;  %v1906_v19 = vpop.f32.mrb[159].mxu0  ;;  %4666 = vmatpush3.bf16.msra.mxu1 %v6256_v47  ;;  %vm2699_vm15 = vcmp.lt.s32.totalorder %v2663_v40, %v5474_v48  ;;  %vm2712_vm0 = vmand %vm2679_vm12, %vm2696_vm13 }
 0x21d   :  { %v4667_v32 = vpack.c.bf16 %v2552_v9, %v2551_v28  ;;  %v1907_v41 = vadd.f32 %v6301_v36, %v1906_v19  ;;  %vm2715_vm1 = vmand %vm2682_vm14, %vm2699_vm15 }
 0x21e   :  { %v2554_v44 = vmax.f32 %v1912_v61, 0.0 }
 0x21f   :  { %v2553_v4 = vmax.f32 %v1907_v41, 0.0  ;;  %v4365_v60 = vpop.f32.mrb[160].mxu0  ;;  %4668 = vmatprep.subr.bf16.mxu1 %v4667_v32 }
 0x220   :  { %v1922_v26 = vadd.f32 %v6301_v36, %v4365_v60  ;;  %v1916_v31 = vpop.f32.mrb[161].mxu0  ;;  %4670 = vmatpush3.bf16.msra.mxu1 %v6264_v54 }
 0x221   :  { %v4671_v13 = vpack.c.bf16 %v2554_v44, %v2553_v4  ;;  %v1917_v0 = vadd.f32 %v6301_v36, %v1916_v31 }
 0x222   :  { %v2556_v47 = vmax.f32 %v1922_v26, 0.0 }
 0x223   :  { %v2555_v20 = vmax.f32 %v1917_v0, 0.0  ;;  %v4368_v30 = vpop.f32.mrb[162].mxu0  ;;  %4672 = vmatprep.subr.bf16.mxu1 %v4671_v13 }
 0x224   :  { %v1932_v22 = vadd.f32 %v6301_v36, %v4368_v30  ;;  %v1926_v39 = vpop.f32.mrb[163].mxu0  ;;  %4674 = vmatpush3.bf16.msra.mxu1 %v6272_v53 }
 0x225   :  { %v6339_v54 = vpack.c.bf16 %v2556_v47, %v2555_v20  ;;  %v1927_v9 = vadd.f32 %v6301_v36, %v1926_v39 }
 0x226   :  { %v2558_v28 = vmax.f32 %v1932_v22, 0.0 }
 0x227   :  { %v2557_v25 = vmax.f32 %v1927_v9, 0.0  ;;  %v4371_v61 = vpop.f32.mrb[164].mxu0  ;;  %3568 = vmatmul.mubr.msk.f32.vlgmr.msra.gmra.mrb[78].mxu1 %vm2712_vm0, %v6445_v51 }
 0x228   :  { %v1942_v19 = vadd.f32 %v6301_v36, %v4371_v61  ;;  %v1936_v32 = vpop.f32.mrb[165].mxu0  ;;  %3569 = vmatprep.mubr.msk.f32.mxu1 %vm2715_vm1, %v6445_v51  ;;  %vm3296_vm1 = vcmask 130048  }
 0x229   :  { %v6345_v41 = vpack.c.bf16 %v2558_v28, %v2557_v25  ;;  %v1937_v53 = vadd.f32 %v6301_v36, %v1936_v32 }
 0x22a   :  { %v2560_v45 = vmax.f32 %v1942_v19, 0.0 }
 0x22b   :  { %v2559_v44 = vmax.f32 %v1937_v53, 0.0  ;;  %v4374_v40 = vpop.f32.mrb[166].mxu0 }
 0x22c   :  { %v1952_v4 = vadd.f32 %v6301_v36, %v4374_v40  ;;  %v1946_v60 = vpop.f32.mrb[167].mxu0 }
 0x22d   :  { %v6349_v26 = vpack.c.bf16 %v2560_v45, %v2559_v44  ;;  %v1947_v31 = vadd.f32 %v6301_v36, %v1946_v60 }
 0x22e   :  { %v2562_v13 = vmax.f32 %v1952_v4, 0.0 }
 0x22f   :  { %v2561_v0 = vmax.f32 %v1947_v31, 0.0  ;;  %v4377_v47 = vpop.f32.mrb[168].mxu0 }
 0x230   :  { %v1962_v20 = vadd.f32 %v6301_v36, %v4377_v47  ;;  %v1956_v30 = vpop.f32.mrb[169].mxu0 }
 0x231   :  { %v6353_v22 = vpack.c.bf16 %v2562_v13, %v2561_v0  ;;  %v1957_v39 = vadd.f32 %v6301_v36, %v1956_v30 }
 0x232   :  { %v2564_v9 = vmax.f32 %v1962_v20, 0.0 }
 0x233   :  { %v2563_v28 = vmax.f32 %v1957_v39, 0.0  ;;  %v4380_v25 = vpop.f32.mrb[170].mxu0 }
 0x234   :  { %v1972_v61 = vadd.f32 %v6301_v36, %v4380_v25  ;;  %v1966_v19 = vpop.f32.mrb[171].mxu0 }
 0x235   :  { %v6357_v32 = vpack.c.bf16 %v2564_v9, %v2563_v28  ;;  %v1967_v53 = vadd.f32 %v6301_v36, %v1966_v19 }
 0x236   :  { %v2566_v45 = vmax.f32 %v1972_v61, 0.0 }
 0x237   :  { %v2565_v44 = vmax.f32 %v1967_v53, 0.0  ;;  %v4383_v40 = vpop.f32.mrb[172].mxu0 }
 0x238   :  { %v1982_v4 = vadd.f32 %v6301_v36, %v4383_v40  ;;  %v1976_v60 = vpop.f32.mrb[173].mxu0 }
 0x239   :  { %v4697_v31 = vpack.c.bf16 %v2566_v45, %v2565_v44  ;;  %v1977_v13 = vadd.f32 %v6301_v36, %v1976_v60 }
 0x23a   :  { %v2568_v0 = vmax.f32 %v1982_v4, 0.0  ;;  %v3902_v47 = vpop.f32.mrb[72].mxu1 }
 0x23b   :  { %v2567_v20 = vmax.f32 %v1977_v13, 0.0  ;;  %v4386_v30 = vpop.f32.mrb[174].mxu0  ;;  %v3903_v39 = vpop.f32.mrb[73].mxu1 }
 0x23c   :  { %v1992_v25 = vadd.f32 %v6301_v36, %v4386_v30  ;;  %v1986_v9 = vpop.f32.mrb[175].mxu0  ;;  %v3904_v28 = vadd.f32 %v3903_v39, %v3902_v47 }
 0x23d   :  { %v4701_v51 = vpack.c.bf16 %v2568_v0, %v2567_v20  ;;  %v1987_v61 = vadd.f32 %v6301_v36, %v1986_v9 }
 0x23e   :  { %v2570_v19 = vmax.f32 %v1992_v25, 0.0  ;;  %v6365_v53 = vadd.f32 %v3904_v28, %v6321_v15 }
 0x23f   :  { %v2569_v40 = vmax.f32 %v1987_v61, 0.0  ;;  %v4389_v45 = vpop.f32.mrb[176].mxu0 }
 0x240   :  { %v2002_v44 = vadd.f32 %v6301_v36, %v4389_v45  ;;  %v1996_v4 = vpop.f32.mrb[177].mxu0 }
 0x241   :  { %v4705_v60 = vpack.c.bf16 %v2570_v19, %v2569_v40  ;;  %v1997_v13 = vadd.f32 %v6301_v36, %v1996_v4 }
 0x242   :  { %v2572_v38 = vmax.f32 %v2002_v44, 0.0 }
 0x243   :  { %v2571_v33 = vmax.f32 %v1997_v13, 0.0  ;;  %v4392_v30 = vpop.f32.mrb[178].mxu0 }
 0x244   :  { %v2012_v47 = vadd.f32 %v6301_v36, %v4392_v30  ;;  %v2006_v0 = vpop.f32.mrb[179].mxu0 }
 0x245   :  { %v4675_v20 = vpack.c.bf16 %v2572_v38, %v2571_v33  ;;  %v2007_v39 = vadd.f32 %v6301_v36, %v2006_v0 }
 0x246   :  { %v2574_v25 = vmax.f32 %v2012_v47, 0.0 }
 0x247   :  { %v2573_v15 = vmax.f32 %v2007_v39, 0.0  ;;  %v4395_v9 = vpop.f32.mrb[180].mxu0  ;;  %4676 = vmatprep.subr.bf16.mxu1 %v4675_v20 }
 0x248   :  { %v2022_v28 = vadd.f32 %v6301_v36, %v4395_v9  ;;  %v2016_v61 = vpop.f32.mrb[181].mxu0  ;;  %4678 = vmatpush3.bf16.msra.mxu1 %v6339_v54 }
 0x249   :  { %v4679_v19 = vpack.c.bf16 %v2574_v25, %v2573_v15  ;;  %v2017_v40 = vadd.f32 %v6301_v36, %v2016_v61  ;;  %v2662_v61 = vadd.s32 1280, %v5458_v42 }
 0x24a   :  { %v2576_v45 = vmax.f32 %v2022_v28, 0.0 }
 0x24b   :  { %v2575_v44 = vmax.f32 %v2017_v40, 0.0  ;;  %v4398_v4 = vpop.f32.mrb[182].mxu0  ;;  %4680 = vmatprep.subr.bf16.mxu1 %v4679_v19  ;;  %vm2681_vm2 = vcmp.ge.s32.totalorder %v2662_v61, %v5460_v43  ;;  %vm2698_vm3 = vcmp.lt.s32.totalorder %v2662_v61, %v5474_v48 }
 0x24c   :  { %v2032_v38 = vadd.f32 %v6301_v36, %v4398_v4  ;;  %v2026_v33 = vpop.f32.mrb[183].mxu0  ;;  %4682 = vmatpush3.bf16.msra.mxu1 %v6345_v41  ;;  %vm2714_vm6 = vmand %vm2681_vm2, %vm2698_vm3 }
 0x24d   :  { %v4683_v13 = vpack.c.bf16 %v2576_v45, %v2575_v44  ;;  %v2027_v30 = vadd.f32 %v6301_v36, %v2026_v33 }
 0x24e   :  { %v2578_v47 = vmax.f32 %v2032_v38, 0.0 }
 0x24f   :  { %v2577_v0 = vmax.f32 %v2027_v30, 0.0  ;;  %v4401_v20 = vpop.f32.mrb[184].mxu0  ;;  %4684 = vmatprep.subr.bf16.mxu1 %v4683_v13 }
 0x250   :  { %v2042_v54 = vadd.f32 %v6301_v36, %v4401_v20  ;;  %v2036_v39 = vpop.f32.mrb[185].mxu0  ;;  %4686 = vmatpush3.bf16.msra.mxu1 %v6349_v26  ;;  %v2665_v26 = vadd.s32 1664, %v5458_v42 }
 0x251   :  { %v4687_v25 = vpack.c.bf16 %v2578_v47, %v2577_v0  ;;  %v2037_v15 = vadd.f32 %v6301_v36, %v2036_v39 }
 0x252   :  { %v2580_v9 = vmax.f32 %v2042_v54, 0.0  ;;  %vm2684_vm4 = vcmp.ge.s32.totalorder %v2665_v26, %v5460_v43  ;;  %vm2701_vm5 = vcmp.lt.s32.totalorder %v2665_v26, %v5474_v48 }
 0x253   :  { %v2579_v28 = vmax.f32 %v2037_v15, 0.0  ;;  %4688 = vmatprep.subr.bf16.mxu1 %v4687_v25  ;;  %vm2717_vm7 = vmand %vm2684_vm4, %vm2701_vm5 }
 0x254   :  { %4690 = vmatpush3.bf16.msra.mxu1 %v6353_v22 }
 0x255   :  { %v4691_v41 = vpack.c.bf16 %v2580_v9, %v2579_v28 }
 0x257   :  { %4692 = vmatprep.subr.bf16.mxu1 %v4691_v41 }
 0x258   :  { %4694 = vmatpush3.bf16.msra.mxu1 %v6357_v32 }
 0x259   :  { %4696 = vmatprep.subr.bf16.mxu1 %v6034_v35  ;;  %v6449_v35 = vmov 0.00390625  }
 0x25c   :  { %4698 = vmatpush3.bf16.msra.mxu1 %v4697_v31 }
 0x25d   :  { %4700 = vmatprep.subr.bf16.mxu1 %v6041_v23 }
 0x260   :  { %4702 = vmatpush3.bf16.msra.mxu1 %v4701_v51 }
 0x261   :  { %4704 = vmatprep.subr.bf16.mxu1 %v6049_v2 }
 0x264   :  { %4706 = vmatpush3.bf16.msra.mxu1 %v4705_v60 }
 0x265   :  { %4708 = vmatprep.subr.bf16.mxu1 %v6132_v1 }
 0x267   :  { %3570 = vmatmul.mubr.msk.f32.vlgmr.msra.gmra.mrb[80].mxu1 %vm2714_vm6, %v6449_v35 }
 0x268   :  { %4710 = vmatpush3.bf16.msra.mxu1 %v6058_v55  ;;  %3571 = vmatprep.mubr.msk.f32.mxu1 %vm2717_vm7, %v6449_v35  ;;  %v2664_v55 = vadd.s32 1536, %v5458_v42 }
 0x269   :  { %4712 = vmatprep.subr.bf16.mxu1 %v6140_v52 }
 0x26a   :  { %vm2683_vm8 = vcmp.ge.s32.totalorder %v2664_v55, %v5460_v43  ;;  %vm2700_vm9 = vcmp.lt.s32.totalorder %v2664_v55, %v5474_v48 }
 0x26b   :  { %vm2716_vm12 = vmand %vm2683_vm8, %vm2700_vm9 }
 0x26c   :  { %4714 = vmatpush3.bf16.msra.mxu1 %v6070_v5 }
 0x26d   :  { %4716 = vmatprep.subr.bf16.mxu1 %v6147_v12 }
 0x270   :  { %4718 = vmatpush3.bf16.msra.mxu1 %v6084_v24  ;;  %v2667_v24 = vadd.s32 1920, %v5458_v42 }
 0x271   :  { %4720 = vmatprep.subr.bf16.mxu1 %v6154_v3 }
 0x272   :  { %vm2686_vm10 = vcmp.ge.s32.totalorder %v2667_v24, %v5460_v43  ;;  %vm2703_vm11 = vcmp.lt.s32.totalorder %v2667_v24, %v5474_v48 }
 0x273   :  { %vm2719_vm13 = vmand %vm2686_vm10, %vm2703_vm11 }
 0x274   :  { %4722 = vmatpush3.bf16.msra.mxu1 %v6092_v37  ;;  %v2666_v37 = vadd.s32 1792, %v5458_v42 }
 0x275   :  { %4724 = vmatprep.subr.bf16.mxu1 %v6161_v27 }
 0x276   :  { %vm2685_vm14 = vcmp.ge.s32.totalorder %v2666_v37, %v5460_v43  ;;  %vm2702_vm15 = vcmp.lt.s32.totalorder %v2666_v37, %v5474_v48 }
 0x277   :  { %vm2718_vm0 = vmand %vm2685_vm14, %vm2702_vm15 }
 0x278   :  { %4726 = vmatpush3.bf16.msra.mxu1 %v6100_v57  ;;  %v6450_v57 = vld [vmem:[#allocation3_spill] sm:$0xff] }
 0x279   :  { %4728 = vmatprep.subr.bf16.mxu1 %v6168_v49 }
 0x27a   :  { %v3937_v51 = vpop.f32.mrb[74].mxu1 }
 0x27b   :  { %v3938_v23 = vpop.f32.mrb[75].mxu1 }
 0x27c   :  { %4730 = vmatpush3.bf16.msra.mxu1 %v6108_v8  ;;  %v3939_v2 = vadd.f32 %v3938_v23, %v3937_v51  ;;  %v6451_v8 = vld [vmem:[#allocation2_spill] sm:$0xff] }
 0x27d   :  { %4732 = vmatprep.subr.bf16.mxu1 %v6177_v14 }
 0x27e   :  { %v2943_v5 = vadd.f32 %v3939_v2, %v6365_v53 }
 0x280   :  { %4734 = vmatpush3.bf16.msra.mxu1 %v6116_v56 }
 0x281   :  { %4736 = vmatprep.subr.bf16.mxu1 %v6181_v29 }
 0x284   :  { %4738 = vmatpush3.bf16.msra.mxu1 %v6124_v11 }
 0x285   :  { %4740 = vmatprep.subr.bf16.mxu1 %v6268_v6 }
 0x287   :  { %3572 = vmatmul.mubr.msk.f32.vlgmr.msra.gmra.mrb[82].mxu1 %vm2716_vm12, %v6449_v35 }
 0x288   :  { %4742 = vmatpush3.bf16.msra.mxu1 %v6190_v21  ;;  %3573 = vmatprep.mubr.msk.f32.mxu1 %vm2719_vm13, %v6449_v35 }
 0x289   :  { %4744 = vmatprep.subr.bf16.mxu1 %v6276_v18 }
 0x28c   :  { %4746 = vmatpush3.bf16.msra.mxu1 %v6201_v7 }
 0x28d   :  { %4748 = vmatprep.subr.bf16.mxu1 %v6282_v16 }
 0x290   :  { %4750 = vmatpush3.bf16.msra.mxu1 %v6219_v34 }
 0x291   :  { %4752 = vmatprep.subr.bf16.mxu1 %v6289_v63 }
 0x294   :  { %4754 = vmatpush3.bf16.msra.mxu1 %v6228_v59 }
 0x295   :  { %4756 = vmatprep.subr.bf16.mxu1 %v6296_v58 }
 0x298   :  { %4758 = vmatpush3.bf16.msra.mxu1 %v6236_v46 }
 0x299   :  { %4760 = vmatprep.subr.bf16.mxu1 %v6308_v50 }
 0x29c   :  { %4762 = vmatpush3.bf16.msra.mxu1 %v6244_v62 }
 0x29d   :  { %4764 = vmatprep.subr.bf16.mxu1 %v6315_v17 }
 0x2a0   :  { %4766 = vmatpush3.bf16.msra.mxu1 %v6252_v10 }
 0x2a1   :  { %4768 = vmatprep.subr.bf16.mxu1 %v6450_v57 }
 0x2a4   :  { %4770 = vmatpush3.bf16.msra.mxu1 %v6451_v8 }
 0x2a7   :  { %3574 = vmatmul.mubr.msk.f32.vlgmr.msra.gmra.mrb[84].mxu1 %vm2718_vm0, %v6449_v35 }
 0x2ba   :  { %v3972_v56 = vpop.f32.mrb[76].mxu1 }
 0x2bb   :  { %v3973_v11 = vpop.f32.mrb[77].mxu1 }
 0x2bc   :  { %v3974_v1 = vadd.f32 %v3973_v11, %v3972_v56 }
 0x2be   :  { %v3013_v52 = vadd.f32 %v3974_v1, %v2943_v5 }
 0x2fa   :  { %v4007_v12 = vpop.f32.mrb[78].mxu1 }
 0x2fb   :  { %v4008_v3 = vpop.f32.mrb[79].mxu1 }
 0x2fc   :  { %v4009_v42 = vadd.f32 %v4008_v3, %v4007_v12 }
 0x2fe   :  { %v3083_v27 = vadd.f32 %v4009_v42, %v3013_v52 }
 0x33a   :  { %v4042_v49 = vpop.f32.mrb[80].mxu1 }
 0x33b   :  { %v4043_v14 = vpop.f32.mrb[81].mxu1 }
 0x33c   :  { %v4044_v29 = vadd.f32 %v4043_v14, %v4042_v49 }
 0x33e   :  { %v3153_v21 = vadd.f32 %v4044_v29, %v3083_v27 }
 0x35a   :  { %v4077_v43 = vpop.f32.mrb[82].mxu1 }
 0x35b   :  { %v4078_v7 = vpop.f32.mrb[83].mxu1 }
 0x35c   :  { %v4079_v48 = vadd.f32 %v4078_v7, %v4077_v43 }
 0x35e   :  { %v3223_v34 = vadd.f32 %v4079_v48, %v3153_v21 }
 0x37a   :  { %v4112_v59 = vpop.f32.mrb[84].mxu1 }
 0x37b   :  { %v4113_v46 = vpop.f32.mrb[85].mxu1 }
 0x37c   :  { %v4114_v62 = vadd.f32 %v4113_v46, %v4112_v59 }
 0x37e   :  { %v3293_v10 = vadd.f32 %v4114_v62, %v3223_v34 }
 0x380   :  { %3297 = vst.msk [vmem:[%s6444_s3] sm:$0xff] %vm3296_vm1, %v3293_v10 }

// kernel: pairwise_model_forward.3
= control target key start
LH: loop header
LB: loop body
LE: loop exit
PB: predicated region body
PF: predicated region fallthrough
CT: control target
= control target key end

     0   :  { %v5854_v3 = vmov 0   ;;  %vm307_vm0 = vcmask 261120   ;;  %vm4464_vm1 = vcmask 7168   ;;  %s7687_s1 = inlined_call_operand.vmem [shape: bf16[32,2048], index: 1, kind: input, shape index: {}]   ;;  %s7688_s0 = inlined_call_operand.vmem [shape: f32[8,32], index: 0, kind: input, shape index: {}]   ;;  %s7689_s3 = inlined_call_operand.vmem [shape: bf16[2048,512], index: 3, kind: input, shape index: {}]   ;;  %s7690_s2 = inlined_call_operand.vmem [shape: f32[1,2048], index: 2, kind: input, shape index: {}]   ;;  %s7691_s6 = inlined_call_operand.<no memory space> [shape: f32[1,1], index: 6, kind: input, shape index: {}]   ;;  %s7692_s4 = inlined_call_operand.vmem [shape: f32[1,512], index: 4, kind: input, shape index: {}]   ;;  %s7693_s5 = inlined_call_operand.vmem [shape: f32[1,512], index: 5, kind: input, shape index: {}]   ;;  %s7694_s7 = inlined_call_operand.vmem [shape: f32[8,1], index: 7, kind: output, shape index: {}]  }
   0x1   :  { %v31_v0 = vld [vmem:[%s7687_s1] sm:$0xff]  ;;  %343 = vmatprep.mubr.bf16.mxu0 %v5854_v3  ;;  %384 = vmatprep.mubr.bf16.mxu1 %v5854_v3  ;;  %v32_v7 = vld [vmem:[%s7687_s1 + $0x8] sm:$0xff]  ;;  %v33_v15 = vld [vmem:[%s7687_s1 + $0x10] sm:$0xff] }
   0x2   :  { %v39_v1 = vld [vmem:[%s7687_s1 + $0x40] sm:$0xff]  ;;  %v40_v9 = vld [vmem:[%s7687_s1 + $0x48] sm:$0xff]  ;;  %v41_v16 = vld [vmem:[%s7687_s1 + $0x50] sm:$0xff] }
   0x3   :  { %v47_v2 = vld [vmem:[%s7687_s1 + $0x80] sm:$0xff]  ;;  %v4471_v4 = vcombine.high %v31_v0, %v39_v1  ;;  %v4470_v5 = vcombine.low %v31_v0, %v39_v1  ;;  %v48_v10 = vld [vmem:[%s7687_s1 + $0x88] sm:$0xff]  ;;  %v4473_v12 = vcombine.high %v32_v7, %v40_v9  ;;  %v4472_v13 = vcombine.low %v32_v7, %v40_v9  ;;  %v34_v19 = vld [vmem:[%s7687_s1 + $0x18] sm:$0xff] }
   0x4   :  { %v55_v6 = vld [vmem:[%s7687_s1 + $0xc0] sm:$0xff]  ;;  %v56_v11 = vld [vmem:[%s7687_s1 + $0xc8] sm:$0xff]  ;;  %v42_v20 = vld [vmem:[%s7687_s1 + $0x58] sm:$0xff]  ;;  %v4475_v21 = vcombine.high %v33_v15, %v41_v16  ;;  %v4474_v27 = vcombine.low %v33_v15, %v41_v16 }
   0x5   :  { %v4487_v8 = vcombine.high %v47_v2, %v55_v6  ;;  %311 = vmatprep.subr.bf16.mxu0 %v4471_v4  ;;  %v4489_v14 = vcombine.high %v48_v10, %v56_v11  ;;  %v4486_v17 = vcombine.low %v47_v2, %v55_v6  ;;  %v29_v18 = vld [vmem:[%s7688_s0] sm:$0xff]  ;;  %352 = vmatprep.subr.bf16.mxu1 %v4473_v12  ;;  %v49_v23 = vld [vmem:[%s7687_s1 + $0x90] sm:$0xff]  ;;  %v50_v28 = vld [vmem:[%s7687_s1 + $0x98] sm:$0xff] }
   0x6   :  { %312 = vmatpush1.bf16.msra.mxu0 %v4470_v5  ;;  %353 = vmatpush1.bf16.msra.mxu1 %v4472_v13  ;;  %v4488_v22 = vcombine.low %v48_v10, %v56_v11  ;;  %v57_v24 = vld [vmem:[%s7687_s1 + $0xd0] sm:$0xff]  ;;  %v5942_v25 = vpack.c.bf16 %v29_v18, %v29_v18  ;;  %v4477_v26 = vcombine.high %v34_v19, %v42_v20  ;;  %v58_v29 = vld [vmem:[%s7687_s1 + $0xd8] sm:$0xff]  ;;  %v35_v32 = vld [vmem:[%s7687_s1 + $0x20] sm:$0xff] }
   0x7   :  { %313 = vmatprep.subr.bf16.mxu0 %v4487_v8  ;;  %354 = vmatprep.subr.bf16.mxu1 %v4489_v14  ;;  %v4491_v30 = vcombine.high %v49_v23, %v57_v24  ;;  %v4476_v31 = vcombine.low %v34_v19, %v42_v20  ;;  %v43_v33 = vld [vmem:[%s7687_s1 + $0x60] sm:$0xff]  ;;  %v4493_v34 = vcombine.high %v50_v28, %v58_v29  ;;  %v36_v35 = vld [vmem:[%s7687_s1 + $0x28] sm:$0xff]  ;;  %v37_v48 = vld [vmem:[%s7687_s1 + $0x30] sm:$0xff] }
   0x8   :  { %v4490_v36 = vcombine.low %v49_v23, %v57_v24  ;;  %v44_v37 = vld [vmem:[%s7687_s1 + $0x68] sm:$0xff]  ;;  %v4479_v38 = vcombine.high %v35_v32, %v43_v33  ;;  %v4492_v39 = vcombine.low %v50_v28, %v58_v29  ;;  %v51_v40 = vld [vmem:[%s7687_s1 + $0xa0] sm:$0xff]  ;;  %v4478_v44 = vcombine.low %v35_v32, %v43_v33  ;;  %v45_v49 = vld [vmem:[%s7687_s1 + $0x70] sm:$0xff] }
   0x9   :  { %v59_v41 = vld [vmem:[%s7687_s1 + $0xe0] sm:$0xff]  ;;  %v4481_v42 = vcombine.high %v36_v35, %v44_v37  ;;  %v52_v43 = vld [vmem:[%s7687_s1 + $0xa8] sm:$0xff]  ;;  %v4480_v47 = vcombine.low %v36_v35, %v44_v37  ;;  %v38_v51 = vld [vmem:[%s7687_s1 + $0x38] sm:$0xff]  ;;  %v4483_v54 = vcombine.high %v37_v48, %v45_v49  ;;  %v4482_v60 = vcombine.low %v37_v48, %v45_v49 }
   0xa   :  { %314 = vmatpush1.bf16.msra.mxu0 %v4486_v17  ;;  %355 = vmatpush1.bf16.msra.mxu1 %v4488_v22  ;;  %v60_v45 = vld [vmem:[%s7687_s1 + $0xe8] sm:$0xff]  ;;  %v4495_v46 = vcombine.high %v51_v40, %v59_v41  ;;  %v4494_v52 = vcombine.low %v51_v40, %v59_v41  ;;  %v46_v53 = vld [vmem:[%s7687_s1 + $0x78] sm:$0xff]  ;;  %v53_v56 = vld [vmem:[%s7687_s1 + $0xb0] sm:$0xff] }
   0xb   :  { %393 = vmatprep.subr.bf16.mxu0 %v4475_v21  ;;  %434 = vmatprep.subr.bf16.mxu1 %v4477_v26  ;;  %v4497_v50 = vcombine.high %v52_v43, %v60_v45  ;;  %v4496_v55 = vcombine.low %v52_v43, %v60_v45  ;;  %v61_v57 = vld [vmem:[%s7687_s1 + $0xf0] sm:$0xff]  ;;  %v4485_v58 = vcombine.high %v38_v51, %v46_v53  ;;  %v54_v59 = vld [vmem:[%s7687_s1 + $0xb8] sm:$0xff] }
   0xc   :  { %v62_v61 = vld [vmem:[%s7687_s1 + $0xf8] sm:$0xff]  ;;  %v4499_v62 = vcombine.high %v53_v56, %v61_v57  ;;  %v4484_v63 = vcombine.low %v38_v51, %v46_v53  ;;  %v4498_v1 = vcombine.low %v53_v56, %v61_v57  ;;  %v5086_v2 = vld [vmem:[%s7689_s3 + $0x4] ss:$16 sps:$4 sm:$0xff]   ;;  %v5084_v6 = vld [vmem:[%s7689_s3] ss:$16 sps:$4 sm:$0xff]  }
   0xd   :  { %4502 = vmatmul.mubr.msk.bf16.vlgmr.msra.gmra.mrb[0].mxu0 %vm307_vm0, %v5942_v25  ;;  %4503 = vmatmul.mubr.msk.bf16.vlgmr.msra.gmra.mrb[0].mxu1 %vm307_vm0, %v5942_v25  ;;  %v4501_v0 = vcombine.high %v54_v59, %v62_v61  ;;  %v4500_v4 = vcombine.low %v54_v59, %v62_v61  ;;  %v5089_v5 = vld [vmem:[%s7689_s3 + $0xc] ss:$16 sps:$4 sm:$0xff]   ;;  %v5092_v7 = vld [vmem:[%s7689_s3 + $0x24] ss:$16 sps:$4 sm:$0xff]   ;;  %v5090_v9 = vld [vmem:[%s7689_s3 + $0x20] ss:$16 sps:$4 sm:$0xff]  }
   0xe   :  { %394 = vmatpush1.bf16.msra.mxu0 %v4474_v27  ;;  %425 = vmatprep.mubr.bf16.mxu0 %v5854_v3  ;;  %v5095_v8 = vld [vmem:[%s7689_s3 + $0x2c] ss:$16 sps:$4 sm:$0xff]   ;;  %v5098_v10 = vld [vmem:[%s7689_s3 + $0x44] ss:$16 sps:$4 sm:$0xff]   ;;  %v5093_v11 = vld [vmem:[%s7689_s3 + $0x28] ss:$16 sps:$4 sm:$0xff]  }
   0xf   :  { %395 = vmatprep.subr.bf16.mxu0 %v4491_v30  ;;  %435 = vmatpush1.bf16.msra.mxu1 %v4476_v31  ;;  %v5101_v12 = vld [vmem:[%s7689_s3 + $0x4c] ss:$16 sps:$4 sm:$0xff]   ;;  %v5096_v13 = vld [vmem:[%s7689_s3 + $0x40] ss:$16 sps:$4 sm:$0xff]   ;;  %v5104_v14 = vld [vmem:[%s7689_s3 + $0x64] ss:$16 sps:$4 sm:$0xff]  }
  0x10   :  { %466 = vmatprep.mubr.bf16.mxu1 %v5854_v3  ;;  %436 = vmatprep.subr.bf16.mxu1 %v4493_v34  ;;  %v5099_v15 = vld [vmem:[%s7689_s3 + $0x48] ss:$16 sps:$4 sm:$0xff]   ;;  %v5107_v16 = vld [vmem:[%s7689_s3 + $0x6c] ss:$16 sps:$4 sm:$0xff]   ;;  %v5102_v17 = vld [vmem:[%s7689_s3 + $0x60] ss:$16 sps:$4 sm:$0xff]  }
  0x11   :  { %v5110_v18 = vld [vmem:[%s7689_s3 + $0x84] ss:$16 sps:$4 sm:$0xff]   ;;  %v5105_v19 = vld [vmem:[%s7689_s3 + $0x68] ss:$16 sps:$4 sm:$0xff]   ;;  %v5108_v20 = vld [vmem:[%s7689_s3 + $0x80] ss:$16 sps:$4 sm:$0xff]  }
  0x12   :  { %396 = vmatpush1.bf16.msra.mxu0 %v4490_v36  ;;  %v5113_v21 = vld [vmem:[%s7689_s3 + $0x8c] ss:$16 sps:$4 sm:$0xff]   ;;  %v5111_v22 = vld [vmem:[%s7689_s3 + $0x88] ss:$16 sps:$4 sm:$0xff]   ;;  %v5116_v23 = vld [vmem:[%s7689_s3 + $0xa4] ss:$16 sps:$4 sm:$0xff]  }
  0x13   :  { %475 = vmatprep.subr.bf16.mxu0 %v4479_v38  ;;  %437 = vmatpush1.bf16.msra.mxu1 %v4492_v39  ;;  %v5119_v24 = vld [vmem:[%s7689_s3 + $0xac] ss:$16 sps:$4 sm:$0xff]   ;;  %v5122_v26 = vld [vmem:[%s7689_s3 + $0xc4] ss:$16 sps:$4 sm:$0xff]   ;;  %v5117_v27 = vld [vmem:[%s7689_s3 + $0xa8] ss:$16 sps:$4 sm:$0xff]  }
  0x14   :  { %516 = vmatprep.subr.bf16.mxu1 %v4481_v42  ;;  %v5125_v28 = vld [vmem:[%s7689_s3 + $0xcc] ss:$16 sps:$4 sm:$0xff]   ;;  %v5120_v29 = vld [vmem:[%s7689_s3 + $0xc0] ss:$16 sps:$4 sm:$0xff]   ;;  %v5128_v30 = vld [vmem:[%s7689_s3 + $0xe4] ss:$16 sps:$4 sm:$0xff]  }
  0x15   :  { %4504 = vmatmul.mubr.msk.bf16.vlgmr.msra.gmra.mrb[4].mxu0 %vm307_vm0, %v5942_v25  ;;  %v5123_v31 = vld [vmem:[%s7689_s3 + $0xc8] ss:$16 sps:$4 sm:$0xff]   ;;  %v5131_v32 = vld [vmem:[%s7689_s3 + $0xec] ss:$16 sps:$4 sm:$0xff]   ;;  %v5126_v33 = vld [vmem:[%s7689_s3 + $0xe0] ss:$16 sps:$4 sm:$0xff]  }
  0x16   :  { %476 = vmatpush1.bf16.msra.mxu0 %v4478_v44  ;;  %507 = vmatprep.mubr.bf16.mxu0 %v5854_v3  ;;  %v5134_v34 = vld [vmem:[%s7689_s3 + $0x104] ss:$16 sps:$4 sm:$0xff]   ;;  %v5129_v35 = vld [vmem:[%s7689_s3 + $0xe8] ss:$16 sps:$4 sm:$0xff]   ;;  %v5137_v36 = vld [vmem:[%s7689_s3 + $0x10c] ss:$16 sps:$4 sm:$0xff]  }
  0x17   :  { %4505 = vmatmul.mubr.msk.bf16.vlgmr.msra.gmra.mrb[4].mxu1 %vm307_vm0, %v5942_v25  ;;  %477 = vmatprep.subr.bf16.mxu0 %v4495_v46  ;;  %v5132_v37 = vld [vmem:[%s7689_s3 + $0x100] ss:$16 sps:$4 sm:$0xff]   ;;  %v5140_v38 = vld [vmem:[%s7689_s3 + $0x124] ss:$16 sps:$4 sm:$0xff]   ;;  %v5135_v39 = vld [vmem:[%s7689_s3 + $0x108] ss:$16 sps:$4 sm:$0xff]  }
  0x18   :  { %517 = vmatpush1.bf16.msra.mxu1 %v4480_v47  ;;  %548 = vmatprep.mubr.bf16.mxu1 %v5854_v3  ;;  %v5143_v40 = vld [vmem:[%s7689_s3 + $0x12c] ss:$16 sps:$4 sm:$0xff]   ;;  %v5138_v41 = vld [vmem:[%s7689_s3 + $0x120] ss:$16 sps:$4 sm:$0xff]   ;;  %v5146_v42 = vld [vmem:[%s7689_s3 + $0x144] ss:$16 sps:$4 sm:$0xff]  }
  0x19   :  { %518 = vmatprep.subr.bf16.mxu1 %v4497_v50  ;;  %v5141_v43 = vld [vmem:[%s7689_s3 + $0x128] ss:$16 sps:$4 sm:$0xff]   ;;  %v5149_v44 = vld [vmem:[%s7689_s3 + $0x14c] ss:$16 sps:$4 sm:$0xff]   ;;  %v5144_v45 = vld [vmem:[%s7689_s3 + $0x140] ss:$16 sps:$4 sm:$0xff]  }
  0x1a   :  { %478 = vmatpush1.bf16.msra.mxu0 %v4494_v52  ;;  %v5152_v46 = vld [vmem:[%s7689_s3 + $0x164] ss:$16 sps:$4 sm:$0xff]   ;;  %v5147_v47 = vld [vmem:[%s7689_s3 + $0x148] ss:$16 sps:$4 sm:$0xff]   ;;  %v5155_v48 = vld [vmem:[%s7689_s3 + $0x16c] ss:$16 sps:$4 sm:$0xff]  }
  0x1b   :  { %557 = vmatprep.subr.bf16.mxu0 %v4483_v54  ;;  %v5150_v49 = vld [vmem:[%s7689_s3 + $0x160] ss:$16 sps:$4 sm:$0xff]   ;;  %v5158_v50 = vld [vmem:[%s7689_s3 + $0x184] ss:$16 sps:$4 sm:$0xff]   ;;  %v5153_v51 = vld [vmem:[%s7689_s3 + $0x168] ss:$16 sps:$4 sm:$0xff]  }
  0x1c   :  { %519 = vmatpush1.bf16.msra.mxu1 %v4496_v55  ;;  %v5161_v52 = vld [vmem:[%s7689_s3 + $0x18c] ss:$16 sps:$4 sm:$0xff]   ;;  %v5156_v53 = vld [vmem:[%s7689_s3 + $0x180] ss:$16 sps:$4 sm:$0xff]   ;;  %v5164_v54 = vld [vmem:[%s7689_s3 + $0x1a4] ss:$16 sps:$4 sm:$0xff]  }
  0x1d   :  { %4506 = vmatmul.mubr.msk.bf16.vlgmr.msra.gmra.mrb[8].mxu0 %vm307_vm0, %v5942_v25  ;;  %598 = vmatprep.subr.bf16.mxu1 %v4485_v58  ;;  %v5159_v55 = vld [vmem:[%s7689_s3 + $0x188] ss:$16 sps:$4 sm:$0xff]   ;;  %v5167_v56 = vld [vmem:[%s7689_s3 + $0x1ac] ss:$16 sps:$4 sm:$0xff]   ;;  %v5162_v57 = vld [vmem:[%s7689_s3 + $0x1a0] ss:$16 sps:$4 sm:$0xff]  }
  0x1e   :  { %558 = vmatpush1.bf16.msra.mxu0 %v4482_v60  ;;  %589 = vmatprep.mubr.bf16.mxu0 %v5854_v3  ;;  %v5165_v58 = vld [vmem:[%s7689_s3 + $0x1a8] ss:$16 sps:$4 sm:$0xff]   ;;  %v5170_v59 = vld [vmem:[%s7689_s3 + $0x1c4] ss:$16 sps:$4 sm:$0xff]   ;;  %v5173_v60 = vld [vmem:[%s7689_s3 + $0x1cc] ss:$16 sps:$4 sm:$0xff]  }
  0x1f   :  { %4507 = vmatmul.mubr.msk.bf16.vlgmr.msra.gmra.mrb[8].mxu1 %vm307_vm0, %v5942_v25  ;;  %559 = vmatprep.subr.bf16.mxu0 %v4499_v62  ;;  %v5168_v61 = vld [vmem:[%s7689_s3 + $0x1c0] ss:$16 sps:$4 sm:$0xff]   ;;  %v5171_v62 = vld [vmem:[%s7689_s3 + $0x1c8] ss:$16 sps:$4 sm:$0xff]  }
  0x20   :  { %599 = vmatpush1.bf16.msra.mxu1 %v4484_v63  ;;  %630 = vmatprep.mubr.bf16.mxu1 %v5854_v3  ;;  %v5087_v3 = vld [vmem:[%s7689_s3 + $0x8] ss:$16 sps:$4 sm:$0xff]   ;;  %v5176_v63 = vld [vmem:[%s7689_s3 + $0x1e4] ss:$16 sps:$4 sm:$0xff]  }
  0x21   :  { %600 = vmatprep.subr.bf16.mxu1 %v4501_v0  ;;  %v5179_v0 = vld [vmem:[%s7689_s3 + $0x1ec] ss:$16 sps:$4 sm:$0xff]  }
  0x22   :  { %560 = vmatpush1.bf16.msra.mxu0 %v4498_v1  ;;  %v5174_v1 = vld [vmem:[%s7689_s3 + $0x1e0] ss:$16 sps:$4 sm:$0xff]  }
  0x23   :  { %3765 = vmatprep.subr.bf16.mxu0 %v5086_v2  ;;  %v5177_v2 = vld [vmem:[%s7689_s3 + $0x1e8] ss:$16 sps:$4 sm:$0xff]  }
  0x24   :  { %601 = vmatpush1.bf16.msra.mxu1 %v4500_v4  ;;  %v5182_v4 = vld [vmem:[%s7689_s3 + $0x204] ss:$16 sps:$4 sm:$0xff]  }
  0x25   :  { %4508 = vmatmul.mubr.msk.bf16.vlgmr.msra.gmra.mrb[12].mxu0 %vm307_vm0, %v5942_v25  ;;  %4093 = vmatprep.subr.bf16.mxu1 %v5089_v5  ;;  %v5185_v5 = vld [vmem:[%s7689_s3 + $0x20c] ss:$16 sps:$4 sm:$0xff]  }
  0x26   :  { %3766 = vmatpush1.bf16.msra.mxu0 %v5084_v6  ;;  %v67_v6 = vlaneseq }
  0x27   :  { %4509 = vmatmul.mubr.msk.bf16.vlgmr.msra.gmra.mrb[12].mxu1 %vm307_vm0, %v5942_v25  ;;  %3767 = vmatprep.subr.bf16.mxu0 %v5092_v7  ;;  %v5114_v25 = vld [vmem:[%s7689_s3 + $0xa0] ss:$16 sps:$4 sm:$0xff]  }
  0x28   :  { %4094 = vmatpush1.bf16.msra.mxu1 %v5087_v3  ;;  %v6218_v7 = vshrl.u32 %v67_v6, 7 }
  0x29   :  { %4095 = vmatprep.subr.bf16.mxu1 %v5095_v8  ;;  %v6226_v8 = vld [vmem:[%s7690_s2] sm:$0xff] }
  0x2a   :  { %3768 = vmatpush1.bf16.msra.mxu0 %v5090_v9  ;;  %v6221_v3 = vsub.s32 0, %v6218_v7  ;;  %v6229_v9 = vsub.s32 1, %v6218_v7 }
  0x2b   :  { %3769 = vmatprep.subr.bf16.mxu0 %v5098_v10  ;;  %v6232_v10 = vsub.s32 3, %v6218_v7 }
  0x2c   :  { %4096 = vmatpush1.bf16.msra.mxu1 %v5093_v11  ;;  %v70_v11 = vrot.slane %v6226_v8, %v6221_v3 }
  0x2d   :  { %4097 = vmatprep.subr.bf16.mxu1 %v5101_v12  ;;  %v74_v12 = vrot.slane %v6226_v8, %v6229_v9 }
  0x2e   :  { %3770 = vmatpush1.bf16.msra.mxu0 %v5096_v13 }
  0x2f   :  { %3771 = vmatprep.subr.bf16.mxu0 %v5104_v14  ;;  %v82_v14 = vrot.slane %v6226_v8, %v6232_v10 }
  0x30   :  { %4098 = vmatpush1.bf16.msra.mxu1 %v5099_v15 }
  0x31   :  { %4099 = vmatprep.subr.bf16.mxu1 %v5107_v16 }
  0x32   :  { %3772 = vmatpush1.bf16.msra.mxu0 %v5102_v17 }
  0x33   :  { %3773 = vmatprep.subr.bf16.mxu0 %v5110_v18 }
  0x34   :  { %4100 = vmatpush1.bf16.msra.mxu1 %v5105_v19 }
  0x35   :  { %4101 = vmatprep.subr.bf16.mxu1 %v5113_v21 }
  0x36   :  { %3774 = vmatpush1.bf16.msra.mxu0 %v5108_v20 }
  0x37   :  { %3775 = vmatprep.subr.bf16.mxu0 %v5116_v23 }
  0x38   :  { %4102 = vmatpush1.bf16.msra.mxu1 %v5111_v22 }
  0x39   :  { %4103 = vmatprep.subr.bf16.mxu1 %v5119_v24  ;;  %v5180_v24 = vld [vmem:[%s7689_s3 + $0x200] ss:$16 sps:$4 sm:$0xff]  }
  0x3a   :  { %3776 = vmatpush1.bf16.msra.mxu0 %v5114_v25  ;;  %v5183_v25 = vld [vmem:[%s7689_s3 + $0x208] ss:$16 sps:$4 sm:$0xff]  }
  0x3b   :  { %3777 = vmatprep.subr.bf16.mxu0 %v5122_v26 }
  0x3c   :  { %4104 = vmatpush1.bf16.msra.mxu1 %v5117_v27 }
  0x3d   :  { %4105 = vmatprep.subr.bf16.mxu1 %v5125_v28 }
  0x3e   :  { %3778 = vmatpush1.bf16.msra.mxu0 %v5120_v29 }
  0x3f   :  { %3779 = vmatprep.subr.bf16.mxu0 %v5128_v30 }
  0x40   :  { %4106 = vmatpush1.bf16.msra.mxu1 %v5123_v31 }
  0x41   :  { %4107 = vmatprep.subr.bf16.mxu1 %v5131_v32  ;;  %v5188_v32 = vld [vmem:[%s7689_s3 + $0x224] ss:$16 sps:$4 sm:$0xff]  }
  0x42   :  { %3780 = vmatpush1.bf16.msra.mxu0 %v5126_v33  ;;  %v5191_v33 = vld [vmem:[%s7689_s3 + $0x22c] ss:$16 sps:$4 sm:$0xff]  }
  0x43   :  { %3781 = vmatprep.subr.bf16.mxu0 %v5134_v34  ;;  %v5186_v34 = vld [vmem:[%s7689_s3 + $0x220] ss:$16 sps:$4 sm:$0xff]  }
  0x44   :  { %4108 = vmatpush1.bf16.msra.mxu1 %v5129_v35 }
  0x45   :  { %4109 = vmatprep.subr.bf16.mxu1 %v5137_v36 }
  0x46   :  { %3782 = vmatpush1.bf16.msra.mxu0 %v5132_v37 }
  0x47   :  { %3783 = vmatprep.subr.bf16.mxu0 %v5140_v38  ;;  %v5189_v38 = vld [vmem:[%s7689_s3 + $0x228] ss:$16 sps:$4 sm:$0xff]  }
  0x48   :  { %4110 = vmatpush1.bf16.msra.mxu1 %v5135_v39 }
  0x49   :  { %4111 = vmatprep.subr.bf16.mxu1 %v5143_v40 }
  0x4a   :  { %3784 = vmatpush1.bf16.msra.mxu0 %v5138_v41  ;;  %v5194_v41 = vld [vmem:[%s7689_s3 + $0x244] ss:$16 sps:$4 sm:$0xff]  }
  0x4b   :  { %3785 = vmatprep.subr.bf16.mxu0 %v5146_v42  ;;  %v5197_v42 = vld [vmem:[%s7689_s3 + $0x24c] ss:$16 sps:$4 sm:$0xff]  }
  0x4c   :  { %4112 = vmatpush1.bf16.msra.mxu1 %v5141_v43 }
  0x4d   :  { %4113 = vmatprep.subr.bf16.mxu1 %v5149_v44 }
  0x4e   :  { %3786 = vmatpush1.bf16.msra.mxu0 %v5144_v45 }
  0x4f   :  { %3787 = vmatprep.subr.bf16.mxu0 %v5152_v46  ;;  %v5192_v46 = vld [vmem:[%s7689_s3 + $0x240] ss:$16 sps:$4 sm:$0xff]  }
  0x50   :  { %4114 = vmatpush1.bf16.msra.mxu1 %v5147_v47  ;;  %v5195_v47 = vld [vmem:[%s7689_s3 + $0x248] ss:$16 sps:$4 sm:$0xff]  }
  0x51   :  { %4115 = vmatprep.subr.bf16.mxu1 %v5155_v48 }
  0x52   :  { %3788 = vmatpush1.bf16.msra.mxu0 %v5150_v49  ;;  %v5200_v49 = vld [vmem:[%s7689_s3 + $0x264] ss:$16 sps:$4 sm:$0xff]  }
  0x53   :  { %3789 = vmatprep.subr.bf16.mxu0 %v5158_v50  ;;  %v5203_v50 = vld [vmem:[%s7689_s3 + $0x26c] ss:$16 sps:$4 sm:$0xff]  }
  0x54   :  { %4116 = vmatpush1.bf16.msra.mxu1 %v5153_v51  ;;  %v5198_v51 = vld [vmem:[%s7689_s3 + $0x260] ss:$16 sps:$4 sm:$0xff]  }
  0x55   :  { %4117 = vmatprep.subr.bf16.mxu1 %v5161_v52 }
  0x56   :  { %3790 = vmatpush1.bf16.msra.mxu0 %v5156_v53  ;;  %v6292_v53 = vsub.s32 2, %v6218_v7 }
  0x57   :  { %3791 = vmatprep.subr.bf16.mxu0 %v5164_v54  ;;  %v5201_v54 = vld [vmem:[%s7689_s3 + $0x268] ss:$16 sps:$4 sm:$0xff]  }
  0x58   :  { %4118 = vmatpush1.bf16.msra.mxu1 %v5159_v55  ;;  %v6300_v55 = vld [vmem:[%s7690_s2 + $0x8] sm:$0xff] }
  0x59   :  { %4119 = vmatprep.subr.bf16.mxu1 %v5167_v56 }
  0x5a   :  { %3792 = vmatpush1.bf16.msra.mxu0 %v5162_v57 }
  0x5b   :  { %3793 = vmatprep.subr.bf16.mxu0 %v5170_v59  ;;  %v5209_v59 = vld [vmem:[%s7689_s3 + $0x28c] ss:$16 sps:$4 sm:$0xff]  }
  0x5c   :  { %4120 = vmatpush1.bf16.msra.mxu1 %v5165_v58  ;;  %v5206_v58 = vld [vmem:[%s7689_s3 + $0x284] ss:$16 sps:$4 sm:$0xff]  }
  0x5d   :  { %4121 = vmatprep.subr.bf16.mxu1 %v5173_v60 }
  0x5e   :  { %3794 = vmatpush1.bf16.msra.mxu0 %v5168_v61  ;;  %v110_v61 = vrot.slane %v6300_v55, %v6292_v53 }
  0x5f   :  { %3795 = vmatprep.subr.bf16.mxu0 %v5176_v63 }
  0x60   :  { %4122 = vmatpush1.bf16.msra.mxu1 %v5171_v62  ;;  %v114_v62 = vrot.slane %v6300_v55, %v6232_v10 }
  0x61   :  { %4123 = vmatprep.subr.bf16.mxu1 %v5179_v0 }
  0x62   :  { %3796 = vmatpush1.bf16.msra.mxu0 %v5174_v1 }
  0x63   :  { %3806 = vmatprep.subr.bf16.mxu0 %v5182_v4 }
  0x64   :  { %4124 = vmatpush1.bf16.msra.mxu1 %v5177_v2  ;;  %v85_v2 = vsub.s32 4, %v6218_v7 }
  0x65   :  { %4134 = vmatprep.subr.bf16.mxu1 %v5185_v5 }
  0xe0   :  { %v345_v13 = vpop.f32.mrb[0].mxu0  ;;  %v6240_v19 = vpop.f32.mrb[0].mxu1 }
  0xe1   :  { %v346_v15 = vadd.f32 %v345_v13, %v70_v11  ;;  %v347_v16 = vpop.f32.mrb[1].mxu0  ;;  %v388_v22 = vpop.f32.mrb[1].mxu1  ;;  %v5204_v11 = vld [vmem:[%s7689_s3 + $0x280] ss:$16 sps:$4 sm:$0xff]   ;;  %v5212_v13 = vld [vmem:[%s7689_s3 + $0x2a4] ss:$16 sps:$4 sm:$0xff]  }
  0xe2   :  { %v348_v17 = vadd.f32 %v347_v16, %v74_v12  ;;  %v349_v18 = vpop.f32.mrb[2].mxu0  ;;  %v389_v26 = vadd.f32 %v388_v22, %v82_v14  ;;  %v390_v27 = vpop.f32.mrb[2].mxu1  ;;  %v5207_v12 = vld [vmem:[%s7689_s3 + $0x288] ss:$16 sps:$4 sm:$0xff]   ;;  %v5215_v14 = vld [vmem:[%s7689_s3 + $0x2ac] ss:$16 sps:$4 sm:$0xff]  }
  0xe3   :  { %v639_v20 = vmax.f32 %v346_v15, 0.0  ;;  %v350_v21 = vpop.f32.mrb[3].mxu0  ;;  %v391_v28 = vpop.f32.mrb[3].mxu1  ;;  %v118_v15 = vrot.slane %v6300_v55, %v85_v2  ;;  %v89_v16 = vsub.s32 5, %v6218_v7  ;;  %v5210_v22 = vld [vmem:[%s7689_s3 + $0x2a0] ss:$16 sps:$4 sm:$0xff]  }
  0xe4   :  { %v640_v23 = vmax.f32 %v348_v17, 0.0  ;;  %v642_v30 = vmax.f32 %v389_v26, 0.0  ;;  %v93_v17 = vsub.s32 6, %v6218_v7  ;;  %v5218_v28 = vld [vmem:[%s7689_s3 + $0x2c4] ss:$16 sps:$4 sm:$0xff]  }
  0xe5   :  { %v655_v31 = vpack.c.bf16 %v639_v20, %v639_v20  ;;  %v97_v20 = vsub.s32 7, %v6218_v7  ;;  %v5456_v7 = vld [vmem:[%s7689_s3 + $0x7c0] ss:$16 sps:$4 sm:$0xff]  }
  0xe6   :  { %v656_v29 = vpack.c.bf16 %v640_v23, %v640_v23  ;;  %v658_v35 = vpack.c.bf16 %v642_v30, %v642_v30  ;;  %v5213_v23 = vld [vmem:[%s7689_s3 + $0x2a8] ss:$16 sps:$4 sm:$0xff]   ;;  %v126_v26 = vrot.slane %v6300_v55, %v93_v17 }
  0xe8   :  { %3797 = vmatprep.mubr.bf16.mxu0 %v656_v29  ;;  %4125 = vmatprep.mubr.bf16.mxu1 %v656_v29  ;;  %v6257_v36 = vpop.f32.mrb[4].mxu0  ;;  %v5221_v29 = vld [vmem:[%s7689_s3 + $0x2cc] ss:$16 sps:$4 sm:$0xff]  }
  0xe9   :  { %3798 = vmatmul.mubr.bf16.vlgmr.msra.gmra.mrb[16].mxu0 %v655_v31  ;;  %4126 = vmatmul.mubr.bf16.vlgmr.msra.gmra.mrb[16].mxu1 %v655_v31  ;;  %v6259_v37 = vpop.f32.mrb[5].mxu0  ;;  %v130_v31 = vrot.slane %v6300_v55, %v97_v20 }
  0xea   :  { %3807 = vmatpush1.bf16.msra.mxu0 %v5180_v24  ;;  %4135 = vmatpush1.bf16.msra.mxu1 %v5183_v25  ;;  %v431_v39 = vpop.f32.mrb[6].mxu0  ;;  %v6264_v40 = vpop.f32.mrb[4].mxu1  ;;  %v122_v24 = vrot.slane %v6300_v55, %v89_v16 }
  0xeb   :  { %3808 = vmatprep.subr.bf16.mxu0 %v5188_v32  ;;  %4136 = vmatprep.subr.bf16.mxu1 %v5191_v33  ;;  %v432_v43 = vpop.f32.mrb[7].mxu0  ;;  %v6272_v44 = vpop.f32.mrb[5].mxu1 }
  0xec   :  { %3838 = vmatprep.mubr.bf16.mxu0 %v658_v35  ;;  %4166 = vmatprep.mubr.bf16.mxu1 %v658_v35  ;;  %v472_v45 = vpop.f32.mrb[6].mxu1 }
  0xed   :  { %v473_v48 = vpop.f32.mrb[7].mxu1  ;;  %v5224_v45 = vld [vmem:[%s7689_s3 + $0x2e4] ss:$16 sps:$4 sm:$0xff]  }
  0xee   :  { %3809 = vmatpush1.bf16.msra.mxu0 %v5186_v34  ;;  %4137 = vmatpush1.bf16.msra.mxu1 %v5189_v38  ;;  %v5225_v48 = vld [vmem:[%s7689_s3 + $0x2e8] ss:$16 sps:$4 sm:$0xff]  }
  0xef   :  { %3810 = vmatprep.subr.bf16.mxu0 %v5194_v41  ;;  %4138 = vmatprep.subr.bf16.mxu1 %v5197_v42  ;;  %v5216_v41 = vld [vmem:[%s7689_s3 + $0x2c0] ss:$16 sps:$4 sm:$0xff]   ;;  %v5219_v42 = vld [vmem:[%s7689_s3 + $0x2c8] ss:$16 sps:$4 sm:$0xff]  }
  0xf0   :  { %v6289_v52 = vpop.f32.mrb[8].mxu0 }
  0xf1   :  { %v6302_v56 = vpop.f32.mrb[9].mxu0 }
  0xf2   :  { %3811 = vmatpush1.bf16.msra.mxu0 %v5192_v46  ;;  %4139 = vmatpush1.bf16.msra.mxu1 %v5195_v47  ;;  %v550_v57 = vpop.f32.mrb[8].mxu1  ;;  %v513_v60 = vpop.f32.mrb[10].mxu0  ;;  %v5227_v46 = vld [vmem:[%s7689_s3 + $0x2ec] ss:$16 sps:$4 sm:$0xff]   ;;  %v5222_v47 = vld [vmem:[%s7689_s3 + $0x2e0] ss:$16 sps:$4 sm:$0xff]  }
  0xf3   :  { %3812 = vmatprep.subr.bf16.mxu0 %v5200_v49  ;;  %4140 = vmatprep.subr.bf16.mxu1 %v5203_v50  ;;  %v552_v63 = vpop.f32.mrb[9].mxu1  ;;  %v514_v0 = vpop.f32.mrb[11].mxu0  ;;  %v6315_v4 = vadd.f32 %v550_v57, %v110_v61  ;;  %v5230_v49 = vld [vmem:[%s7689_s3 + $0x304] ss:$16 sps:$4 sm:$0xff]   ;;  %v5233_v50 = vld [vmem:[%s7689_s3 + $0x30c] ss:$16 sps:$4 sm:$0xff]  }
  0xf4   :  { %v554_v1 = vpop.f32.mrb[10].mxu1  ;;  %v6317_v5 = vadd.f32 %v552_v63, %v114_v62  ;;  %v5236_v57 = vld [vmem:[%s7689_s3 + $0x324] ss:$16 sps:$4 sm:$0xff]   ;;  %v5237_v60 = vld [vmem:[%s7689_s3 + $0x328] ss:$16 sps:$4 sm:$0xff]  }
  0xf5   :  { %v555_v6 = vpop.f32.mrb[11].mxu1  ;;  %v5242_v61 = vld [vmem:[%s7689_s3 + $0x344] ss:$16 sps:$4 sm:$0xff]   ;;  %v5245_v62 = vld [vmem:[%s7689_s3 + $0x34c] ss:$16 sps:$4 sm:$0xff]  }
  0xf6   :  { %3813 = vmatpush1.bf16.msra.mxu0 %v5198_v51  ;;  %4141 = vmatpush1.bf16.msra.mxu1 %v5201_v54  ;;  %v5228_v51 = vld [vmem:[%s7689_s3 + $0x300] ss:$16 sps:$4 sm:$0xff]   ;;  %v5231_v54 = vld [vmem:[%s7689_s3 + $0x308] ss:$16 sps:$4 sm:$0xff]   ;;  %v5248_v1 = vld [vmem:[%s7689_s3 + $0x364] ss:$16 sps:$4 sm:$0xff]  }
  0xf7   :  { %3814 = vmatprep.subr.bf16.mxu0 %v5206_v58  ;;  %4142 = vmatprep.subr.bf16.mxu1 %v5209_v59  ;;  %v5239_v58 = vld [vmem:[%s7689_s3 + $0x32c] ss:$16 sps:$4 sm:$0xff]   ;;  %v5234_v59 = vld [vmem:[%s7689_s3 + $0x320] ss:$16 sps:$4 sm:$0xff]   ;;  %v5243_v0 = vld [vmem:[%s7689_s3 + $0x348] ss:$16 sps:$4 sm:$0xff]  }
  0xf8   :  { %v591_v18 = vpop.f32.mrb[12].mxu0  ;;  %v5240_v63 = vld [vmem:[%s7689_s3 + $0x340] ss:$16 sps:$4 sm:$0xff]   ;;  %v5251_v6 = vld [vmem:[%s7689_s3 + $0x36c] ss:$16 sps:$4 sm:$0xff]  }
  0xf9   :  { %v6337_v21 = vadd.f32 %v591_v18, %v118_v15  ;;  %v593_v25 = vpop.f32.mrb[13].mxu0  ;;  %v5252_v15 = vld [vmem:[%s7689_s3 + $0x380] ss:$16 sps:$4 sm:$0xff]   ;;  %v5255_v18 = vld [vmem:[%s7689_s3 + $0x388] ss:$16 sps:$4 sm:$0xff]  }
  0xfa   :  { %3815 = vmatpush1.bf16.msra.mxu0 %v5204_v11  ;;  %4143 = vmatpush1.bf16.msra.mxu1 %v5207_v12  ;;  %v632_v27 = vpop.f32.mrb[12].mxu1  ;;  %v595_v30 = vpop.f32.mrb[14].mxu0  ;;  %v6360_v32 = vadd.f32 %v593_v25, %v122_v24  ;;  %v5246_v11 = vld [vmem:[%s7689_s3 + $0x360] ss:$16 sps:$4 sm:$0xff]   ;;  %v5249_v12 = vld [vmem:[%s7689_s3 + $0x368] ss:$16 sps:$4 sm:$0xff]   ;;  %v78_v24 = vrot.slane %v6226_v8, %v6292_v53 }
  0xfb   :  { %3816 = vmatprep.subr.bf16.mxu0 %v5212_v13  ;;  %4144 = vmatprep.subr.bf16.mxu1 %v5215_v14  ;;  %v596_v33 = vpop.f32.mrb[15].mxu0  ;;  %v6362_v34 = vadd.f32 %v632_v27, %v126_v26  ;;  %v634_v35 = vpop.f32.mrb[13].mxu1  ;;  %v5254_v13 = vld [vmem:[%s7689_s3 + $0x384] ss:$16 sps:$4 sm:$0xff]   ;;  %v5257_v14 = vld [vmem:[%s7689_s3 + $0x38c] ss:$16 sps:$4 sm:$0xff]  }
  0xfc   :  { %v6364_v38 = vadd.f32 %v634_v35, %v130_v31  ;;  %v636_v39 = vpop.f32.mrb[14].mxu1  ;;  %v5258_v25 = vld [vmem:[%s7689_s3 + $0x3a0] ss:$16 sps:$4 sm:$0xff]   ;;  %v5261_v26 = vld [vmem:[%s7689_s3 + $0x3a8] ss:$16 sps:$4 sm:$0xff]   ;;  %v387_v30 = vadd.f32 %v6240_v19, %v78_v24 }
  0xfd   :  { %v637_v43 = vpop.f32.mrb[15].mxu1  ;;  %v5266_v27 = vld [vmem:[%s7689_s3 + $0x3c4] ss:$16 sps:$4 sm:$0xff]   ;;  %v5264_v31 = vld [vmem:[%s7689_s3 + $0x3c0] ss:$16 sps:$4 sm:$0xff]  }
  0xfe   :  { %3817 = vmatpush1.bf16.msra.mxu0 %v5210_v22  ;;  %4145 = vmatpush1.bf16.msra.mxu1 %v5213_v23  ;;  %v5260_v22 = vld [vmem:[%s7689_s3 + $0x3a4] ss:$16 sps:$4 sm:$0xff]   ;;  %v5263_v23 = vld [vmem:[%s7689_s3 + $0x3ac] ss:$16 sps:$4 sm:$0xff]   ;;  %v5267_v33 = vld [vmem:[%s7689_s3 + $0x3c8] ss:$16 sps:$4 sm:$0xff]  }
  0xff   :  { %3818 = vmatprep.subr.bf16.mxu0 %v5218_v28  ;;  %4146 = vmatprep.subr.bf16.mxu1 %v5221_v29  ;;  %v5269_v28 = vld [vmem:[%s7689_s3 + $0x3cc] ss:$16 sps:$4 sm:$0xff]   ;;  %v90_v29 = vrot.slane %v6226_v8, %v89_v16  ;;  %v5272_v35 = vld [vmem:[%s7689_s3 + $0x3e4] ss:$16 sps:$4 sm:$0xff]   ;;  %v641_v39 = vmax.f32 %v387_v30, 0.0 }
 0x100   :  { %v5275_v19 = vld [vmem:[%s7689_s3 + $0x3ec] ss:$16 sps:$4 sm:$0xff]   ;;  %v5278_v43 = vld [vmem:[%s7689_s3 + $0x404] ss:$16 sps:$4 sm:$0xff]   ;;  %v5321_v30 = vld [vmem:[%s7689_s3 + $0x4e8] ss:$16 sps:$4 sm:$0xff]  }
 0x101   :  { %v430_v16 = vadd.f32 %v6259_v37, %v90_v29  ;;  %v5281_v37 = vld [vmem:[%s7689_s3 + $0x40c] ss:$16 sps:$4 sm:$0xff]   ;;  %v5318_v29 = vld [vmem:[%s7689_s3 + $0x4e0] ss:$16 sps:$4 sm:$0xff]  }
 0x102   :  { %3819 = vmatpush1.bf16.msra.mxu0 %v5216_v41  ;;  %4147 = vmatpush1.bf16.msra.mxu1 %v5219_v42  ;;  %v5270_v41 = vld [vmem:[%s7689_s3 + $0x3e0] ss:$16 sps:$4 sm:$0xff]   ;;  %v5273_v42 = vld [vmem:[%s7689_s3 + $0x3e8] ss:$16 sps:$4 sm:$0xff]   ;;  %v5317_v24 = vld [vmem:[%s7689_s3 + $0x4cc] ss:$16 sps:$4 sm:$0xff]  }
 0x103   :  { %3820 = vmatprep.subr.bf16.mxu0 %v5224_v45  ;;  %4148 = vmatprep.subr.bf16.mxu1 %v5227_v46  ;;  %v644_v45 = vmax.f32 %v430_v16, 0.0  ;;  %v657_v46 = vpack.c.bf16 %v641_v39, %v641_v39  ;;  %v5332_v16 = vld [vmem:[%s7689_s3 + $0x524] ss:$16 sps:$4 sm:$0xff]   ;;  %v5335_v39 = vld [vmem:[%s7689_s3 + $0x52c] ss:$16 sps:$4 sm:$0xff]  }
 0x106   :  { %3821 = vmatpush1.bf16.msra.mxu0 %v5222_v47  ;;  %4149 = vmatpush1.bf16.msra.mxu1 %v5225_v48  ;;  %v5276_v47 = vld [vmem:[%s7689_s3 + $0x400] ss:$16 sps:$4 sm:$0xff]   ;;  %v5279_v48 = vld [vmem:[%s7689_s3 + $0x408] ss:$16 sps:$4 sm:$0xff]  }
 0x107   :  { %3822 = vmatprep.subr.bf16.mxu0 %v5230_v49  ;;  %4150 = vmatprep.subr.bf16.mxu1 %v5233_v50  ;;  %v5284_v49 = vld [vmem:[%s7689_s3 + $0x424] ss:$16 sps:$4 sm:$0xff]   ;;  %v5287_v50 = vld [vmem:[%s7689_s3 + $0x42c] ss:$16 sps:$4 sm:$0xff]  }
 0x10a   :  { %3823 = vmatpush1.bf16.msra.mxu0 %v5228_v51  ;;  %4151 = vmatpush1.bf16.msra.mxu1 %v5231_v54  ;;  %v660_v51 = vpack.c.bf16 %v644_v45, %v644_v45  ;;  %v5282_v54 = vld [vmem:[%s7689_s3 + $0x420] ss:$16 sps:$4 sm:$0xff]  }
 0x10b   :  { %3824 = vmatprep.subr.bf16.mxu0 %v5236_v57  ;;  %4152 = vmatprep.subr.bf16.mxu1 %v5239_v58  ;;  %v5285_v57 = vld [vmem:[%s7689_s3 + $0x428] ss:$16 sps:$4 sm:$0xff]   ;;  %v5290_v58 = vld [vmem:[%s7689_s3 + $0x444] ss:$16 sps:$4 sm:$0xff]   ;;  %v5336_v45 = vld [vmem:[%s7689_s3 + $0x540] ss:$16 sps:$4 sm:$0xff]  }
 0x10e   :  { %3825 = vmatpush1.bf16.msra.mxu0 %v5234_v59  ;;  %4153 = vmatpush1.bf16.msra.mxu1 %v5237_v60  ;;  %v5293_v59 = vld [vmem:[%s7689_s3 + $0x44c] ss:$16 sps:$4 sm:$0xff]   ;;  %v5288_v60 = vld [vmem:[%s7689_s3 + $0x440] ss:$16 sps:$4 sm:$0xff]  }
 0x10f   :  { %3826 = vmatprep.subr.bf16.mxu0 %v5242_v61  ;;  %4154 = vmatprep.subr.bf16.mxu1 %v5245_v62  ;;  %v5291_v61 = vld [vmem:[%s7689_s3 + $0x448] ss:$16 sps:$4 sm:$0xff]   ;;  %v5296_v62 = vld [vmem:[%s7689_s3 + $0x464] ss:$16 sps:$4 sm:$0xff]  }
 0x112   :  { %3827 = vmatpush1.bf16.msra.mxu0 %v5240_v63  ;;  %4155 = vmatpush1.bf16.msra.mxu1 %v5243_v0  ;;  %v5299_v63 = vld [vmem:[%s7689_s3 + $0x46c] ss:$16 sps:$4 sm:$0xff]   ;;  %v5294_v0 = vld [vmem:[%s7689_s3 + $0x460] ss:$16 sps:$4 sm:$0xff]  }
 0x113   :  { %3828 = vmatprep.subr.bf16.mxu0 %v5248_v1  ;;  %4156 = vmatprep.subr.bf16.mxu1 %v5251_v6  ;;  %v5297_v1 = vld [vmem:[%s7689_s3 + $0x468] ss:$16 sps:$4 sm:$0xff]   ;;  %v5302_v6 = vld [vmem:[%s7689_s3 + $0x484] ss:$16 sps:$4 sm:$0xff]  }
 0x116   :  { %3829 = vmatpush1.bf16.msra.mxu0 %v5246_v11  ;;  %4157 = vmatpush1.bf16.msra.mxu1 %v5249_v12  ;;  %v5305_v11 = vld [vmem:[%s7689_s3 + $0x48c] ss:$16 sps:$4 sm:$0xff]   ;;  %v5300_v12 = vld [vmem:[%s7689_s3 + $0x480] ss:$16 sps:$4 sm:$0xff]  }
 0x117   :  { %3830 = vmatprep.subr.bf16.mxu0 %v5254_v13  ;;  %4158 = vmatprep.subr.bf16.mxu1 %v5257_v14  ;;  %v5303_v13 = vld [vmem:[%s7689_s3 + $0x488] ss:$16 sps:$4 sm:$0xff]   ;;  %v5308_v14 = vld [vmem:[%s7689_s3 + $0x4a4] ss:$16 sps:$4 sm:$0xff]  }
 0x11a   :  { %3831 = vmatpush1.bf16.msra.mxu0 %v5252_v15  ;;  %4159 = vmatpush1.bf16.msra.mxu1 %v5255_v18  ;;  %v5311_v15 = vld [vmem:[%s7689_s3 + $0x4ac] ss:$16 sps:$4 sm:$0xff]   ;;  %v5306_v18 = vld [vmem:[%s7689_s3 + $0x4a0] ss:$16 sps:$4 sm:$0xff]  }
 0x11b   :  { %3832 = vmatprep.subr.bf16.mxu0 %v5260_v22  ;;  %4160 = vmatprep.subr.bf16.mxu1 %v5263_v23  ;;  %v5309_v22 = vld [vmem:[%s7689_s3 + $0x4a8] ss:$16 sps:$4 sm:$0xff]   ;;  %v5314_v23 = vld [vmem:[%s7689_s3 + $0x4c4] ss:$16 sps:$4 sm:$0xff]  }
 0x11e   :  { %3833 = vmatpush1.bf16.msra.mxu0 %v5258_v25  ;;  %4161 = vmatpush1.bf16.msra.mxu1 %v5261_v26  ;;  %v5312_v25 = vld [vmem:[%s7689_s3 + $0x4c0] ss:$16 sps:$4 sm:$0xff]   ;;  %v5315_v26 = vld [vmem:[%s7689_s3 + $0x4c8] ss:$16 sps:$4 sm:$0xff]  }
 0x11f   :  { %3834 = vmatprep.subr.bf16.mxu0 %v5266_v27  ;;  %4162 = vmatprep.subr.bf16.mxu1 %v5269_v28  ;;  %v5320_v27 = vld [vmem:[%s7689_s3 + $0x4e4] ss:$16 sps:$4 sm:$0xff]   ;;  %v5323_v28 = vld [vmem:[%s7689_s3 + $0x4ec] ss:$16 sps:$4 sm:$0xff]  }
 0x122   :  { %3835 = vmatpush1.bf16.msra.mxu0 %v5264_v31  ;;  %4163 = vmatpush1.bf16.msra.mxu1 %v5267_v33  ;;  %v5326_v31 = vld [vmem:[%s7689_s3 + $0x504] ss:$16 sps:$4 sm:$0xff]   ;;  %v5329_v33 = vld [vmem:[%s7689_s3 + $0x50c] ss:$16 sps:$4 sm:$0xff]  }
 0x123   :  { %3836 = vmatprep.subr.bf16.mxu0 %v5272_v35  ;;  %4164 = vmatprep.subr.bf16.mxu1 %v5275_v19  ;;  %v5324_v35 = vld [vmem:[%s7689_s3 + $0x500] ss:$16 sps:$4 sm:$0xff]   ;;  %v5327_v19 = vld [vmem:[%s7689_s3 + $0x508] ss:$16 sps:$4 sm:$0xff]  }
 0x126   :  { %3837 = vmatpush1.bf16.msra.mxu0 %v5270_v41  ;;  %4165 = vmatpush1.bf16.msra.mxu1 %v5273_v42  ;;  %v5330_v41 = vld [vmem:[%s7689_s3 + $0x520] ss:$16 sps:$4 sm:$0xff]   ;;  %v5333_v42 = vld [vmem:[%s7689_s3 + $0x528] ss:$16 sps:$4 sm:$0xff]  }
 0x127   :  { %3847 = vmatprep.subr.bf16.mxu0 %v5278_v43  ;;  %4175 = vmatprep.subr.bf16.mxu1 %v5281_v37  ;;  %v5338_v43 = vld [vmem:[%s7689_s3 + $0x544] ss:$16 sps:$4 sm:$0xff]   ;;  %v5341_v37 = vld [vmem:[%s7689_s3 + $0x54c] ss:$16 sps:$4 sm:$0xff]  }
 0x129   :  { %3839 = vmatmul.mubr.bf16.vlgmr.msra.gmra.mrb[16].mxu0 %v657_v46  ;;  %4167 = vmatmul.mubr.bf16.vlgmr.msra.gmra.mrb[16].mxu1 %v657_v46  ;;  %v5339_v46 = vld [vmem:[%s7689_s3 + $0x548] ss:$16 sps:$4 sm:$0xff]  }
 0x12a   :  { %3848 = vmatpush1.bf16.msra.mxu0 %v5276_v47  ;;  %4176 = vmatpush1.bf16.msra.mxu1 %v5279_v48  ;;  %v5344_v47 = vld [vmem:[%s7689_s3 + $0x564] ss:$16 sps:$4 sm:$0xff]   ;;  %v5347_v48 = vld [vmem:[%s7689_s3 + $0x56c] ss:$16 sps:$4 sm:$0xff]  }
 0x12b   :  { %3849 = vmatprep.subr.bf16.mxu0 %v5284_v49  ;;  %4177 = vmatprep.subr.bf16.mxu1 %v5287_v50  ;;  %v5342_v49 = vld [vmem:[%s7689_s3 + $0x560] ss:$16 sps:$4 sm:$0xff]   ;;  %v5345_v50 = vld [vmem:[%s7689_s3 + $0x568] ss:$16 sps:$4 sm:$0xff]  }
 0x12c   :  { %3879 = vmatprep.mubr.bf16.mxu0 %v660_v51  ;;  %4207 = vmatprep.mubr.bf16.mxu1 %v660_v51  ;;  %v5350_v51 = vld [vmem:[%s7689_s3 + $0x584] ss:$16 sps:$4 sm:$0xff]  }
 0x12e   :  { %3850 = vmatpush1.bf16.msra.mxu0 %v5282_v54  ;;  %4178 = vmatpush1.bf16.msra.mxu1 %v5285_v57  ;;  %v5353_v54 = vld [vmem:[%s7689_s3 + $0x58c] ss:$16 sps:$4 sm:$0xff]   ;;  %v5348_v57 = vld [vmem:[%s7689_s3 + $0x580] ss:$16 sps:$4 sm:$0xff]  }
 0x12f   :  { %3851 = vmatprep.subr.bf16.mxu0 %v5290_v58  ;;  %4179 = vmatprep.subr.bf16.mxu1 %v5293_v59  ;;  %v5351_v58 = vld [vmem:[%s7689_s3 + $0x588] ss:$16 sps:$4 sm:$0xff]   ;;  %v5356_v59 = vld [vmem:[%s7689_s3 + $0x5a4] ss:$16 sps:$4 sm:$0xff]  }
 0x132   :  { %3852 = vmatpush1.bf16.msra.mxu0 %v5288_v60  ;;  %4180 = vmatpush1.bf16.msra.mxu1 %v5291_v61  ;;  %v5359_v60 = vld [vmem:[%s7689_s3 + $0x5ac] ss:$16 sps:$4 sm:$0xff]   ;;  %v86_v61 = vrot.slane %v6226_v8, %v85_v2 }
 0x133   :  { %3853 = vmatprep.subr.bf16.mxu0 %v5296_v62  ;;  %4181 = vmatprep.subr.bf16.mxu1 %v5299_v63  ;;  %v5354_v62 = vld [vmem:[%s7689_s3 + $0x5a0] ss:$16 sps:$4 sm:$0xff]   ;;  %v5357_v63 = vld [vmem:[%s7689_s3 + $0x5a8] ss:$16 sps:$4 sm:$0xff]   ;;  %v5365_v2 = vld [vmem:[%s7689_s3 + $0x5cc] ss:$16 sps:$4 sm:$0xff]  }
 0x136   :  { %3854 = vmatpush1.bf16.msra.mxu0 %v5294_v0  ;;  %4182 = vmatpush1.bf16.msra.mxu1 %v5297_v1  ;;  %v5362_v0 = vld [vmem:[%s7689_s3 + $0x5c4] ss:$16 sps:$4 sm:$0xff]   ;;  %v98_v1 = vrot.slane %v6226_v8, %v97_v20  ;;  %v5371_v8 = vld [vmem:[%s7689_s3 + $0x5ec] ss:$16 sps:$4 sm:$0xff]  }
 0x137   :  { %3855 = vmatprep.subr.bf16.mxu0 %v5302_v6  ;;  %4183 = vmatprep.subr.bf16.mxu1 %v5305_v11  ;;  %v428_v6 = vadd.f32 %v6257_v36, %v86_v61  ;;  %v5360_v11 = vld [vmem:[%s7689_s3 + $0x5c0] ss:$16 sps:$4 sm:$0xff]  }
 0x138   :  { %v471_v36 = vadd.f32 %v6272_v44, %v98_v1  ;;  %v5377_v44 = vld [vmem:[%s7689_s3 + $0x60c] ss:$16 sps:$4 sm:$0xff]   ;;  %v5414_v61 = vld [vmem:[%s7689_s3 + $0x6e0] ss:$16 sps:$4 sm:$0xff]   ;;  %v5423_v1 = vld [vmem:[%s7689_s3 + $0x708] ss:$16 sps:$4 sm:$0xff]  }
 0x139   :  { %v643_v20 = vmax.f32 %v428_v6, 0.0  ;;  %v5428_v6 = vld [vmem:[%s7689_s3 + $0x724] ss:$16 sps:$4 sm:$0xff]  }
 0x13a   :  { %3856 = vmatpush1.bf16.msra.mxu0 %v5300_v12  ;;  %4184 = vmatpush1.bf16.msra.mxu1 %v5303_v13  ;;  %v5363_v12 = vld [vmem:[%s7689_s3 + $0x5c8] ss:$16 sps:$4 sm:$0xff]   ;;  %v5368_v13 = vld [vmem:[%s7689_s3 + $0x5e4] ss:$16 sps:$4 sm:$0xff]  }
 0x13b   :  { %3857 = vmatprep.subr.bf16.mxu0 %v5308_v14  ;;  %4185 = vmatprep.subr.bf16.mxu1 %v5311_v15  ;;  %v5366_v14 = vld [vmem:[%s7689_s3 + $0x5e0] ss:$16 sps:$4 sm:$0xff]   ;;  %v5369_v15 = vld [vmem:[%s7689_s3 + $0x5e8] ss:$16 sps:$4 sm:$0xff]  }
 0x13e   :  { %3858 = vmatpush1.bf16.msra.mxu0 %v5306_v18  ;;  %4186 = vmatpush1.bf16.msra.mxu1 %v5309_v22  ;;  %v5374_v18 = vld [vmem:[%s7689_s3 + $0x604] ss:$16 sps:$4 sm:$0xff]   ;;  %v646_v22 = vmax.f32 %v471_v36, 0.0  ;;  %v5437_v36 = vld [vmem:[%s7689_s3 + $0x74c] ss:$16 sps:$4 sm:$0xff]  }
 0x13f   :  { %3859 = vmatprep.subr.bf16.mxu0 %v5314_v23  ;;  %4187 = vmatprep.subr.bf16.mxu1 %v5317_v24  ;;  %v659_v23 = vpack.c.bf16 %v643_v20, %v643_v20  ;;  %v5372_v24 = vld [vmem:[%s7689_s3 + $0x600] ss:$16 sps:$4 sm:$0xff]  }
 0x140   :  { %v5432_v20 = vld [vmem:[%s7689_s3 + $0x740] ss:$16 sps:$4 sm:$0xff]  }
 0x142   :  { %3860 = vmatpush1.bf16.msra.mxu0 %v5312_v25  ;;  %4188 = vmatpush1.bf16.msra.mxu1 %v5315_v26  ;;  %v5375_v25 = vld [vmem:[%s7689_s3 + $0x608] ss:$16 sps:$4 sm:$0xff]   ;;  %v5380_v26 = vld [vmem:[%s7689_s3 + $0x624] ss:$16 sps:$4 sm:$0xff]  }
 0x143   :  { %3861 = vmatprep.subr.bf16.mxu0 %v5320_v27  ;;  %4189 = vmatprep.subr.bf16.mxu1 %v5323_v28  ;;  %v5383_v27 = vld [vmem:[%s7689_s3 + $0x62c] ss:$16 sps:$4 sm:$0xff]   ;;  %v662_v28 = vpack.c.bf16 %v646_v22, %v646_v22  ;;  %v5441_v22 = vld [vmem:[%s7689_s3 + $0x768] ss:$16 sps:$4 sm:$0xff]  }
 0x146   :  { %3862 = vmatpush1.bf16.msra.mxu0 %v5318_v29  ;;  %4190 = vmatpush1.bf16.msra.mxu1 %v5321_v30  ;;  %v5378_v29 = vld [vmem:[%s7689_s3 + $0x620] ss:$16 sps:$4 sm:$0xff]   ;;  %v5381_v30 = vld [vmem:[%s7689_s3 + $0x628] ss:$16 sps:$4 sm:$0xff]  }
 0x147   :  { %3863 = vmatprep.subr.bf16.mxu0 %v5326_v31  ;;  %4191 = vmatprep.subr.bf16.mxu1 %v5329_v33  ;;  %v5386_v31 = vld [vmem:[%s7689_s3 + $0x644] ss:$16 sps:$4 sm:$0xff]   ;;  %v5389_v33 = vld [vmem:[%s7689_s3 + $0x64c] ss:$16 sps:$4 sm:$0xff]  }
 0x14a   :  { %3864 = vmatpush1.bf16.msra.mxu0 %v5324_v35  ;;  %4192 = vmatpush1.bf16.msra.mxu1 %v5327_v19  ;;  %v5384_v35 = vld [vmem:[%s7689_s3 + $0x640] ss:$16 sps:$4 sm:$0xff]   ;;  %v5387_v19 = vld [vmem:[%s7689_s3 + $0x648] ss:$16 sps:$4 sm:$0xff]  }
 0x14b   :  { %3865 = vmatprep.subr.bf16.mxu0 %v5332_v16  ;;  %4193 = vmatprep.subr.bf16.mxu1 %v5335_v39  ;;  %v5392_v16 = vld [vmem:[%s7689_s3 + $0x664] ss:$16 sps:$4 sm:$0xff]   ;;  %v5395_v39 = vld [vmem:[%s7689_s3 + $0x66c] ss:$16 sps:$4 sm:$0xff]  }
 0x14e   :  { %3866 = vmatpush1.bf16.msra.mxu0 %v5330_v41  ;;  %4194 = vmatpush1.bf16.msra.mxu1 %v5333_v42  ;;  %v5390_v41 = vld [vmem:[%s7689_s3 + $0x660] ss:$16 sps:$4 sm:$0xff]   ;;  %v5393_v42 = vld [vmem:[%s7689_s3 + $0x668] ss:$16 sps:$4 sm:$0xff]  }
 0x14f   :  { %3867 = vmatprep.subr.bf16.mxu0 %v5338_v43  ;;  %4195 = vmatprep.subr.bf16.mxu1 %v5341_v37  ;;  %v5398_v43 = vld [vmem:[%s7689_s3 + $0x684] ss:$16 sps:$4 sm:$0xff]   ;;  %v5401_v37 = vld [vmem:[%s7689_s3 + $0x68c] ss:$16 sps:$4 sm:$0xff]  }
 0x152   :  { %3868 = vmatpush1.bf16.msra.mxu0 %v5336_v45  ;;  %4196 = vmatpush1.bf16.msra.mxu1 %v5339_v46  ;;  %v5396_v45 = vld [vmem:[%s7689_s3 + $0x680] ss:$16 sps:$4 sm:$0xff]   ;;  %v5399_v46 = vld [vmem:[%s7689_s3 + $0x688] ss:$16 sps:$4 sm:$0xff]  }
 0x153   :  { %3869 = vmatprep.subr.bf16.mxu0 %v5344_v47  ;;  %4197 = vmatprep.subr.bf16.mxu1 %v5347_v48  ;;  %v5404_v47 = vld [vmem:[%s7689_s3 + $0x6a4] ss:$16 sps:$4 sm:$0xff]   ;;  %v5407_v48 = vld [vmem:[%s7689_s3 + $0x6ac] ss:$16 sps:$4 sm:$0xff]  }
 0x156   :  { %3870 = vmatpush1.bf16.msra.mxu0 %v5342_v49  ;;  %4198 = vmatpush1.bf16.msra.mxu1 %v5345_v50  ;;  %v5402_v49 = vld [vmem:[%s7689_s3 + $0x6a0] ss:$16 sps:$4 sm:$0xff]   ;;  %v5405_v50 = vld [vmem:[%s7689_s3 + $0x6a8] ss:$16 sps:$4 sm:$0xff]  }
 0x157   :  { %3871 = vmatprep.subr.bf16.mxu0 %v5350_v51  ;;  %4199 = vmatprep.subr.bf16.mxu1 %v5353_v54  ;;  %v5410_v51 = vld [vmem:[%s7689_s3 + $0x6c4] ss:$16 sps:$4 sm:$0xff]   ;;  %v5413_v54 = vld [vmem:[%s7689_s3 + $0x6cc] ss:$16 sps:$4 sm:$0xff]  }
 0x15a   :  { %3872 = vmatpush1.bf16.msra.mxu0 %v5348_v57  ;;  %4200 = vmatpush1.bf16.msra.mxu1 %v5351_v58  ;;  %v5408_v57 = vld [vmem:[%s7689_s3 + $0x6c0] ss:$16 sps:$4 sm:$0xff]   ;;  %v5411_v58 = vld [vmem:[%s7689_s3 + $0x6c8] ss:$16 sps:$4 sm:$0xff]  }
 0x15b   :  { %3873 = vmatprep.subr.bf16.mxu0 %v5356_v59  ;;  %4201 = vmatprep.subr.bf16.mxu1 %v5359_v60  ;;  %v5416_v59 = vld [vmem:[%s7689_s3 + $0x6e4] ss:$16 sps:$4 sm:$0xff]   ;;  %v5419_v60 = vld [vmem:[%s7689_s3 + $0x6ec] ss:$16 sps:$4 sm:$0xff]  }
 0x15e   :  { %3874 = vmatpush1.bf16.msra.mxu0 %v5354_v62  ;;  %4202 = vmatpush1.bf16.msra.mxu1 %v5357_v63  ;;  %v5417_v62 = vld [vmem:[%s7689_s3 + $0x6e8] ss:$16 sps:$4 sm:$0xff]   ;;  %v5422_v63 = vld [vmem:[%s7689_s3 + $0x704] ss:$16 sps:$4 sm:$0xff]  }
 0x15f   :  { %3875 = vmatprep.subr.bf16.mxu0 %v5362_v0  ;;  %4203 = vmatprep.subr.bf16.mxu1 %v5365_v2  ;;  %v5425_v0 = vld [vmem:[%s7689_s3 + $0x70c] ss:$16 sps:$4 sm:$0xff]   ;;  %v5420_v2 = vld [vmem:[%s7689_s3 + $0x700] ss:$16 sps:$4 sm:$0xff]  }
 0x162   :  { %3876 = vmatpush1.bf16.msra.mxu0 %v5360_v11  ;;  %4204 = vmatpush1.bf16.msra.mxu1 %v5363_v12  ;;  %v5431_v11 = vld [vmem:[%s7689_s3 + $0x72c] ss:$16 sps:$4 sm:$0xff]   ;;  %v5426_v12 = vld [vmem:[%s7689_s3 + $0x720] ss:$16 sps:$4 sm:$0xff]  }
 0x163   :  { %3877 = vmatprep.subr.bf16.mxu0 %v5368_v13  ;;  %4205 = vmatprep.subr.bf16.mxu1 %v5371_v8  ;;  %v5429_v13 = vld [vmem:[%s7689_s3 + $0x728] ss:$16 sps:$4 sm:$0xff]   ;;  %v5434_v8 = vld [vmem:[%s7689_s3 + $0x744] ss:$16 sps:$4 sm:$0xff]  }
 0x166   :  { %3878 = vmatpush1.bf16.msra.mxu0 %v5366_v14  ;;  %4206 = vmatpush1.bf16.msra.mxu1 %v5369_v15  ;;  %v5435_v14 = vld [vmem:[%s7689_s3 + $0x748] ss:$16 sps:$4 sm:$0xff]   ;;  %v5440_v15 = vld [vmem:[%s7689_s3 + $0x764] ss:$16 sps:$4 sm:$0xff]  }
 0x167   :  { %3888 = vmatprep.subr.bf16.mxu0 %v5374_v18  ;;  %4216 = vmatprep.subr.bf16.mxu1 %v5377_v44  ;;  %v5443_v18 = vld [vmem:[%s7689_s3 + $0x76c] ss:$16 sps:$4 sm:$0xff]   ;;  %v5438_v44 = vld [vmem:[%s7689_s3 + $0x760] ss:$16 sps:$4 sm:$0xff]  }
 0x169   :  { %3880 = vmatmul.mubr.bf16.vlgmr.msra.gmra.mrb[16].mxu0 %v659_v23  ;;  %4208 = vmatmul.mubr.bf16.vlgmr.msra.gmra.mrb[16].mxu1 %v659_v23  ;;  %v5446_v23 = vld [vmem:[%s7689_s3 + $0x784] ss:$16 sps:$4 sm:$0xff]  }
 0x16a   :  { %3889 = vmatpush1.bf16.msra.mxu0 %v5372_v24  ;;  %4217 = vmatpush1.bf16.msra.mxu1 %v5375_v25  ;;  %v5449_v24 = vld [vmem:[%s7689_s3 + $0x78c] ss:$16 sps:$4 sm:$0xff]   ;;  %v5444_v25 = vld [vmem:[%s7689_s3 + $0x780] ss:$16 sps:$4 sm:$0xff]  }
 0x16b   :  { %3890 = vmatprep.subr.bf16.mxu0 %v5380_v26  ;;  %4218 = vmatprep.subr.bf16.mxu1 %v5383_v27  ;;  %v5447_v26 = vld [vmem:[%s7689_s3 + $0x788] ss:$16 sps:$4 sm:$0xff]   ;;  %v5452_v27 = vld [vmem:[%s7689_s3 + $0x7a4] ss:$16 sps:$4 sm:$0xff]  }
 0x16c   :  { %3920 = vmatprep.mubr.bf16.mxu0 %v662_v28  ;;  %4248 = vmatprep.mubr.bf16.mxu1 %v662_v28  ;;  %v5455_v28 = vld [vmem:[%s7689_s3 + $0x7ac] ss:$16 sps:$4 sm:$0xff]  }
 0x16e   :  { %3891 = vmatpush1.bf16.msra.mxu0 %v5378_v29  ;;  %4219 = vmatpush1.bf16.msra.mxu1 %v5381_v30  ;;  %v5450_v29 = vld [vmem:[%s7689_s3 + $0x7a0] ss:$16 sps:$4 sm:$0xff]   ;;  %v5453_v30 = vld [vmem:[%s7689_s3 + $0x7a8] ss:$16 sps:$4 sm:$0xff]  }
 0x16f   :  { %3892 = vmatprep.subr.bf16.mxu0 %v5386_v31  ;;  %4220 = vmatprep.subr.bf16.mxu1 %v5389_v33  ;;  %v5852_v31 = vld [vmem:[%s7690_s2] sm:$0xff] }
 0x170   :  { %v94_v33 = vrot.slane %v5852_v31, %v93_v17  ;;  %v5459_v17 = vld [vmem:[%s7689_s3 + $0x7c8] ss:$16 sps:$4 sm:$0xff]   ;;  %v5524_v31 = vld [vmem:[%s7689_s3 + $0x924] ss:$16 sps:$4 sm:$0xff]  }
 0x172   :  { %3893 = vmatpush1.bf16.msra.mxu0 %v5384_v35  ;;  %4221 = vmatpush1.bf16.msra.mxu1 %v5387_v19  ;;  %v5458_v35 = vld [vmem:[%s7689_s3 + $0x7c4] ss:$16 sps:$4 sm:$0xff]   ;;  %v5461_v19 = vld [vmem:[%s7689_s3 + $0x7cc] ss:$16 sps:$4 sm:$0xff]  }
 0x173   :  { %3894 = vmatprep.subr.bf16.mxu0 %v5392_v16  ;;  %4222 = vmatprep.subr.bf16.mxu1 %v5395_v39  ;;  %v106_v16 = vrot.slane %v6300_v55, %v6229_v9  ;;  %v469_v39 = vadd.f32 %v6264_v40, %v94_v33  ;;  %v5467_v55 = vld [vmem:[%s7689_s3 + $0x7ec] ss:$16 sps:$4 sm:$0xff]   ;;  %v5465_v40 = vld [vmem:[%s7689_s3 + $0x7e8] ss:$16 sps:$4 sm:$0xff]  }
 0x174   :  { %v5527_v33 = vld [vmem:[%s7689_s3 + $0x92c] ss:$16 sps:$4 sm:$0xff]  }
 0x176   :  { %3895 = vmatpush1.bf16.msra.mxu0 %v5390_v41  ;;  %4223 = vmatpush1.bf16.msra.mxu1 %v5393_v42  ;;  %v5464_v41 = vld [vmem:[%s7689_s3 + $0x7e4] ss:$16 sps:$4 sm:$0xff]   ;;  %v512_v42 = vadd.f32 %v6302_v56, %v106_v16  ;;  %v5473_v56 = vld [vmem:[%s7689_s3 + $0x80c] ss:$16 sps:$4 sm:$0xff]  }
 0x177   :  { %3896 = vmatprep.subr.bf16.mxu0 %v5398_v43  ;;  %4224 = vmatprep.subr.bf16.mxu1 %v5401_v37  ;;  %v5462_v43 = vld [vmem:[%s7689_s3 + $0x7e0] ss:$16 sps:$4 sm:$0xff]   ;;  %v645_v37 = vmax.f32 %v469_v39, 0.0  ;;  %v5530_v16 = vld [vmem:[%s7689_s3 + $0x944] ss:$16 sps:$4 sm:$0xff]  }
 0x178   :  { %v5531_v39 = vld [vmem:[%s7689_s3 + $0x948] ss:$16 sps:$4 sm:$0xff]  }
 0x17a   :  { %3897 = vmatpush1.bf16.msra.mxu0 %v5396_v45  ;;  %4225 = vmatpush1.bf16.msra.mxu1 %v5399_v46  ;;  %v5470_v45 = vld [vmem:[%s7689_s3 + $0x804] ss:$16 sps:$4 sm:$0xff]   ;;  %v648_v46 = vmax.f32 %v512_v42, 0.0  ;;  %v5534_v42 = vld [vmem:[%s7689_s3 + $0x960] ss:$16 sps:$4 sm:$0xff]  }
 0x17b   :  { %3898 = vmatprep.subr.bf16.mxu0 %v5404_v47  ;;  %4226 = vmatprep.subr.bf16.mxu1 %v5407_v48  ;;  %v5468_v47 = vld [vmem:[%s7689_s3 + $0x800] ss:$16 sps:$4 sm:$0xff]   ;;  %v661_v48 = vpack.c.bf16 %v645_v37, %v645_v37  ;;  %v5545_v37 = vld [vmem:[%s7689_s3 + $0x98c] ss:$16 sps:$4 sm:$0xff]  }
 0x17e   :  { %3899 = vmatpush1.bf16.msra.mxu0 %v5402_v49  ;;  %4227 = vmatpush1.bf16.msra.mxu1 %v5405_v50  ;;  %v5471_v49 = vld [vmem:[%s7689_s3 + $0x808] ss:$16 sps:$4 sm:$0xff]   ;;  %v664_v50 = vpack.c.bf16 %v648_v46, %v648_v46  ;;  %v5548_v46 = vld [vmem:[%s7689_s3 + $0x9a4] ss:$16 sps:$4 sm:$0xff]  }
 0x17f   :  { %3900 = vmatprep.subr.bf16.mxu0 %v5410_v51  ;;  %4228 = vmatprep.subr.bf16.mxu1 %v5413_v54  ;;  %v5476_v51 = vld [vmem:[%s7689_s3 + $0x824] ss:$16 sps:$4 sm:$0xff]   ;;  %v5479_v54 = vld [vmem:[%s7689_s3 + $0x82c] ss:$16 sps:$4 sm:$0xff]  }
 0x182   :  { %3901 = vmatpush1.bf16.msra.mxu0 %v5408_v57  ;;  %4229 = vmatpush1.bf16.msra.mxu1 %v5411_v58  ;;  %v5474_v57 = vld [vmem:[%s7689_s3 + $0x820] ss:$16 sps:$4 sm:$0xff]   ;;  %v5477_v58 = vld [vmem:[%s7689_s3 + $0x828] ss:$16 sps:$4 sm:$0xff]  }
 0x183   :  { %3902 = vmatprep.subr.bf16.mxu0 %v5416_v59  ;;  %4230 = vmatprep.subr.bf16.mxu1 %v5419_v60  ;;  %v5482_v59 = vld [vmem:[%s7689_s3 + $0x844] ss:$16 sps:$4 sm:$0xff]   ;;  %v5485_v60 = vld [vmem:[%s7689_s3 + $0x84c] ss:$16 sps:$4 sm:$0xff]  }
 0x186   :  { %3903 = vmatpush1.bf16.msra.mxu0 %v5414_v61  ;;  %4231 = vmatpush1.bf16.msra.mxu1 %v5417_v62  ;;  %v5480_v61 = vld [vmem:[%s7689_s3 + $0x840] ss:$16 sps:$4 sm:$0xff]   ;;  %v5483_v62 = vld [vmem:[%s7689_s3 + $0x848] ss:$16 sps:$4 sm:$0xff]  }
 0x187   :  { %3904 = vmatprep.subr.bf16.mxu0 %v5422_v63  ;;  %4232 = vmatprep.subr.bf16.mxu1 %v5425_v0  ;;  %v5488_v63 = vld [vmem:[%s7689_s3 + $0x864] ss:$16 sps:$4 sm:$0xff]   ;;  %v5491_v0 = vld [vmem:[%s7689_s3 + $0x86c] ss:$16 sps:$4 sm:$0xff]  }
 0x18a   :  { %3905 = vmatpush1.bf16.msra.mxu0 %v5420_v2  ;;  %4233 = vmatpush1.bf16.msra.mxu1 %v5423_v1  ;;  %v5486_v2 = vld [vmem:[%s7689_s3 + $0x860] ss:$16 sps:$4 sm:$0xff]   ;;  %v5489_v1 = vld [vmem:[%s7689_s3 + $0x868] ss:$16 sps:$4 sm:$0xff]  }
 0x18b   :  { %3906 = vmatprep.subr.bf16.mxu0 %v5428_v6  ;;  %4234 = vmatprep.subr.bf16.mxu1 %v5431_v11  ;;  %v5494_v6 = vld [vmem:[%s7689_s3 + $0x884] ss:$16 sps:$4 sm:$0xff]   ;;  %v5497_v11 = vld [vmem:[%s7689_s3 + $0x88c] ss:$16 sps:$4 sm:$0xff]  }
 0x18e   :  { %3907 = vmatpush1.bf16.msra.mxu0 %v5426_v12  ;;  %4235 = vmatpush1.bf16.msra.mxu1 %v5429_v13  ;;  %v5492_v12 = vld [vmem:[%s7689_s3 + $0x880] ss:$16 sps:$4 sm:$0xff]   ;;  %v5495_v13 = vld [vmem:[%s7689_s3 + $0x888] ss:$16 sps:$4 sm:$0xff]  }
 0x18f   :  { %3908 = vmatprep.subr.bf16.mxu0 %v5434_v8  ;;  %4236 = vmatprep.subr.bf16.mxu1 %v5437_v36  ;;  %v5500_v8 = vld [vmem:[%s7689_s3 + $0x8a4] ss:$16 sps:$4 sm:$0xff]   ;;  %v5503_v36 = vld [vmem:[%s7689_s3 + $0x8ac] ss:$16 sps:$4 sm:$0xff]  }
 0x192   :  { %3909 = vmatpush1.bf16.msra.mxu0 %v5432_v20  ;;  %4237 = vmatpush1.bf16.msra.mxu1 %v5435_v14  ;;  %v5498_v20 = vld [vmem:[%s7689_s3 + $0x8a0] ss:$16 sps:$4 sm:$0xff]   ;;  %v5501_v14 = vld [vmem:[%s7689_s3 + $0x8a8] ss:$16 sps:$4 sm:$0xff]  }
 0x193   :  { %3910 = vmatprep.subr.bf16.mxu0 %v5440_v15  ;;  %4238 = vmatprep.subr.bf16.mxu1 %v5443_v18  ;;  %v5506_v15 = vld [vmem:[%s7689_s3 + $0x8c4] ss:$16 sps:$4 sm:$0xff]   ;;  %v5509_v18 = vld [vmem:[%s7689_s3 + $0x8cc] ss:$16 sps:$4 sm:$0xff]  }
 0x196   :  { %3911 = vmatpush1.bf16.msra.mxu0 %v5438_v44  ;;  %4239 = vmatpush1.bf16.msra.mxu1 %v5441_v22  ;;  %v5504_v44 = vld [vmem:[%s7689_s3 + $0x8c0] ss:$16 sps:$4 sm:$0xff]   ;;  %v5507_v22 = vld [vmem:[%s7689_s3 + $0x8c8] ss:$16 sps:$4 sm:$0xff]  }
 0x197   :  { %3912 = vmatprep.subr.bf16.mxu0 %v5446_v23  ;;  %4240 = vmatprep.subr.bf16.mxu1 %v5449_v24  ;;  %v5512_v23 = vld [vmem:[%s7689_s3 + $0x8e4] ss:$16 sps:$4 sm:$0xff]   ;;  %v5515_v24 = vld [vmem:[%s7689_s3 + $0x8ec] ss:$16 sps:$4 sm:$0xff]  }
 0x19a   :  { %3913 = vmatpush1.bf16.msra.mxu0 %v5444_v25  ;;  %4241 = vmatpush1.bf16.msra.mxu1 %v5447_v26  ;;  %v5510_v25 = vld [vmem:[%s7689_s3 + $0x8e0] ss:$16 sps:$4 sm:$0xff]   ;;  %v5513_v26 = vld [vmem:[%s7689_s3 + $0x8e8] ss:$16 sps:$4 sm:$0xff]  }
 0x19b   :  { %3914 = vmatprep.subr.bf16.mxu0 %v5452_v27  ;;  %4242 = vmatprep.subr.bf16.mxu1 %v5455_v28  ;;  %v5518_v27 = vld [vmem:[%s7689_s3 + $0x904] ss:$16 sps:$4 sm:$0xff]   ;;  %v5521_v28 = vld [vmem:[%s7689_s3 + $0x90c] ss:$16 sps:$4 sm:$0xff]  }
 0x19e   :  { %3915 = vmatpush1.bf16.msra.mxu0 %v5450_v29  ;;  %4243 = vmatpush1.bf16.msra.mxu1 %v5453_v30  ;;  %v5516_v29 = vld [vmem:[%s7689_s3 + $0x900] ss:$16 sps:$4 sm:$0xff]   ;;  %v5519_v30 = vld [vmem:[%s7689_s3 + $0x908] ss:$16 sps:$4 sm:$0xff]  }
 0x19f   :  { %3916 = vmatprep.subr.bf16.mxu0 %v5458_v35  ;;  %4244 = vmatprep.subr.bf16.mxu1 %v5461_v19  ;;  %v5522_v35 = vld [vmem:[%s7689_s3 + $0x920] ss:$16 sps:$4 sm:$0xff]   ;;  %v5525_v19 = vld [vmem:[%s7689_s3 + $0x928] ss:$16 sps:$4 sm:$0xff]  }
 0x1a2   :  { %3917 = vmatpush1.bf16.msra.mxu0 %v5456_v7  ;;  %4245 = vmatpush1.bf16.msra.mxu1 %v5459_v17  ;;  %v5533_v7 = vld [vmem:[%s7689_s3 + $0x94c] ss:$16 sps:$4 sm:$0xff]   ;;  %v5528_v17 = vld [vmem:[%s7689_s3 + $0x940] ss:$16 sps:$4 sm:$0xff]  }
 0x1a3   :  { %3918 = vmatprep.subr.bf16.mxu0 %v5464_v41  ;;  %4246 = vmatprep.subr.bf16.mxu1 %v5467_v55  ;;  %v5536_v41 = vld [vmem:[%s7689_s3 + $0x964] ss:$16 sps:$4 sm:$0xff]   ;;  %v5539_v55 = vld [vmem:[%s7689_s3 + $0x96c] ss:$16 sps:$4 sm:$0xff]  }
 0x1a6   :  { %3919 = vmatpush1.bf16.msra.mxu0 %v5462_v43  ;;  %4247 = vmatpush1.bf16.msra.mxu1 %v5465_v40  ;;  %v5537_v43 = vld [vmem:[%s7689_s3 + $0x968] ss:$16 sps:$4 sm:$0xff]   ;;  %v5542_v40 = vld [vmem:[%s7689_s3 + $0x984] ss:$16 sps:$4 sm:$0xff]  }
 0x1a7   :  { %3929 = vmatprep.subr.bf16.mxu0 %v5470_v45  ;;  %4257 = vmatprep.subr.bf16.mxu1 %v5473_v56  ;;  %v5540_v45 = vld [vmem:[%s7689_s3 + $0x980] ss:$16 sps:$4 sm:$0xff]   ;;  %v5543_v56 = vld [vmem:[%s7689_s3 + $0x988] ss:$16 sps:$4 sm:$0xff]  }
 0x1a9   :  { %3921 = vmatmul.mubr.bf16.vlgmr.msra.gmra.mrb[16].mxu0 %v661_v48  ;;  %4249 = vmatmul.mubr.bf16.vlgmr.msra.gmra.mrb[16].mxu1 %v661_v48  ;;  %v5546_v48 = vld [vmem:[%s7689_s3 + $0x9a0] ss:$16 sps:$4 sm:$0xff]  }
 0x1aa   :  { %3930 = vmatpush1.bf16.msra.mxu0 %v5468_v47  ;;  %3961 = vmatprep.mubr.bf16.mxu0 %v664_v50  ;;  %v5551_v47 = vld [vmem:[%s7689_s3 + $0x9ac] ss:$16 sps:$4 sm:$0xff]  }
 0x1ab   :  { %4258 = vmatpush1.bf16.msra.mxu1 %v5471_v49  ;;  %4289 = vmatprep.mubr.bf16.mxu1 %v664_v50  ;;  %v5853_v49 = vld [vmem:[%s7690_s2 + $0x8] sm:$0xff] }
 0x1ac   :  { %3931 = vmatprep.subr.bf16.mxu0 %v5476_v51  ;;  %4259 = vmatprep.subr.bf16.mxu1 %v5479_v54  ;;  %v102_v50 = vrot.slane %v5853_v49, %v6221_v3  ;;  %v5549_v51 = vld [vmem:[%s7689_s3 + $0x9a8] ss:$16 sps:$4 sm:$0xff]   ;;  %v5554_v54 = vld [vmem:[%s7689_s3 + $0x9c4] ss:$16 sps:$4 sm:$0xff]  }
 0x1ad   :  { %v5621_v49 = vld [vmem:[%s7689_s3 + $0xb28] ss:$16 sps:$4 sm:$0xff]  }
 0x1ae   :  { %3932 = vmatpush1.bf16.msra.mxu0 %v5474_v57  ;;  %v5557_v57 = vld [vmem:[%s7689_s3 + $0x9cc] ss:$16 sps:$4 sm:$0xff]  }
 0x1af   :  { %4260 = vmatpush1.bf16.msra.mxu1 %v5477_v58  ;;  %3933 = vmatprep.subr.bf16.mxu0 %v5482_v59  ;;  %v5552_v58 = vld [vmem:[%s7689_s3 + $0x9c0] ss:$16 sps:$4 sm:$0xff]   ;;  %v510_v59 = vadd.f32 %v6289_v52, %v102_v50  ;;  %v5626_v50 = vld [vmem:[%s7689_s3 + $0xb44] ss:$16 sps:$4 sm:$0xff]  }
 0x1b0   :  { %4261 = vmatprep.subr.bf16.mxu1 %v5485_v60  ;;  %v5555_v60 = vld [vmem:[%s7689_s3 + $0x9c8] ss:$16 sps:$4 sm:$0xff]   ;;  %v5558_v52 = vld [vmem:[%s7689_s3 + $0x9e0] ss:$16 sps:$4 sm:$0xff]  }
 0x1b2   :  { %3934 = vmatpush1.bf16.msra.mxu0 %v5480_v61  ;;  %v5560_v61 = vld [vmem:[%s7689_s3 + $0x9e4] ss:$16 sps:$4 sm:$0xff]  }
 0x1b3   :  { %4262 = vmatpush1.bf16.msra.mxu1 %v5483_v62  ;;  %3935 = vmatprep.subr.bf16.mxu0 %v5488_v63  ;;  %v5563_v62 = vld [vmem:[%s7689_s3 + $0x9ec] ss:$16 sps:$4 sm:$0xff]   ;;  %v647_v63 = vmax.f32 %v510_v59, 0.0 }
 0x1b4   :  { %4263 = vmatprep.subr.bf16.mxu1 %v5491_v0  ;;  %v5561_v0 = vld [vmem:[%s7689_s3 + $0x9e8] ss:$16 sps:$4 sm:$0xff]   ;;  %v5635_v59 = vld [vmem:[%s7689_s3 + $0xb6c] ss:$16 sps:$4 sm:$0xff]  }
 0x1b6   :  { %3936 = vmatpush1.bf16.msra.mxu0 %v5486_v2  ;;  %v5566_v2 = vld [vmem:[%s7689_s3 + $0xa04] ss:$16 sps:$4 sm:$0xff]  }
 0x1b7   :  { %4264 = vmatpush1.bf16.msra.mxu1 %v5489_v1  ;;  %3937 = vmatprep.subr.bf16.mxu0 %v5494_v6  ;;  %v5569_v1 = vld [vmem:[%s7689_s3 + $0xa0c] ss:$16 sps:$4 sm:$0xff]   ;;  %v650_v6 = vmax.f32 %v6317_v5, 0.0 }
 0x1b8   :  { %4265 = vmatprep.subr.bf16.mxu1 %v5497_v11  ;;  %v5564_v11 = vld [vmem:[%s7689_s3 + $0xa00] ss:$16 sps:$4 sm:$0xff]   ;;  %v5575_v5 = vld [vmem:[%s7689_s3 + $0xa2c] ss:$16 sps:$4 sm:$0xff]  }
 0x1ba   :  { %3938 = vmatpush1.bf16.msra.mxu0 %v5492_v12  ;;  %v663_v12 = vpack.c.bf16 %v647_v63, %v647_v63  ;;  %v5636_v63 = vld [vmem:[%s7689_s3 + $0xb80] ss:$16 sps:$4 sm:$0xff]  }
 0x1bb   :  { %4266 = vmatpush1.bf16.msra.mxu1 %v5495_v13  ;;  %3939 = vmatprep.subr.bf16.mxu0 %v5500_v8  ;;  %v5567_v13 = vld [vmem:[%s7689_s3 + $0xa08] ss:$16 sps:$4 sm:$0xff]   ;;  %v5572_v8 = vld [vmem:[%s7689_s3 + $0xa24] ss:$16 sps:$4 sm:$0xff]  }
 0x1bc   :  { %4267 = vmatprep.subr.bf16.mxu1 %v5503_v36  ;;  %v666_v36 = vpack.c.bf16 %v650_v6, %v650_v6  ;;  %v5642_v6 = vld [vmem:[%s7689_s3 + $0xba0] ss:$16 sps:$4 sm:$0xff]  }
 0x1be   :  { %3940 = vmatpush1.bf16.msra.mxu0 %v5498_v20  ;;  %v5570_v20 = vld [vmem:[%s7689_s3 + $0xa20] ss:$16 sps:$4 sm:$0xff]  }
 0x1bf   :  { %4268 = vmatpush1.bf16.msra.mxu1 %v5501_v14  ;;  %3941 = vmatprep.subr.bf16.mxu0 %v5506_v15  ;;  %v5573_v14 = vld [vmem:[%s7689_s3 + $0xa28] ss:$16 sps:$4 sm:$0xff]   ;;  %v5578_v15 = vld [vmem:[%s7689_s3 + $0xa44] ss:$16 sps:$4 sm:$0xff]  }
 0x1c0   :  { %4269 = vmatprep.subr.bf16.mxu1 %v5509_v18  ;;  %v5581_v18 = vld [vmem:[%s7689_s3 + $0xa4c] ss:$16 sps:$4 sm:$0xff]  }
 0x1c2   :  { %3942 = vmatpush1.bf16.msra.mxu0 %v5504_v44  ;;  %v5576_v44 = vld [vmem:[%s7689_s3 + $0xa40] ss:$16 sps:$4 sm:$0xff]  }
 0x1c3   :  { %4270 = vmatpush1.bf16.msra.mxu1 %v5507_v22  ;;  %3943 = vmatprep.subr.bf16.mxu0 %v5512_v23  ;;  %v5579_v22 = vld [vmem:[%s7689_s3 + $0xa48] ss:$16 sps:$4 sm:$0xff]   ;;  %v5584_v23 = vld [vmem:[%s7689_s3 + $0xa64] ss:$16 sps:$4 sm:$0xff]  }
 0x1c4   :  { %4271 = vmatprep.subr.bf16.mxu1 %v5515_v24  ;;  %v5587_v24 = vld [vmem:[%s7689_s3 + $0xa6c] ss:$16 sps:$4 sm:$0xff]  }
 0x1c6   :  { %3944 = vmatpush1.bf16.msra.mxu0 %v5510_v25  ;;  %v5582_v25 = vld [vmem:[%s7689_s3 + $0xa60] ss:$16 sps:$4 sm:$0xff]  }
 0x1c7   :  { %4272 = vmatpush1.bf16.msra.mxu1 %v5513_v26  ;;  %3945 = vmatprep.subr.bf16.mxu0 %v5518_v27  ;;  %v5585_v26 = vld [vmem:[%s7689_s3 + $0xa68] ss:$16 sps:$4 sm:$0xff]   ;;  %v5590_v27 = vld [vmem:[%s7689_s3 + $0xa84] ss:$16 sps:$4 sm:$0xff]  }
 0x1c8   :  { %4273 = vmatprep.subr.bf16.mxu1 %v5521_v28  ;;  %v5593_v28 = vld [vmem:[%s7689_s3 + $0xa8c] ss:$16 sps:$4 sm:$0xff]  }
 0x1ca   :  { %3946 = vmatpush1.bf16.msra.mxu0 %v5516_v29  ;;  %v5588_v29 = vld [vmem:[%s7689_s3 + $0xa80] ss:$16 sps:$4 sm:$0xff]  }
 0x1cb   :  { %4274 = vmatpush1.bf16.msra.mxu1 %v5519_v30  ;;  %3947 = vmatprep.subr.bf16.mxu0 %v5524_v31  ;;  %v5591_v30 = vld [vmem:[%s7689_s3 + $0xa88] ss:$16 sps:$4 sm:$0xff]   ;;  %v5596_v31 = vld [vmem:[%s7689_s3 + $0xaa4] ss:$16 sps:$4 sm:$0xff]  }
 0x1cc   :  { %4275 = vmatprep.subr.bf16.mxu1 %v5527_v33  ;;  %v5599_v33 = vld [vmem:[%s7689_s3 + $0xaac] ss:$16 sps:$4 sm:$0xff]  }
 0x1ce   :  { %3948 = vmatpush1.bf16.msra.mxu0 %v5522_v35  ;;  %v5594_v35 = vld [vmem:[%s7689_s3 + $0xaa0] ss:$16 sps:$4 sm:$0xff]  }
 0x1cf   :  { %4276 = vmatpush1.bf16.msra.mxu1 %v5525_v19  ;;  %3949 = vmatprep.subr.bf16.mxu0 %v5530_v16  ;;  %v5597_v19 = vld [vmem:[%s7689_s3 + $0xaa8] ss:$16 sps:$4 sm:$0xff]   ;;  %v5602_v16 = vld [vmem:[%s7689_s3 + $0xac4] ss:$16 sps:$4 sm:$0xff]  }
 0x1d0   :  { %4277 = vmatprep.subr.bf16.mxu1 %v5533_v7  ;;  %v5605_v7 = vld [vmem:[%s7689_s3 + $0xacc] ss:$16 sps:$4 sm:$0xff]  }
 0x1d2   :  { %3950 = vmatpush1.bf16.msra.mxu0 %v5528_v17  ;;  %v5600_v17 = vld [vmem:[%s7689_s3 + $0xac0] ss:$16 sps:$4 sm:$0xff]  }
 0x1d3   :  { %4278 = vmatpush1.bf16.msra.mxu1 %v5531_v39  ;;  %3951 = vmatprep.subr.bf16.mxu0 %v5536_v41  ;;  %v5603_v39 = vld [vmem:[%s7689_s3 + $0xac8] ss:$16 sps:$4 sm:$0xff]   ;;  %v5608_v41 = vld [vmem:[%s7689_s3 + $0xae4] ss:$16 sps:$4 sm:$0xff]  }
 0x1d4   :  { %4279 = vmatprep.subr.bf16.mxu1 %v5539_v55  ;;  %v5611_v55 = vld [vmem:[%s7689_s3 + $0xaec] ss:$16 sps:$4 sm:$0xff]  }
 0x1d6   :  { %3952 = vmatpush1.bf16.msra.mxu0 %v5534_v42  ;;  %v5606_v42 = vld [vmem:[%s7689_s3 + $0xae0] ss:$16 sps:$4 sm:$0xff]  }
 0x1d7   :  { %4280 = vmatpush1.bf16.msra.mxu1 %v5537_v43  ;;  %3953 = vmatprep.subr.bf16.mxu0 %v5542_v40  ;;  %v5609_v43 = vld [vmem:[%s7689_s3 + $0xae8] ss:$16 sps:$4 sm:$0xff]   ;;  %v5614_v40 = vld [vmem:[%s7689_s3 + $0xb04] ss:$16 sps:$4 sm:$0xff]  }
 0x1d8   :  { %4281 = vmatprep.subr.bf16.mxu1 %v5545_v37  ;;  %v5617_v37 = vld [vmem:[%s7689_s3 + $0xb0c] ss:$16 sps:$4 sm:$0xff]  }
 0x1da   :  { %3954 = vmatpush1.bf16.msra.mxu0 %v5540_v45  ;;  %v5612_v45 = vld [vmem:[%s7689_s3 + $0xb00] ss:$16 sps:$4 sm:$0xff]  }
 0x1db   :  { %4282 = vmatpush1.bf16.msra.mxu1 %v5543_v56  ;;  %3955 = vmatprep.subr.bf16.mxu0 %v5548_v46  ;;  %v5615_v56 = vld [vmem:[%s7689_s3 + $0xb08] ss:$16 sps:$4 sm:$0xff]   ;;  %v5620_v46 = vld [vmem:[%s7689_s3 + $0xb24] ss:$16 sps:$4 sm:$0xff]  }
 0x1dc   :  { %4283 = vmatprep.subr.bf16.mxu1 %v5551_v47  ;;  %v5623_v47 = vld [vmem:[%s7689_s3 + $0xb2c] ss:$16 sps:$4 sm:$0xff]  }
 0x1de   :  { %3956 = vmatpush1.bf16.msra.mxu0 %v5546_v48  ;;  %v5618_v48 = vld [vmem:[%s7689_s3 + $0xb20] ss:$16 sps:$4 sm:$0xff]  }
 0x1df   :  { %4284 = vmatpush1.bf16.msra.mxu1 %v5549_v51  ;;  %3957 = vmatprep.subr.bf16.mxu0 %v5554_v54  ;;  %v5629_v51 = vld [vmem:[%s7689_s3 + $0xb4c] ss:$16 sps:$4 sm:$0xff]   ;;  %v5624_v54 = vld [vmem:[%s7689_s3 + $0xb40] ss:$16 sps:$4 sm:$0xff]  }
 0x1e0   :  { %4285 = vmatprep.subr.bf16.mxu1 %v5557_v57  ;;  %v5627_v57 = vld [vmem:[%s7689_s3 + $0xb48] ss:$16 sps:$4 sm:$0xff]  }
 0x1e2   :  { %3958 = vmatpush1.bf16.msra.mxu0 %v5552_v58  ;;  %v5632_v58 = vld [vmem:[%s7689_s3 + $0xb64] ss:$16 sps:$4 sm:$0xff]  }
 0x1e3   :  { %4286 = vmatpush1.bf16.msra.mxu1 %v5555_v60  ;;  %3959 = vmatprep.subr.bf16.mxu0 %v5560_v61  ;;  %v5630_v60 = vld [vmem:[%s7689_s3 + $0xb60] ss:$16 sps:$4 sm:$0xff]   ;;  %v5633_v61 = vld [vmem:[%s7689_s3 + $0xb68] ss:$16 sps:$4 sm:$0xff]  }
 0x1e4   :  { %4287 = vmatprep.subr.bf16.mxu1 %v5563_v62  ;;  %v5638_v62 = vld [vmem:[%s7689_s3 + $0xb84] ss:$16 sps:$4 sm:$0xff]  }
 0x1e6   :  { %3960 = vmatpush1.bf16.msra.mxu0 %v5558_v52  ;;  %v5641_v52 = vld [vmem:[%s7689_s3 + $0xb8c] ss:$16 sps:$4 sm:$0xff]  }
 0x1e7   :  { %4288 = vmatpush1.bf16.msra.mxu1 %v5561_v0  ;;  %3970 = vmatprep.subr.bf16.mxu0 %v5566_v2  ;;  %v5639_v0 = vld [vmem:[%s7689_s3 + $0xb88] ss:$16 sps:$4 sm:$0xff]   ;;  %v5644_v2 = vld [vmem:[%s7689_s3 + $0xba4] ss:$16 sps:$4 sm:$0xff]  }
 0x1e8   :  { %4298 = vmatprep.subr.bf16.mxu1 %v5569_v1  ;;  %v5647_v1 = vld [vmem:[%s7689_s3 + $0xbac] ss:$16 sps:$4 sm:$0xff]  }
 0x1e9   :  { %3962 = vmatmul.mubr.bf16.vlgmr.msra.gmra.mrb[16].mxu0 %v663_v12 }
 0x1ea   :  { %4290 = vmatmul.mubr.bf16.vlgmr.msra.gmra.mrb[16].mxu1 %v663_v12  ;;  %3971 = vmatpush1.bf16.msra.mxu0 %v5564_v11  ;;  %v5645_v11 = vld [vmem:[%s7689_s3 + $0xba8] ss:$16 sps:$4 sm:$0xff]   ;;  %v5650_v12 = vld [vmem:[%s7689_s3 + $0xbc4] ss:$16 sps:$4 sm:$0xff]  }
 0x1eb   :  { %4002 = vmatprep.mubr.bf16.mxu0 %v666_v36  ;;  %4299 = vmatpush1.bf16.msra.mxu1 %v5567_v13  ;;  %v5653_v13 = vld [vmem:[%s7689_s3 + $0xbcc] ss:$16 sps:$4 sm:$0xff]  }
 0x1ec   :  { %4330 = vmatprep.mubr.bf16.mxu1 %v666_v36  ;;  %3972 = vmatprep.subr.bf16.mxu0 %v5572_v8  ;;  %v5648_v8 = vld [vmem:[%s7689_s3 + $0xbc0] ss:$16 sps:$4 sm:$0xff]   ;;  %v5651_v36 = vld [vmem:[%s7689_s3 + $0xbc8] ss:$16 sps:$4 sm:$0xff]  }
 0x1ed   :  { %4300 = vmatprep.subr.bf16.mxu1 %v5575_v5  ;;  %v5656_v5 = vld [vmem:[%s7689_s3 + $0xbe4] ss:$16 sps:$4 sm:$0xff]  }
 0x1ee   :  { %3973 = vmatpush1.bf16.msra.mxu0 %v5570_v20  ;;  %v5659_v20 = vld [vmem:[%s7689_s3 + $0xbec] ss:$16 sps:$4 sm:$0xff]  }
 0x1ef   :  { %4301 = vmatpush1.bf16.msra.mxu1 %v5573_v14  ;;  %3974 = vmatprep.subr.bf16.mxu0 %v5578_v15  ;;  %v5654_v14 = vld [vmem:[%s7689_s3 + $0xbe0] ss:$16 sps:$4 sm:$0xff]   ;;  %v649_v15 = vmax.f32 %v6315_v4, 0.0 }
 0x1f0   :  { %4302 = vmatprep.subr.bf16.mxu1 %v5581_v18  ;;  %v5657_v18 = vld [vmem:[%s7689_s3 + $0xbe8] ss:$16 sps:$4 sm:$0xff]   ;;  %v5660_v4 = vld [vmem:[%s7689_s3 + $0xc00] ss:$16 sps:$4 sm:$0xff]  }
 0x1f2   :  { %3975 = vmatpush1.bf16.msra.mxu0 %v5576_v44  ;;  %v5662_v44 = vld [vmem:[%s7689_s3 + $0xc04] ss:$16 sps:$4 sm:$0xff]  }
 0x1f3   :  { %4303 = vmatpush1.bf16.msra.mxu1 %v5579_v22  ;;  %3976 = vmatprep.subr.bf16.mxu0 %v5584_v23  ;;  %v5665_v22 = vld [vmem:[%s7689_s3 + $0xc0c] ss:$16 sps:$4 sm:$0xff]   ;;  %v652_v23 = vmax.f32 %v6360_v32, 0.0 }
 0x1f4   :  { %4304 = vmatprep.subr.bf16.mxu1 %v5587_v24  ;;  %v665_v24 = vpack.c.bf16 %v649_v15, %v649_v15  ;;  %v5671_v32 = vld [vmem:[%s7689_s3 + $0xc2c] ss:$16 sps:$4 sm:$0xff]   ;;  %v5740_v15 = vld [vmem:[%s7689_s3 + $0xda4] ss:$16 sps:$4 sm:$0xff]  }
 0x1f6   :  { %3977 = vmatpush1.bf16.msra.mxu0 %v5582_v25  ;;  %v5663_v25 = vld [vmem:[%s7689_s3 + $0xc08] ss:$16 sps:$4 sm:$0xff]  }
 0x1f7   :  { %4305 = vmatpush1.bf16.msra.mxu1 %v5585_v26  ;;  %3978 = vmatprep.subr.bf16.mxu0 %v5590_v27  ;;  %v5668_v26 = vld [vmem:[%s7689_s3 + $0xc24] ss:$16 sps:$4 sm:$0xff]   ;;  %v668_v27 = vpack.c.bf16 %v652_v23, %v652_v23 }
 0x1f8   :  { %4306 = vmatprep.subr.bf16.mxu1 %v5593_v28  ;;  %v5666_v28 = vld [vmem:[%s7689_s3 + $0xc20] ss:$16 sps:$4 sm:$0xff]   ;;  %v5746_v23 = vld [vmem:[%s7689_s3 + $0xdc4] ss:$16 sps:$4 sm:$0xff]  }
 0x1fa   :  { %3979 = vmatpush1.bf16.msra.mxu0 %v5588_v29  ;;  %v5669_v29 = vld [vmem:[%s7689_s3 + $0xc28] ss:$16 sps:$4 sm:$0xff]  }
 0x1fb   :  { %4307 = vmatpush1.bf16.msra.mxu1 %v5591_v30  ;;  %3980 = vmatprep.subr.bf16.mxu0 %v5596_v31  ;;  %v5674_v30 = vld [vmem:[%s7689_s3 + $0xc44] ss:$16 sps:$4 sm:$0xff]   ;;  %v5677_v31 = vld [vmem:[%s7689_s3 + $0xc4c] ss:$16 sps:$4 sm:$0xff]  }
 0x1fc   :  { %4308 = vmatprep.subr.bf16.mxu1 %v5599_v33  ;;  %v5672_v33 = vld [vmem:[%s7689_s3 + $0xc40] ss:$16 sps:$4 sm:$0xff]  }
 0x1fe   :  { %3981 = vmatpush1.bf16.msra.mxu0 %v5594_v35  ;;  %v5675_v35 = vld [vmem:[%s7689_s3 + $0xc48] ss:$16 sps:$4 sm:$0xff]  }
 0x1ff   :  { %4309 = vmatpush1.bf16.msra.mxu1 %v5597_v19  ;;  %3982 = vmatprep.subr.bf16.mxu0 %v5602_v16  ;;  %v5680_v19 = vld [vmem:[%s7689_s3 + $0xc64] ss:$16 sps:$4 sm:$0xff]   ;;  %v5683_v16 = vld [vmem:[%s7689_s3 + $0xc6c] ss:$16 sps:$4 sm:$0xff]  }
 0x200   :  { %4310 = vmatprep.subr.bf16.mxu1 %v5605_v7  ;;  %v5678_v7 = vld [vmem:[%s7689_s3 + $0xc60] ss:$16 sps:$4 sm:$0xff]  }
 0x202   :  { %3983 = vmatpush1.bf16.msra.mxu0 %v5600_v17  ;;  %v5681_v17 = vld [vmem:[%s7689_s3 + $0xc68] ss:$16 sps:$4 sm:$0xff]  }
 0x203   :  { %4311 = vmatpush1.bf16.msra.mxu1 %v5603_v39  ;;  %3984 = vmatprep.subr.bf16.mxu0 %v5608_v41  ;;  %v5686_v39 = vld [vmem:[%s7689_s3 + $0xc84] ss:$16 sps:$4 sm:$0xff]   ;;  %v5689_v41 = vld [vmem:[%s7689_s3 + $0xc8c] ss:$16 sps:$4 sm:$0xff]  }
 0x204   :  { %4312 = vmatprep.subr.bf16.mxu1 %v5611_v55  ;;  %v5684_v55 = vld [vmem:[%s7689_s3 + $0xc80] ss:$16 sps:$4 sm:$0xff]  }
 0x206   :  { %3985 = vmatpush1.bf16.msra.mxu0 %v5606_v42  ;;  %v5687_v42 = vld [vmem:[%s7689_s3 + $0xc88] ss:$16 sps:$4 sm:$0xff]  }
 0x207   :  { %4313 = vmatpush1.bf16.msra.mxu1 %v5609_v43  ;;  %3986 = vmatprep.subr.bf16.mxu0 %v5614_v40  ;;  %v5692_v43 = vld [vmem:[%s7689_s3 + $0xca4] ss:$16 sps:$4 sm:$0xff]   ;;  %v5695_v40 = vld [vmem:[%s7689_s3 + $0xcac] ss:$16 sps:$4 sm:$0xff]  }
 0x208   :  { %4314 = vmatprep.subr.bf16.mxu1 %v5617_v37  ;;  %v5690_v37 = vld [vmem:[%s7689_s3 + $0xca0] ss:$16 sps:$4 sm:$0xff]  }
 0x20a   :  { %3987 = vmatpush1.bf16.msra.mxu0 %v5612_v45  ;;  %v5693_v45 = vld [vmem:[%s7689_s3 + $0xca8] ss:$16 sps:$4 sm:$0xff]  }
 0x20b   :  { %4315 = vmatpush1.bf16.msra.mxu1 %v5615_v56  ;;  %3988 = vmatprep.subr.bf16.mxu0 %v5620_v46  ;;  %v5698_v56 = vld [vmem:[%s7689_s3 + $0xcc4] ss:$16 sps:$4 sm:$0xff]   ;;  %v5701_v46 = vld [vmem:[%s7689_s3 + $0xccc] ss:$16 sps:$4 sm:$0xff]  }
 0x20c   :  { %4316 = vmatprep.subr.bf16.mxu1 %v5623_v47  ;;  %v5696_v47 = vld [vmem:[%s7689_s3 + $0xcc0] ss:$16 sps:$4 sm:$0xff]  }
 0x20e   :  { %3989 = vmatpush1.bf16.msra.mxu0 %v5618_v48  ;;  %v5699_v48 = vld [vmem:[%s7689_s3 + $0xcc8] ss:$16 sps:$4 sm:$0xff]  }
 0x20f   :  { %4317 = vmatpush1.bf16.msra.mxu1 %v5621_v49  ;;  %3990 = vmatprep.subr.bf16.mxu0 %v5626_v50  ;;  %v5704_v49 = vld [vmem:[%s7689_s3 + $0xce4] ss:$16 sps:$4 sm:$0xff]   ;;  %v5707_v50 = vld [vmem:[%s7689_s3 + $0xcec] ss:$16 sps:$4 sm:$0xff]  }
 0x210   :  { %4318 = vmatprep.subr.bf16.mxu1 %v5629_v51  ;;  %v5702_v51 = vld [vmem:[%s7689_s3 + $0xce0] ss:$16 sps:$4 sm:$0xff]  }
 0x212   :  { %3991 = vmatpush1.bf16.msra.mxu0 %v5624_v54  ;;  %v5705_v54 = vld [vmem:[%s7689_s3 + $0xce8] ss:$16 sps:$4 sm:$0xff]  }
 0x213   :  { %4319 = vmatpush1.bf16.msra.mxu1 %v5627_v57  ;;  %3992 = vmatprep.subr.bf16.mxu0 %v5632_v58  ;;  %v5710_v57 = vld [vmem:[%s7689_s3 + $0xd04] ss:$16 sps:$4 sm:$0xff]   ;;  %v5713_v58 = vld [vmem:[%s7689_s3 + $0xd0c] ss:$16 sps:$4 sm:$0xff]  }
 0x214   :  { %4320 = vmatprep.subr.bf16.mxu1 %v5635_v59  ;;  %v5708_v59 = vld [vmem:[%s7689_s3 + $0xd00] ss:$16 sps:$4 sm:$0xff]  }
 0x216   :  { %3993 = vmatpush1.bf16.msra.mxu0 %v5630_v60  ;;  %v5711_v60 = vld [vmem:[%s7689_s3 + $0xd08] ss:$16 sps:$4 sm:$0xff]  }
 0x217   :  { %4321 = vmatpush1.bf16.msra.mxu1 %v5633_v61  ;;  %3994 = vmatprep.subr.bf16.mxu0 %v5638_v62  ;;  %v5716_v61 = vld [vmem:[%s7689_s3 + $0xd24] ss:$16 sps:$4 sm:$0xff]   ;;  %v5719_v62 = vld [vmem:[%s7689_s3 + $0xd2c] ss:$16 sps:$4 sm:$0xff]  }
 0x218   :  { %4322 = vmatprep.subr.bf16.mxu1 %v5641_v52  ;;  %v5714_v52 = vld [vmem:[%s7689_s3 + $0xd20] ss:$16 sps:$4 sm:$0xff]  }
 0x21a   :  { %3995 = vmatpush1.bf16.msra.mxu0 %v5636_v63  ;;  %v5717_v63 = vld [vmem:[%s7689_s3 + $0xd28] ss:$16 sps:$4 sm:$0xff]  }
 0x21b   :  { %4323 = vmatpush1.bf16.msra.mxu1 %v5639_v0  ;;  %3996 = vmatprep.subr.bf16.mxu0 %v5644_v2  ;;  %v5722_v0 = vld [vmem:[%s7689_s3 + $0xd44] ss:$16 sps:$4 sm:$0xff]   ;;  %v5725_v2 = vld [vmem:[%s7689_s3 + $0xd4c] ss:$16 sps:$4 sm:$0xff]  }
 0x21c   :  { %4324 = vmatprep.subr.bf16.mxu1 %v5647_v1  ;;  %v5720_v1 = vld [vmem:[%s7689_s3 + $0xd40] ss:$16 sps:$4 sm:$0xff]  }
 0x21e   :  { %3997 = vmatpush1.bf16.msra.mxu0 %v5642_v6  ;;  %v5723_v6 = vld [vmem:[%s7689_s3 + $0xd48] ss:$16 sps:$4 sm:$0xff]  }
 0x21f   :  { %4325 = vmatpush1.bf16.msra.mxu1 %v5645_v11  ;;  %3998 = vmatprep.subr.bf16.mxu0 %v5650_v12  ;;  %v5728_v11 = vld [vmem:[%s7689_s3 + $0xd64] ss:$16 sps:$4 sm:$0xff]   ;;  %v5731_v12 = vld [vmem:[%s7689_s3 + $0xd6c] ss:$16 sps:$4 sm:$0xff]  }
 0x220   :  { %4326 = vmatprep.subr.bf16.mxu1 %v5653_v13  ;;  %v5726_v13 = vld [vmem:[%s7689_s3 + $0xd60] ss:$16 sps:$4 sm:$0xff]  }
 0x222   :  { %3999 = vmatpush1.bf16.msra.mxu0 %v5648_v8  ;;  %v5729_v8 = vld [vmem:[%s7689_s3 + $0xd68] ss:$16 sps:$4 sm:$0xff]  }
 0x223   :  { %4327 = vmatpush1.bf16.msra.mxu1 %v5651_v36  ;;  %4000 = vmatprep.subr.bf16.mxu0 %v5656_v5  ;;  %v5734_v36 = vld [vmem:[%s7689_s3 + $0xd84] ss:$16 sps:$4 sm:$0xff]   ;;  %v5737_v5 = vld [vmem:[%s7689_s3 + $0xd8c] ss:$16 sps:$4 sm:$0xff]  }
 0x224   :  { %4328 = vmatprep.subr.bf16.mxu1 %v5659_v20  ;;  %v5732_v20 = vld [vmem:[%s7689_s3 + $0xd80] ss:$16 sps:$4 sm:$0xff]  }
 0x226   :  { %4001 = vmatpush1.bf16.msra.mxu0 %v5654_v14  ;;  %v5735_v14 = vld [vmem:[%s7689_s3 + $0xd88] ss:$16 sps:$4 sm:$0xff]  }
 0x227   :  { %4329 = vmatpush1.bf16.msra.mxu1 %v5657_v18  ;;  %4011 = vmatprep.subr.bf16.mxu0 %v5662_v44  ;;  %v5743_v18 = vld [vmem:[%s7689_s3 + $0xdac] ss:$16 sps:$4 sm:$0xff]   ;;  %v5738_v44 = vld [vmem:[%s7689_s3 + $0xda0] ss:$16 sps:$4 sm:$0xff]  }
 0x228   :  { %4339 = vmatprep.subr.bf16.mxu1 %v5665_v22  ;;  %v5741_v22 = vld [vmem:[%s7689_s3 + $0xda8] ss:$16 sps:$4 sm:$0xff]  }
 0x229   :  { %4003 = vmatmul.mubr.bf16.vlgmr.msra.gmra.mrb[16].mxu0 %v665_v24 }
 0x22a   :  { %4331 = vmatmul.mubr.bf16.vlgmr.msra.gmra.mrb[16].mxu1 %v665_v24  ;;  %4012 = vmatpush1.bf16.msra.mxu0 %v5660_v4  ;;  %v5749_v4 = vld [vmem:[%s7689_s3 + $0xdcc] ss:$16 sps:$4 sm:$0xff]   ;;  %v5744_v24 = vld [vmem:[%s7689_s3 + $0xdc0] ss:$16 sps:$4 sm:$0xff]  }
 0x22b   :  { %4043 = vmatprep.mubr.bf16.mxu0 %v668_v27  ;;  %4340 = vmatpush1.bf16.msra.mxu1 %v5663_v25  ;;  %v5747_v25 = vld [vmem:[%s7689_s3 + $0xdc8] ss:$16 sps:$4 sm:$0xff]  }
 0x22c   :  { %4371 = vmatprep.mubr.bf16.mxu1 %v668_v27  ;;  %4013 = vmatprep.subr.bf16.mxu0 %v5668_v26  ;;  %v5752_v26 = vld [vmem:[%s7689_s3 + $0xde4] ss:$16 sps:$4 sm:$0xff]   ;;  %v5755_v27 = vld [vmem:[%s7689_s3 + $0xdec] ss:$16 sps:$4 sm:$0xff]  }
 0x22d   :  { %4341 = vmatprep.subr.bf16.mxu1 %v5671_v32  ;;  %v5750_v32 = vld [vmem:[%s7689_s3 + $0xde0] ss:$16 sps:$4 sm:$0xff]  }
 0x22e   :  { %4014 = vmatpush1.bf16.msra.mxu0 %v5666_v28  ;;  %v651_v28 = vmax.f32 %v6337_v21, 0.0  ;;  %v5756_v21 = vld [vmem:[%s7689_s3 + $0xe00] ss:$16 sps:$4 sm:$0xff]  }
 0x22f   :  { %4342 = vmatpush1.bf16.msra.mxu1 %v5669_v29  ;;  %4015 = vmatprep.subr.bf16.mxu0 %v5674_v30  ;;  %v5753_v29 = vld [vmem:[%s7689_s3 + $0xde8] ss:$16 sps:$4 sm:$0xff]   ;;  %v5758_v30 = vld [vmem:[%s7689_s3 + $0xe04] ss:$16 sps:$4 sm:$0xff]  }
 0x230   :  { %4343 = vmatprep.subr.bf16.mxu1 %v5677_v31  ;;  %v5761_v31 = vld [vmem:[%s7689_s3 + $0xe0c] ss:$16 sps:$4 sm:$0xff]  }
 0x232   :  { %4016 = vmatpush1.bf16.msra.mxu0 %v5672_v33  ;;  %v654_v33 = vmax.f32 %v6364_v38, 0.0  ;;  %v5767_v38 = vld [vmem:[%s7689_s3 + $0xe2c] ss:$16 sps:$4 sm:$0xff]  }
 0x233   :  { %4344 = vmatpush1.bf16.msra.mxu1 %v5675_v35  ;;  %4017 = vmatprep.subr.bf16.mxu0 %v5680_v19  ;;  %v667_v35 = vpack.c.bf16 %v651_v28, %v651_v28  ;;  %v5759_v19 = vld [vmem:[%s7689_s3 + $0xe08] ss:$16 sps:$4 sm:$0xff]   ;;  %v5834_v28 = vld [vmem:[%s7689_s3 + $0xfa0] ss:$16 sps:$4 sm:$0xff]  }
 0x234   :  { %4345 = vmatprep.subr.bf16.mxu1 %v5683_v16  ;;  %v5764_v16 = vld [vmem:[%s7689_s3 + $0xe24] ss:$16 sps:$4 sm:$0xff]  }
 0x236   :  { %4018 = vmatpush1.bf16.msra.mxu0 %v5678_v7  ;;  %v670_v7 = vpack.c.bf16 %v654_v33, %v654_v33  ;;  %v5840_v33 = vld [vmem:[%s7689_s3 + $0xfc0] ss:$16 sps:$4 sm:$0xff]  }
 0x237   :  { %4346 = vmatpush1.bf16.msra.mxu1 %v5681_v17  ;;  %4019 = vmatprep.subr.bf16.mxu0 %v5686_v39  ;;  %v5762_v17 = vld [vmem:[%s7689_s3 + $0xe20] ss:$16 sps:$4 sm:$0xff]   ;;  %v5765_v39 = vld [vmem:[%s7689_s3 + $0xe28] ss:$16 sps:$4 sm:$0xff]  }
 0x238   :  { %4347 = vmatprep.subr.bf16.mxu1 %v5689_v41  ;;  %v5770_v41 = vld [vmem:[%s7689_s3 + $0xe44] ss:$16 sps:$4 sm:$0xff]  }
 0x23a   :  { %4020 = vmatpush1.bf16.msra.mxu0 %v5684_v55  ;;  %v5773_v55 = vld [vmem:[%s7689_s3 + $0xe4c] ss:$16 sps:$4 sm:$0xff]  }
 0x23b   :  { %4348 = vmatpush1.bf16.msra.mxu1 %v5687_v42  ;;  %4021 = vmatprep.subr.bf16.mxu0 %v5692_v43  ;;  %v5768_v42 = vld [vmem:[%s7689_s3 + $0xe40] ss:$16 sps:$4 sm:$0xff]   ;;  %v5771_v43 = vld [vmem:[%s7689_s3 + $0xe48] ss:$16 sps:$4 sm:$0xff]  }
 0x23c   :  { %4349 = vmatprep.subr.bf16.mxu1 %v5695_v40  ;;  %v5776_v40 = vld [vmem:[%s7689_s3 + $0xe64] ss:$16 sps:$4 sm:$0xff]  }
 0x23e   :  { %4022 = vmatpush1.bf16.msra.mxu0 %v5690_v37  ;;  %v5779_v37 = vld [vmem:[%s7689_s3 + $0xe6c] ss:$16 sps:$4 sm:$0xff]  }
 0x23f   :  { %4350 = vmatpush1.bf16.msra.mxu1 %v5693_v45  ;;  %4023 = vmatprep.subr.bf16.mxu0 %v5698_v56  ;;  %v5774_v45 = vld [vmem:[%s7689_s3 + $0xe60] ss:$16 sps:$4 sm:$0xff]   ;;  %v5777_v56 = vld [vmem:[%s7689_s3 + $0xe68] ss:$16 sps:$4 sm:$0xff]  }
 0x240   :  { %4351 = vmatprep.subr.bf16.mxu1 %v5701_v46  ;;  %v5782_v46 = vld [vmem:[%s7689_s3 + $0xe84] ss:$16 sps:$4 sm:$0xff]  }
 0x242   :  { %4024 = vmatpush1.bf16.msra.mxu0 %v5696_v47  ;;  %v5785_v47 = vld [vmem:[%s7689_s3 + $0xe8c] ss:$16 sps:$4 sm:$0xff]  }
 0x243   :  { %4352 = vmatpush1.bf16.msra.mxu1 %v5699_v48  ;;  %4025 = vmatprep.subr.bf16.mxu0 %v5704_v49  ;;  %v5780_v48 = vld [vmem:[%s7689_s3 + $0xe80] ss:$16 sps:$4 sm:$0xff]   ;;  %v5783_v49 = vld [vmem:[%s7689_s3 + $0xe88] ss:$16 sps:$4 sm:$0xff]  }
 0x244   :  { %4353 = vmatprep.subr.bf16.mxu1 %v5707_v50  ;;  %v5788_v50 = vld [vmem:[%s7689_s3 + $0xea4] ss:$16 sps:$4 sm:$0xff]  }
 0x246   :  { %4026 = vmatpush1.bf16.msra.mxu0 %v5702_v51  ;;  %v5791_v51 = vld [vmem:[%s7689_s3 + $0xeac] ss:$16 sps:$4 sm:$0xff]  }
 0x247   :  { %4354 = vmatpush1.bf16.msra.mxu1 %v5705_v54  ;;  %4027 = vmatprep.subr.bf16.mxu0 %v5710_v57  ;;  %v5786_v54 = vld [vmem:[%s7689_s3 + $0xea0] ss:$16 sps:$4 sm:$0xff]   ;;  %v5789_v57 = vld [vmem:[%s7689_s3 + $0xea8] ss:$16 sps:$4 sm:$0xff]  }
 0x248   :  { %4355 = vmatprep.subr.bf16.mxu1 %v5713_v58  ;;  %v5794_v58 = vld [vmem:[%s7689_s3 + $0xec4] ss:$16 sps:$4 sm:$0xff]  }
 0x24a   :  { %4028 = vmatpush1.bf16.msra.mxu0 %v5708_v59  ;;  %v5797_v59 = vld [vmem:[%s7689_s3 + $0xecc] ss:$16 sps:$4 sm:$0xff]  }
 0x24b   :  { %4356 = vmatpush1.bf16.msra.mxu1 %v5711_v60  ;;  %4029 = vmatprep.subr.bf16.mxu0 %v5716_v61  ;;  %v5792_v60 = vld [vmem:[%s7689_s3 + $0xec0] ss:$16 sps:$4 sm:$0xff]   ;;  %v5795_v61 = vld [vmem:[%s7689_s3 + $0xec8] ss:$16 sps:$4 sm:$0xff]  }
 0x24c   :  { %4357 = vmatprep.subr.bf16.mxu1 %v5719_v62  ;;  %v5800_v62 = vld [vmem:[%s7689_s3 + $0xee4] ss:$16 sps:$4 sm:$0xff]  }
 0x24e   :  { %4030 = vmatpush1.bf16.msra.mxu0 %v5714_v52  ;;  %v5803_v52 = vld [vmem:[%s7689_s3 + $0xeec] ss:$16 sps:$4 sm:$0xff]  }
 0x24f   :  { %4358 = vmatpush1.bf16.msra.mxu1 %v5717_v63  ;;  %4031 = vmatprep.subr.bf16.mxu0 %v5722_v0  ;;  %v5798_v63 = vld [vmem:[%s7689_s3 + $0xee0] ss:$16 sps:$4 sm:$0xff]   ;;  %v5801_v0 = vld [vmem:[%s7689_s3 + $0xee8] ss:$16 sps:$4 sm:$0xff]  }
 0x250   :  { %4359 = vmatprep.subr.bf16.mxu1 %v5725_v2  ;;  %v5806_v2 = vld [vmem:[%s7689_s3 + $0xf04] ss:$16 sps:$4 sm:$0xff]  }
 0x252   :  { %4032 = vmatpush1.bf16.msra.mxu0 %v5720_v1  ;;  %v5809_v1 = vld [vmem:[%s7689_s3 + $0xf0c] ss:$16 sps:$4 sm:$0xff]  }
 0x253   :  { %4360 = vmatpush1.bf16.msra.mxu1 %v5723_v6  ;;  %4033 = vmatprep.subr.bf16.mxu0 %v5728_v11  ;;  %v5804_v6 = vld [vmem:[%s7689_s3 + $0xf00] ss:$16 sps:$4 sm:$0xff]   ;;  %v5807_v11 = vld [vmem:[%s7689_s3 + $0xf08] ss:$16 sps:$4 sm:$0xff]  }
 0x254   :  { %4361 = vmatprep.subr.bf16.mxu1 %v5731_v12  ;;  %v5812_v12 = vld [vmem:[%s7689_s3 + $0xf24] ss:$16 sps:$4 sm:$0xff]  }
 0x256   :  { %4034 = vmatpush1.bf16.msra.mxu0 %v5726_v13  ;;  %v5815_v13 = vld [vmem:[%s7689_s3 + $0xf2c] ss:$16 sps:$4 sm:$0xff]  }
 0x257   :  { %4362 = vmatpush1.bf16.msra.mxu1 %v5729_v8  ;;  %4035 = vmatprep.subr.bf16.mxu0 %v5734_v36  ;;  %v5810_v8 = vld [vmem:[%s7689_s3 + $0xf20] ss:$16 sps:$4 sm:$0xff]   ;;  %v5813_v36 = vld [vmem:[%s7689_s3 + $0xf28] ss:$16 sps:$4 sm:$0xff]  }
 0x258   :  { %4363 = vmatprep.subr.bf16.mxu1 %v5737_v5  ;;  %v5818_v5 = vld [vmem:[%s7689_s3 + $0xf44] ss:$16 sps:$4 sm:$0xff]  }
 0x25a   :  { %4036 = vmatpush1.bf16.msra.mxu0 %v5732_v20  ;;  %v5821_v20 = vld [vmem:[%s7689_s3 + $0xf4c] ss:$16 sps:$4 sm:$0xff]  }
 0x25b   :  { %4364 = vmatpush1.bf16.msra.mxu1 %v5735_v14  ;;  %4037 = vmatprep.subr.bf16.mxu0 %v5740_v15  ;;  %v5816_v14 = vld [vmem:[%s7689_s3 + $0xf40] ss:$16 sps:$4 sm:$0xff]   ;;  %v5819_v15 = vld [vmem:[%s7689_s3 + $0xf48] ss:$16 sps:$4 sm:$0xff]  }
 0x25c   :  { %4365 = vmatprep.subr.bf16.mxu1 %v5743_v18  ;;  %v5824_v18 = vld [vmem:[%s7689_s3 + $0xf64] ss:$16 sps:$4 sm:$0xff]  }
 0x25e   :  { %4038 = vmatpush1.bf16.msra.mxu0 %v5738_v44  ;;  %v5827_v44 = vld [vmem:[%s7689_s3 + $0xf6c] ss:$16 sps:$4 sm:$0xff]  }
 0x25f   :  { %4366 = vmatpush1.bf16.msra.mxu1 %v5741_v22  ;;  %4039 = vmatprep.subr.bf16.mxu0 %v5746_v23  ;;  %v5822_v22 = vld [vmem:[%s7689_s3 + $0xf60] ss:$16 sps:$4 sm:$0xff]   ;;  %v5825_v23 = vld [vmem:[%s7689_s3 + $0xf68] ss:$16 sps:$4 sm:$0xff]  }
 0x260   :  { %4367 = vmatprep.subr.bf16.mxu1 %v5749_v4  ;;  %v5830_v4 = vld [vmem:[%s7689_s3 + $0xf84] ss:$16 sps:$4 sm:$0xff]  }
 0x262   :  { %4040 = vmatpush1.bf16.msra.mxu0 %v5744_v24  ;;  %v5833_v24 = vld [vmem:[%s7689_s3 + $0xf8c] ss:$16 sps:$4 sm:$0xff]  }
 0x263   :  { %4368 = vmatpush1.bf16.msra.mxu1 %v5747_v25  ;;  %4041 = vmatprep.subr.bf16.mxu0 %v5752_v26  ;;  %v5828_v25 = vld [vmem:[%s7689_s3 + $0xf80] ss:$16 sps:$4 sm:$0xff]   ;;  %v5831_v26 = vld [vmem:[%s7689_s3 + $0xf88] ss:$16 sps:$4 sm:$0xff]  }
 0x264   :  { %4369 = vmatprep.subr.bf16.mxu1 %v5755_v27  ;;  %v5836_v27 = vld [vmem:[%s7689_s3 + $0xfa4] ss:$16 sps:$4 sm:$0xff]  }
 0x266   :  { %4042 = vmatpush1.bf16.msra.mxu0 %v5750_v32  ;;  %v5839_v32 = vld [vmem:[%s7689_s3 + $0xfac] ss:$16 sps:$4 sm:$0xff]  }
 0x267   :  { %4370 = vmatpush1.bf16.msra.mxu1 %v5753_v29  ;;  %4052 = vmatprep.subr.bf16.mxu0 %v5758_v30  ;;  %v5837_v29 = vld [vmem:[%s7689_s3 + $0xfa8] ss:$16 sps:$4 sm:$0xff]   ;;  %v5842_v30 = vld [vmem:[%s7689_s3 + $0xfc4] ss:$16 sps:$4 sm:$0xff]  }
 0x268   :  { %4380 = vmatprep.subr.bf16.mxu1 %v5761_v31  ;;  %v5845_v31 = vld [vmem:[%s7689_s3 + $0xfcc] ss:$16 sps:$4 sm:$0xff]  }
 0x269   :  { %4044 = vmatmul.mubr.bf16.vlgmr.msra.gmra.mrb[16].mxu0 %v667_v35 }
 0x26a   :  { %4372 = vmatmul.mubr.bf16.vlgmr.msra.gmra.mrb[16].mxu1 %v667_v35  ;;  %4053 = vmatpush1.bf16.msra.mxu0 %v5756_v21  ;;  %v5843_v21 = vld [vmem:[%s7689_s3 + $0xfc8] ss:$16 sps:$4 sm:$0xff]   ;;  %v5848_v35 = vld [vmem:[%s7689_s3 + $0xfe4] ss:$16 sps:$4 sm:$0xff]  }
 0x26b   :  { %4084 = vmatprep.mubr.bf16.mxu0 %v670_v7  ;;  %4381 = vmatpush1.bf16.msra.mxu1 %v5759_v19  ;;  %v5851_v19 = vld [vmem:[%s7689_s3 + $0xfec] ss:$16 sps:$4 sm:$0xff]  }
 0x26c   :  { %4412 = vmatprep.mubr.bf16.mxu1 %v670_v7  ;;  %4054 = vmatprep.subr.bf16.mxu0 %v5764_v16  ;;  %v5846_v16 = vld [vmem:[%s7689_s3 + $0xfe0] ss:$16 sps:$4 sm:$0xff]   ;;  %v653_v7 = vmax.f32 %v6362_v34, 0.0 }
 0x26d   :  { %4382 = vmatprep.subr.bf16.mxu1 %v5767_v38  ;;  %v5849_v38 = vld [vmem:[%s7689_s3 + $0xfe8] ss:$16 sps:$4 sm:$0xff]   ;;  %v1183_v34 = vld [vmem:[%s7692_s4] sm:$0xf] }
 0x26e   :  { %4055 = vmatpush1.bf16.msra.mxu0 %v5762_v17  ;;  %v669_v17 = vpack.c.bf16 %v653_v7, %v653_v7 }
 0x26f   :  { %4383 = vmatpush1.bf16.msra.mxu1 %v5765_v39  ;;  %4056 = vmatprep.subr.bf16.mxu0 %v5770_v41  ;;  %v12_v39 = vstv %s7691_s6  ;;  %v1188_v41 = vrot.slane %v1183_v34, %v6221_v3 }
 0x270   :  { %4384 = vmatprep.subr.bf16.mxu1 %v5773_v55  ;;  %13 = vst [vmem:[#allocation2] sm:$0x1] %v12_v39  ;;  %v4425_v55 = vld [vmem:[%s7693_s5] sm:$0xf] }
 0x272   :  { %4057 = vmatpush1.bf16.msra.mxu0 %v5768_v42  ;;  %v1196_v42 = vrot.slane %v1183_v34, %v6292_v53 }
 0x273   :  { %4385 = vmatpush1.bf16.msra.mxu1 %v5771_v43  ;;  %4058 = vmatprep.subr.bf16.mxu0 %v5776_v40  ;;  %v1192_v43 = vrot.slane %v1183_v34, %v6229_v9  ;;  %v1200_v40 = vrot.slane %v1183_v34, %v6232_v10 }
 0x274   :  { %4386 = vmatprep.subr.bf16.mxu1 %v5779_v37 }
 0x276   :  { %4059 = vmatpush1.bf16.msra.mxu0 %v5774_v45 }
 0x277   :  { %4387 = vmatpush1.bf16.msra.mxu1 %v5777_v56  ;;  %4060 = vmatprep.subr.bf16.mxu0 %v5782_v46  ;;  %v4430_v56 = vrot.slane %v4425_v55, %v6221_v3 }
 0x278   :  { %4388 = vmatprep.subr.bf16.mxu1 %v5785_v47 }
 0x27a   :  { %4061 = vmatpush1.bf16.msra.mxu0 %v5780_v48 }
 0x27b   :  { %4389 = vmatpush1.bf16.msra.mxu1 %v5783_v49  ;;  %4062 = vmatprep.subr.bf16.mxu0 %v5788_v50  ;;  %v4434_v50 = vrot.slane %v4425_v55, %v6229_v9 }
 0x27c   :  { %4390 = vmatprep.subr.bf16.mxu1 %v5791_v51 }
 0x27e   :  { %4063 = vmatpush1.bf16.msra.mxu0 %v5786_v54 }
 0x27f   :  { %4391 = vmatpush1.bf16.msra.mxu1 %v5789_v57  ;;  %4064 = vmatprep.subr.bf16.mxu0 %v5794_v58 }
 0x280   :  { %4392 = vmatprep.subr.bf16.mxu1 %v5797_v59 }
 0x282   :  { %4065 = vmatpush1.bf16.msra.mxu0 %v5792_v60 }
 0x283   :  { %4393 = vmatpush1.bf16.msra.mxu1 %v5795_v61  ;;  %4066 = vmatprep.subr.bf16.mxu0 %v5800_v62  ;;  %v4438_v62 = vrot.slane %v4425_v55, %v6292_v53 }
 0x284   :  { %4394 = vmatprep.subr.bf16.mxu1 %v5803_v52 }
 0x286   :  { %4067 = vmatpush1.bf16.msra.mxu0 %v5798_v63 }
 0x287   :  { %4395 = vmatpush1.bf16.msra.mxu1 %v5801_v0  ;;  %4068 = vmatprep.subr.bf16.mxu0 %v5806_v2 }
 0x288   :  { %4396 = vmatprep.subr.bf16.mxu1 %v5809_v1  ;;  %v4442_v1 = vrot.slane %v4425_v55, %v6232_v10 }
 0x28a   :  { %4069 = vmatpush1.bf16.msra.mxu0 %v5804_v6 }
 0x28b   :  { %4397 = vmatpush1.bf16.msra.mxu1 %v5807_v11  ;;  %4070 = vmatprep.subr.bf16.mxu0 %v5812_v12 }
 0x28c   :  { %4398 = vmatprep.subr.bf16.mxu1 %v5815_v13 }
 0x28e   :  { %4071 = vmatpush1.bf16.msra.mxu0 %v5810_v8  ;;  %v5022_v8 = vld [vmem:[#allocation2] ss:$0 sm:$0xff] }
 0x28f   :  { %4399 = vmatpush1.bf16.msra.mxu1 %v5813_v36  ;;  %4072 = vmatprep.subr.bf16.mxu0 %v5818_v5 }
 0x290   :  { %4400 = vmatprep.subr.bf16.mxu1 %v5821_v20 }
 0x292   :  { %4073 = vmatpush1.bf16.msra.mxu0 %v5816_v14 }
 0x293   :  { %4401 = vmatpush1.bf16.msra.mxu1 %v5819_v15  ;;  %4074 = vmatprep.subr.bf16.mxu0 %v5824_v18 }
 0x294   :  { %4402 = vmatprep.subr.bf16.mxu1 %v5827_v44 }
 0x296   :  { %4075 = vmatpush1.bf16.msra.mxu0 %v5822_v22 }
 0x297   :  { %4403 = vmatpush1.bf16.msra.mxu1 %v5825_v23  ;;  %4076 = vmatprep.subr.bf16.mxu0 %v5830_v4 }
 0x298   :  { %4404 = vmatprep.subr.bf16.mxu1 %v5833_v24 }
 0x29a   :  { %4077 = vmatpush1.bf16.msra.mxu0 %v5828_v25 }
 0x29b   :  { %4405 = vmatpush1.bf16.msra.mxu1 %v5831_v26  ;;  %4078 = vmatprep.subr.bf16.mxu0 %v5836_v27 }
 0x29c   :  { %4406 = vmatprep.subr.bf16.mxu1 %v5839_v32 }
 0x29e   :  { %4079 = vmatpush1.bf16.msra.mxu0 %v5834_v28 }
 0x29f   :  { %4407 = vmatpush1.bf16.msra.mxu1 %v5837_v29  ;;  %4080 = vmatprep.subr.bf16.mxu0 %v5842_v30 }
 0x2a0   :  { %4408 = vmatprep.subr.bf16.mxu1 %v5845_v31 }
 0x2a2   :  { %4081 = vmatpush1.bf16.msra.mxu0 %v5840_v33 }
 0x2a3   :  { %4409 = vmatpush1.bf16.msra.mxu1 %v5843_v21  ;;  %4082 = vmatprep.subr.bf16.mxu0 %v5848_v35 }
 0x2a4   :  { %4410 = vmatprep.subr.bf16.mxu1 %v5851_v19 }
 0x2a6   :  { %4083 = vmatpush1.bf16.msra.mxu0 %v5846_v16 }
 0x2a7   :  { %4411 = vmatpush1.bf16.msra.mxu1 %v5849_v38 }
 0x2a9   :  { %4085 = vmatmul.mubr.bf16.vlgmr.msra.gmra.mrb[16].mxu0 %v669_v17 }
 0x2aa   :  { %4413 = vmatmul.mubr.bf16.vlgmr.msra.gmra.mrb[16].mxu1 %v669_v17 }
 0x37c   :  { %v4086_v37 = vpop.f32.mrb[16].mxu0 }
 0x37d   :  { %v5023_v45 = vadd.f32 %v4086_v37, %v1188_v41  ;;  %v4414_v46 = vpop.f32.mrb[16].mxu1  ;;  %v4088_v47 = vpop.f32.mrb[17].mxu0 }
 0x37e   :  { %v5025_v48 = vadd.f32 %v4414_v46, %v1196_v42  ;;  %v5024_v49 = vadd.f32 %v4088_v47, %v1192_v43  ;;  %v4416_v51 = vpop.f32.mrb[17].mxu1  ;;  %v4090_v54 = vpop.f32.mrb[18].mxu0 }
 0x37f   :  { %v4421_v57 = vmax.f32 %v5023_v45, 0.0  ;;  %v5026_v58 = vadd.f32 %v4416_v51, %v1200_v40  ;;  %v4418_v59 = vpop.f32.mrb[18].mxu1  ;;  %v4091_v60 = vpop.f32.mrb[19].mxu0 }
 0x380   :  { %v4423_v61 = vmax.f32 %v5025_v48, 0.0  ;;  %v4422_v52 = vmax.f32 %v5024_v49, 0.0  ;;  %v4419_v63 = vpop.f32.mrb[19].mxu1 }
 0x381   :  { %v4447_v0 = vmul.f32 %v4430_v56, %v4421_v57  ;;  %v4424_v3 = vmax.f32 %v5026_v58, 0.0 }
 0x382   :  { %v4448_v2 = vmul.f32 %v4434_v50, %v4422_v52  ;;  %v4449_v6 = vmul.f32 %v4438_v62, %v4423_v61 }
 0x383   :  { %v4450_v12 = vmul.f32 %v4442_v1, %v4424_v3 }
 0x384   :  { %v4451_v11 = vadd.f32 %v4448_v2, %v4447_v0 }
 0x386   :  { %v4452_v9 = vadd.f32 %v4451_v11, %v4449_v6 }
 0x388   :  { %v4453_v13 = vadd.f32 %v4452_v9, %v4450_v12 }
 0x38a   :  { %4454 = vadd.xlane.f32.xlu0 %v4453_v13 }
 0x417   :  { %v4455_v36 = vpop.xlane.xlu0 %4454 }
 0x418   :  { %v4463_v5 = vadd.f32 %v5022_v8, %v4455_v36 }
 0x41a   :  { %4465 = vst.msk [vmem:[%s7694_s7] sm:$0xff] %vm4464_vm1, %v4463_v5 }

</bundles_post_ra>
